<compile_context>
chip_gen: v7x
topology: tpu7x:2x2x1
jax: 0.10.0
libtpu: 0.0.40
codegen_flags: <defaults>
</compile_context>

<pallas_src>
import functools

import jax
import jax.numpy as jnp
import numpy as np
from jax.experimental import pallas as pl
from jax.experimental.pallas import tpu as pltpu

# ---- module hyper-parameters (match BMFM defaults, op_channel=32) ----
OP_CHANNEL = 32
GROUP_NUM = 16
GATE_THRESHOLD = 0.5
ALPHA = 0.5
SQUEEZE_RADIO = 2
GROUP_SIZE = 2
GROUP_KERNEL_SIZE = 3
EPS = 1e-10

RICH = int(ALPHA * OP_CHANNEL)          # 16
RED = OP_CHANNEL - RICH                 # 16
RICH_SQ = RICH // SQUEEZE_RADIO         # 8
RED_SQ = RED // SQUEEZE_RADIO           # 8
PWC2_OUT = OP_CHANNEL - RED_SQ          # 24
SQ_TOTAL = RICH_SQ + RED_SQ             # 16
N_TAPS = GROUP_KERNEL_SIZE * GROUP_KERNEL_SIZE                # 9
GWC_COLS = N_TAPS * RICH_SQ                                   # 72

_HIGH = jax.lax.Precision.HIGHEST


def _dot(a, b):
    return jnp.dot(a, b, preferred_element_type=jnp.float32, precision=_HIGH)


def bmfm_kernel(x_ref, gw_ref, bw_ref, info_ref, bg_ref, P_ref, wsq_ref,
                wg_ref, wp2e_ref, mask_ref, vcol_ref, o_ref, colm_ref,
                *, HW, NB, tap_shifts):
    C = P_ref.shape[0]
    half = C // 2
    n_grp = (C * HW) // GROUP_NUM        # elements per group-norm group

    # grid-invariant parameters: loaded once per step, reused for all NB items
    gw = gw_ref[...]                     # gamma * softmax(gamma)   (C,1)
    bw = bw_ref[...]                     # beta  * softmax(gamma)   (C,1)
    info = info_ref[...]                 # (softmax(gamma) > 0.5)   (C,1)
    noninfo = 1.0 - info
    bg = bg_ref[...]                     # GWC bias                 (C,1)
    P = P_ref[...]                       # group-sum projector      (C,C)
    wsq = wsq_ref[...]                   # block-diag [w1;w2]       (16,C)
    wg = wg_ref[...]                     # flattened GWC + PWC1     (C,72)
    wp2e = wp2e_ref[...]                 # [wp2; I8]                (C,8)
    vcol = vcol_ref[...]                 # valid-lane ones column   (HWp,1)

    def body(b, carry):
        x = x_ref[b]                                        # (C, HWp)

        # ---------- SIAM: group-norm (two-pass); reductions on the MXU ----
        s = _dot(x, vcol)                                   # masked row sums
        mean = _dot(P, s) * (1.0 / n_grp)                   # group mean (C,1)
        d = x - mean
        sd = _dot(d * d, vcol)                              # vcol masks pads
        var = _dot(P, sd) * (1.0 / (n_grp - 1))             # unbiased std
        std = jnp.sqrt(jnp.maximum(var, 0.0))
        inv_std = pl.reciprocal(std + EPS, approx=True)
        z = d * inv_std                                     # (x-mean)/(std+eps)

        # sigmoid(gn * w_gamma) == sigmoid(z*(gamma*w_gamma) + beta*w_gamma)
        rew = jax.nn.sigmoid(z * gw + bw)
        rx = rew * x
        S1 = info * rx
        S2 = noninfo * rx
        xs = jnp.concatenate([S1[:half] + S2[half:], S1[half:] + S2[:half]],
                             axis=0)                        # (C, HWp)

        # ---------- CRRM ----------
        sq = _dot(wsq, xs)                                  # (16, HWp)
        rich_s = sq[:RICH_SQ]
        red_s = sq[RICH_SQ:]

        # im2col via lane rolls (XLU) + precomputed boundary masks, written
        # in place into the resident (72, HWp) scratch (no concat copy)
        for t in range(N_TAPS):
            sh = tap_shifts[t]
            v = rich_s if sh == 0 else pltpu.roll(rich_s, shift=sh, axis=1)
            r0 = t * RICH_SQ
            colm_ref[r0:r0 + RICH_SQ, :] = v * mask_ref[r0:r0 + RICH_SQ, :]

        Y1 = _dot(wg, colm_ref[...]) + bg                   # GWC + PWC1 folded
        Y2 = _dot(wp2e, red_s)                              # [PWC2(red); red]

        # softmax over pooled channel means, applied without building (2C,HWp)
        m1 = _dot(Y1, vcol) * (1.0 / HW)                    # pads excluded
        m2 = _dot(Y2, vcol) * (1.0 / HW)
        cmax = jnp.maximum(jnp.max(m1, axis=0, keepdims=True),
                           jnp.max(m2, axis=0, keepdims=True))
        e1 = jnp.exp(m1 - cmax)
        e2 = jnp.exp(m2 - cmax)
        inv_den = pl.reciprocal(jnp.sum(e1, axis=0, keepdims=True)
                                + jnp.sum(e2, axis=0, keepdims=True),
                                approx=True)
        o_ref[b] = (e1 * inv_den) * Y1 + (e2 * inv_den) * Y2
        return carry

    jax.lax.fori_loop(0, NB, body, None)


def init_params(key):
    ks = jax.random.split(key, 8)
    params = {
        "gamma": jax.random.normal(ks[0], (OP_CHANNEL,), jnp.float32),
        "beta": jnp.zeros((OP_CHANNEL,), jnp.float32),
        "w1": 0.1 * jax.random.normal(ks[1], (RICH_SQ, RICH), jnp.float32),
        "w2": 0.1 * jax.random.normal(ks[2], (RED_SQ, RED), jnp.float32),
        "w_gwc": 0.1 * jax.random.normal(
            ks[3], (OP_CHANNEL, RICH_SQ // GROUP_SIZE,
                    GROUP_KERNEL_SIZE, GROUP_KERNEL_SIZE), jnp.float32),
        "b_gwc": 0.1 * jax.random.normal(ks[4], (OP_CHANNEL,), jnp.float32),
        "wp1": 0.1 * jax.random.normal(ks[5], (OP_CHANNEL, RICH_SQ), jnp.float32),
        "wp2": 0.1 * jax.random.normal(ks[6], (PWC2_OUT, RED_SQ), jnp.float32),
    }

    # --- host-side fused weights (exact semantics-preserving transforms) ---
    # block-diagonal squeeze weight [w1 0; 0 w2] -> single (16, 32) matmul
    wsq = np.zeros((SQ_TOTAL, OP_CHANNEL), dtype=np.float32)
    wsq[:RICH_SQ, :RICH] = np.asarray(params["w1"])
    wsq[RICH_SQ:, RICH:] = np.asarray(params["w2"])
    params["wsq"] = jnp.asarray(wsq)

    # grouped 3x3 conv weight flattened to (32, 72) block-diagonal matmul,
    # column order = (ky, kx, in_channel) matching the in-kernel im2col
    w = np.asarray(params["w_gwc"])
    O, Ig, KH, KW = w.shape
    out_per_group = O // GROUP_SIZE
    wf = np.zeros((O, KH * KW * RICH_SQ), dtype=np.float32)
    for o in range(O):
        g = o // out_per_group
        for ci in range(Ig):
            c = g * Ig + ci
            for ky in range(KH):
                for kx in range(KW):
                    wf[o, (ky * KW + kx) * RICH_SQ + c] = w[o, ci, ky, kx]
    # fold PWC1 into the centre tap (ky=1, kx=1): GWC(x) + PWC1(x) in one dot
    ctr = ((KH // 2) * KW + (KW // 2)) * RICH_SQ
    wf[:, ctr:ctr + RICH_SQ] += np.asarray(params["wp1"])
    params["wg_fused"] = jnp.asarray(wf)

    # [PWC2; I] so that concat([PWC2(red_s), red_s]) is a single (32, 8) matmul
    wp2e = np.concatenate(
        [np.asarray(params["wp2"]), np.eye(RED_SQ, dtype=np.float32)], axis=0)
    params["wp2e"] = jnp.asarray(wp2e)

    # group-sum broadcast projector P = gsel^T @ gsel (ones block per group)
    cpg = OP_CHANNEL // GROUP_NUM
    P = np.zeros((OP_CHANNEL, OP_CHANNEL), dtype=np.float32)
    for c in range(OP_CHANNEL):
        g = c // cpg
        P[c, g * cpg:(g + 1) * cpg] = 1.0
    params["P"] = jnp.asarray(P)
    return params


def bmfm_pallas(x, params):
    N, C, H, W = x.shape
    HW = H * W
    HWp = ((HW + 127) // 128) * 128                    # lane-dense padding
    x2 = x.reshape(N, C, HW).astype(jnp.float32)
    if HWp != HW:
        x2 = jnp.pad(x2, ((0, 0), (0, 0), (0, HWp - HW)))

    # Batch items per grid step: as large as possible (amortizes per-step
    # overhead; the in-kernel fori_loop keeps vreg pressure constant) subject
    # to (a) grid length >= 2 so both v7x TensorCores get work and (b) the
    # double-buffered in+out blocks fitting a v7x-safe VMEM budget.
    item_bytes = C * HWp * 4
    vmem_budget = 24 * 1024 * 1024                     # 4 * NB * item_bytes
    nb_cap = max(1, min(N, 64, vmem_budget // (4 * item_bytes)))
    min_grid = 2 if N >= 2 else 1
    NB = 1
    for cand in range(nb_cap, 0, -1):
        if N % cand == 0 and N // cand >= min_grid:
            NB = cand
            break

    # parameter-only precompute (constant across the whole call)
    gamma = params["gamma"].astype(jnp.float32)
    beta = params["beta"].astype(jnp.float32)
    w_gamma = jax.nn.softmax(gamma)
    gw = (gamma * w_gamma).reshape(C, 1)
    bw = (beta * w_gamma).reshape(C, 1)
    info = (w_gamma > GATE_THRESHOLD).astype(jnp.float32).reshape(C, 1)
    bg = params["b_gwc"].astype(jnp.float32).reshape(C, 1)

    # valid-lane ones column: turns the four full-width lane reductions into
    # MXU dots and makes padded-lane masking free
    vcol = np.zeros((HWp, 1), np.float32)
    vcol[:HW, 0] = 1.0

    # 3x3 tap shifts + boundary masks, precomputed on the host (grid-invariant)
    lane = np.arange(HWp)
    col = lane % W
    tap_shifts = []
    masks = np.zeros((N_TAPS, HWp), np.float32)
    t = 0
    for ky in range(GROUP_KERNEL_SIZE):
        dy = ky - GROUP_KERNEL_SIZE // 2
        for kx in range(GROUP_KERNEL_SIZE):
            dx = kx - GROUP_KERNEL_SIZE // 2
            off = dy * W + dx
            tap_shifts.append((-off) % HWp)
            valid = lane < HW
            if dx > 0:
                valid = valid & (col < (W - dx))
            elif dx < 0:
                valid = valid & (col >= (-dx))
            if dy > 0:
                valid = valid & (lane < (HW - dy * W))
            elif dy < 0:
                valid = valid & (lane >= (-dy * W))
            masks[t] = valid.astype(np.float32)
            t += 1
    # expand tap-major to (72, HWp) so in-kernel mask slices are aligned slabs
    masks72 = np.repeat(masks, RICH_SQ, axis=0)

    def full(shape):
        nd = len(shape)
        return pl.BlockSpec(shape, lambda n, _nd=nd: (0,) * _nd)

    out = pl.pallas_call(
        functools.partial(bmfm_kernel, HW=HW, NB=NB,
                          tap_shifts=tuple(tap_shifts)),
        out_shape=jax.ShapeDtypeStruct((N, C, HWp), jnp.float32),
        grid=(N // NB,),
        in_specs=[
            pl.BlockSpec((NB, C, HWp), lambda n: (n, 0, 0)),
            full((C, 1)), full((C, 1)), full((C, 1)), full((C, 1)),
            full((C, C)),
            full((SQ_TOTAL, C)),
            full((OP_CHANNEL, GWC_COLS)),
            full((OP_CHANNEL, RED_SQ)),
            full((GWC_COLS, HWp)),
            full((HWp, 1)),
        ],
        out_specs=pl.BlockSpec((NB, C, HWp), lambda n: (n, 0, 0)),
        scratch_shapes=[pltpu.VMEM((GWC_COLS, HWp), jnp.float32)],
        compiler_params=pltpu.CompilerParams(
            dimension_semantics=("parallel",),
            vmem_limit_bytes=48 * 1024 * 1024),
    )(x2, gw, bw, info, bg,
      params["P"], params["wsq"], params["wg_fused"], params["wp2e"],
      jnp.asarray(masks72), jnp.asarray(vcol))

    if HWp != HW:
        out = out[:, :, :HW]
    return out.reshape(N, C, H, W)


def bmfm_ref(x, params):
    """Pure-JAX reference mirroring the PyTorch forward (for validation)."""
    N, C, H, W = x.shape
    gamma = params["gamma"].reshape(1, C, 1, 1)
    beta = params["beta"].reshape(1, C, 1, 1)
    xg = x.reshape(N, GROUP_NUM, -1)
    mean = xg.mean(axis=2, keepdims=True)
    std = jnp.sqrt(jnp.var(xg, axis=2, ddof=1, keepdims=True))   # torch.std unbiased
    gn = ((xg - mean) / (std + EPS)).reshape(N, C, H, W) * gamma + beta
    w_gamma = jax.nn.softmax(params["gamma"]).reshape(1, C, 1, 1)
    rew = jax.nn.sigmoid(gn * w_gamma)
    info = (w_gamma > GATE_THRESHOLD).astype(x.dtype)
    noninfo = (w_gamma <= GATE_THRESHOLD).astype(x.dtype)
    S1 = info * rew * x
    S2 = noninfo * rew * x
    h = C // 2
    xs = jnp.concatenate([S1[:, :h] + S2[:, h:], S1[:, h:] + S2[:, :h]], axis=1)
    rich, red = xs[:, :RICH], xs[:, RICH:]
    rich_s = jnp.einsum("oc,nchw->nohw", params["w1"], rich, precision=_HIGH)
    red_s = jnp.einsum("oc,nchw->nohw", params["w2"], red, precision=_HIGH)
    gwc = jax.lax.conv_general_dilated(
        rich_s, params["w_gwc"], (1, 1), "SAME",
        dimension_numbers=("NCHW", "OIHW", "NCHW"),
        feature_group_count=GROUP_SIZE,
        precision=_HIGH) + params["b_gwc"].reshape(1, -1, 1, 1)
    Y1 = gwc + jnp.einsum("oc,nchw->nohw", params["wp1"], rich_s, precision=_HIGH)
    Y2 = jnp.concatenate(
        [jnp.einsum("oc,nchw->nohw", params["wp2"], red_s, precision=_HIGH),
         red_s], axis=1)
    out = jnp.concatenate([Y1, Y2], axis=1)
    sm = jax.nn.softmax(out.mean(axis=(2, 3), keepdims=True), axis=1)
    out = sm * out
    return out[:, :OP_CHANNEL] + out[:, OP_CHANNEL:]


if __name__ == "__main__":
    key = jax.random.PRNGKey(0)
    pkey, xkey = jax.random.split(key)
    params = init_params(pkey)
    N, C, H, W = 2, OP_CHANNEL, 16, 16
    x = jax.random.normal(xkey, (N, C, H, W), jnp.float32)

    y = bmfm_pallas(x, params)
    jax.block_until_ready(y)

    y_ref = bmfm_ref(x, params)
    err = float(jnp.max(jnp.abs(y - y_ref)))
    if err < 2e-3:
        print("KERNEL_OK")
    else:
        print(f"MISMATCH max_abs_err={err}")
</pallas_src>

<mosaic_0001>
module attributes {stable_mosaic.version = 11 : i64} {
  func.func @bmfm_kernel(%arg0: i32, %arg1: memref<1x32x256xf32, #tpu.memory_space<vmem>>, %arg2: memref<32x1xf32, #tpu.memory_space<vmem>>, %arg3: memref<32x1xf32, #tpu.memory_space<vmem>>, %arg4: memref<32x1xf32, #tpu.memory_space<vmem>>, %arg5: memref<32x1xf32, #tpu.memory_space<vmem>>, %arg6: memref<32x32xf32, #tpu.memory_space<vmem>>, %arg7: memref<16x32xf32, #tpu.memory_space<vmem>>, %arg8: memref<32x72xf32, #tpu.memory_space<vmem>>, %arg9: memref<32x8xf32, #tpu.memory_space<vmem>>, %arg10: memref<72x256xf32, #tpu.memory_space<vmem>>, %arg11: memref<256x1xf32, #tpu.memory_space<vmem>>, %arg12: memref<1x32x256xf32, #tpu.memory_space<vmem>>, %arg13: memref<72x256xf32, #tpu.memory_space<vmem>>) attributes {dimension_semantics = [#tpu.dimension_semantics<parallel>], iteration_bounds = array<i64: 2>, scalar_prefetch = 0 : i64, scratch_operands = 1 : i64, tpu.core_type = #tpu.core_type<tc>, window_params = [{transform_indices = @transform_0, window_bounds = array<i64: 1, 32, 256>}, {pipeline_mode = #tpu.pipeline_mode<synchronous>, transform_indices = @transform_1, window_bounds = array<i64: 32, 1>}, {pipeline_mode = #tpu.pipeline_mode<synchronous>, transform_indices = @transform_2, window_bounds = array<i64: 32, 1>}, {pipeline_mode = #tpu.pipeline_mode<synchronous>, transform_indices = @transform_3, window_bounds = array<i64: 32, 1>}, {pipeline_mode = #tpu.pipeline_mode<synchronous>, transform_indices = @transform_4, window_bounds = array<i64: 32, 1>}, {pipeline_mode = #tpu.pipeline_mode<synchronous>, transform_indices = @transform_5, window_bounds = array<i64: 32, 32>}, {pipeline_mode = #tpu.pipeline_mode<synchronous>, transform_indices = @transform_6, window_bounds = array<i64: 16, 32>}, {pipeline_mode = #tpu.pipeline_mode<synchronous>, transform_indices = @transform_7, window_bounds = array<i64: 32, 72>}, {pipeline_mode = #tpu.pipeline_mode<synchronous>, transform_indices = @transform_8, window_bounds = array<i64: 32, 8>}, {pipeline_mode = #tpu.pipeline_mode<synchronous>, transform_indices = @transform_9, window_bounds = array<i64: 72, 256>}, {pipeline_mode = #tpu.pipeline_mode<synchronous>, transform_indices = @transform_10, window_bounds = array<i64: 256, 1>}, {transform_indices = @transform_11, window_bounds = array<i64: 1, 32, 256>}]} {
    %c0 = arith.constant 0 : index
    %c0_0 = arith.constant 0 : index
    %0 = vector.load %arg2[%c0, %c0_0] : memref<32x1xf32, #tpu.memory_space<vmem>>, vector<32x1xf32>
    %c0_1 = arith.constant 0 : index
    %c0_2 = arith.constant 0 : index
    %1 = vector.load %arg3[%c0_1, %c0_2] : memref<32x1xf32, #tpu.memory_space<vmem>>, vector<32x1xf32>
    %c0_3 = arith.constant 0 : index
    %c0_4 = arith.constant 0 : index
    %2 = vector.load %arg4[%c0_3, %c0_4] : memref<32x1xf32, #tpu.memory_space<vmem>>, vector<32x1xf32>
    %cst = arith.constant 1.000000e+00 : f32
    %3 = vector.broadcast %cst : f32 to vector<32x1xf32>
    %4 = arith.subf %3, %2 : vector<32x1xf32>
    %c0_5 = arith.constant 0 : index
    %c0_6 = arith.constant 0 : index
    %5 = vector.load %arg5[%c0_5, %c0_6] : memref<32x1xf32, #tpu.memory_space<vmem>>, vector<32x1xf32>
    %c0_7 = arith.constant 0 : index
    %c0_8 = arith.constant 0 : index
    %6 = vector.load %arg6[%c0_7, %c0_8] : memref<32x32xf32, #tpu.memory_space<vmem>>, vector<32x32xf32>
    %c0_9 = arith.constant 0 : index
    %c0_10 = arith.constant 0 : index
    %7 = vector.load %arg7[%c0_9, %c0_10] : memref<16x32xf32, #tpu.memory_space<vmem>>, vector<16x32xf32>
    %c0_11 = arith.constant 0 : index
    %c0_12 = arith.constant 0 : index
    %8 = vector.load %arg8[%c0_11, %c0_12] : memref<32x72xf32, #tpu.memory_space<vmem>>, vector<32x72xf32>
    %c0_13 = arith.constant 0 : index
    %c0_14 = arith.constant 0 : index
    %9 = vector.load %arg9[%c0_13, %c0_14] : memref<32x8xf32, #tpu.memory_space<vmem>>, vector<32x8xf32>
    %c0_15 = arith.constant 0 : index
    %c0_16 = arith.constant 0 : index
    %10 = vector.load %arg11[%c0_15, %c0_16] : memref<256x1xf32, #tpu.memory_space<vmem>>, vector<256x1xf32>
    %c0_i32 = arith.constant 0 : i32
    %11 = arith.index_cast %c0_i32 : i32 to index
    %c0_17 = arith.constant 0 : index
    %c0_18 = arith.constant 0 : index
    %12 = vector.load %arg1[%11, %c0_17, %c0_18] : memref<1x32x256xf32, #tpu.memory_space<vmem>>, vector<1x32x256xf32>
    %13 = vector.shape_cast %12 : vector<1x32x256xf32> to vector<32x256xf32>
    %cst_19 = arith.constant dense<0.000000e+00> : vector<32x1xf32>
    %14 = tpu.matmul %13, %10, %cst_19 {dimension_numbers = #tpu.dot_dimension_numbers<[1], [0], [0], [1], [0, 0, 1, 1], [], []>, precision = #tpu.contract_precision<fp32>} : vector<32x256xf32>, vector<256x1xf32>, vector<32x1xf32> -> vector<32x1xf32>
    %cst_20 = arith.constant dense<0.000000e+00> : vector<32x1xf32>
    %15 = tpu.matmul %6, %14, %cst_20 {dimension_numbers = #tpu.dot_dimension_numbers<[1], [0], [0], [1], [0, 0, 1, 1], [], []>, precision = #tpu.contract_precision<fp32>} : vector<32x32xf32>, vector<32x1xf32>, vector<32x1xf32> -> vector<32x1xf32>
    %cst_21 = arith.constant 0.001953125 : f32
    %16 = vector.broadcast %cst_21 : f32 to vector<32x1xf32>
    %17 = arith.mulf %15, %16 : vector<32x1xf32>
    %18 = vector.broadcast %17 : vector<32x1xf32> to vector<32x256xf32>
    %19 = arith.subf %13, %18 : vector<32x256xf32>
    %20 = arith.mulf %19, %19 : vector<32x256xf32>
    %cst_22 = arith.constant dense<0.000000e+00> : vector<32x1xf32>
    %21 = tpu.matmul %20, %10, %cst_22 {dimension_numbers = #tpu.dot_dimension_numbers<[1], [0], [0], [1], [0, 0, 1, 1], [], []>, precision = #tpu.contract_precision<fp32>} : vector<32x256xf32>, vector<256x1xf32>, vector<32x1xf32> -> vector<32x1xf32>
    %cst_23 = arith.constant dense<0.000000e+00> : vector<32x1xf32>
    %22 = tpu.matmul %6, %21, %cst_23 {dimension_numbers = #tpu.dot_dimension_numbers<[1], [0], [0], [1], [0, 0, 1, 1], [], []>, precision = #tpu.contract_precision<fp32>} : vector<32x32xf32>, vector<32x1xf32>, vector<32x1xf32> -> vector<32x1xf32>
    %cst_24 = arith.constant 0.00195694715 : f32
    %23 = vector.broadcast %cst_24 : f32 to vector<32x1xf32>
    %24 = arith.mulf %22, %23 : vector<32x1xf32>
    %cst_25 = arith.constant 0.000000e+00 : f32
    %25 = vector.broadcast %cst_25 : f32 to vector<32x1xf32>
    %26 = arith.maximumf %24, %25 : vector<32x1xf32>
    %27 = math.sqrt %26 : vector<32x1xf32>
    %cst_26 = arith.constant 1.000000e-10 : f32
    %28 = vector.broadcast %cst_26 : f32 to vector<32x1xf32>
    %29 = arith.addf %27, %28 : vector<32x1xf32>
    %30 = tpu.reciprocal %29 {approx = true} : vector<32x1xf32> -> vector<32x1xf32>
    %31 = vector.broadcast %30 : vector<32x1xf32> to vector<32x256xf32>
    %32 = arith.mulf %19, %31 : vector<32x256xf32>
    %33 = vector.broadcast %0 : vector<32x1xf32> to vector<32x256xf32>
    %34 = arith.mulf %32, %33 : vector<32x256xf32>
    %35 = vector.broadcast %1 : vector<32x1xf32> to vector<32x256xf32>
    %36 = arith.addf %34, %35 : vector<32x256xf32>
    %37 = arith.negf %36 : vector<32x256xf32>
    %38 = math.exp %37 : vector<32x256xf32>
    %cst_27 = arith.constant 1.000000e+00 : f32
    %39 = vector.broadcast %cst_27 : f32 to vector<32x256xf32>
    %40 = arith.addf %39, %38 : vector<32x256xf32>
    %41 = arith.divf %39, %40 : vector<32x256xf32>
    %42 = arith.mulf %41, %13 : vector<32x256xf32>
    %43 = vector.broadcast %2 : vector<32x1xf32> to vector<32x256xf32>
    %44 = arith.mulf %43, %42 : vector<32x256xf32>
    %45 = vector.broadcast %4 : vector<32x1xf32> to vector<32x256xf32>
    %46 = arith.mulf %45, %42 : vector<32x256xf32>
    %47 = vector.extract_strided_slice %44 {offsets = [0, 0], sizes = [16, 256], strides = [1, 1]} : vector<32x256xf32> to vector<16x256xf32>
    %48 = vector.extract_strided_slice %46 {offsets = [16, 0], sizes = [16, 256], strides = [1, 1]} : vector<32x256xf32> to vector<16x256xf32>
    %49 = arith.addf %47, %48 : vector<16x256xf32>
    %50 = vector.extract_strided_slice %44 {offsets = [16, 0], sizes = [16, 256], strides = [1, 1]} : vector<32x256xf32> to vector<16x256xf32>
    %51 = vector.extract_strided_slice %46 {offsets = [0, 0], sizes = [16, 256], strides = [1, 1]} : vector<32x256xf32> to vector<16x256xf32>
    %52 = arith.addf %50, %51 : vector<16x256xf32>
    %53 = tpu.concatenate %49, %52 in 0 : vector<16x256xf32>, vector<16x256xf32> -> vector<32x256xf32>
    %cst_28 = arith.constant dense<0.000000e+00> : vector<16x256xf32>
    %54 = tpu.matmul %7, %53, %cst_28 {dimension_numbers = #tpu.dot_dimension_numbers<[1], [0], [0], [1], [0, 0, 1, 1], [], []>, precision = #tpu.contract_precision<fp32>} : vector<16x32xf32>, vector<32x256xf32>, vector<16x256xf32> -> vector<16x256xf32>
    %55 = vector.extract_strided_slice %54 {offsets = [0, 0], sizes = [8, 256], strides = [1, 1]} : vector<16x256xf32> to vector<8x256xf32>
    %56 = vector.extract_strided_slice %54 {offsets = [8, 0], sizes = [8, 256], strides = [1, 1]} : vector<16x256xf32> to vector<8x256xf32>
    %c17_i32 = arith.constant 17 : i32
    %57 = tpu.dynamic_rotate %55 by %c17_i32 dim 1 : vector<8x256xf32>, i32 -> vector<8x256xf32>
    %c0_29 = arith.constant 0 : index
    %c0_30 = arith.constant 0 : index
    %58 = vector.load %arg10[%c0_29, %c0_30] : memref<72x256xf32, #tpu.memory_space<vmem>>, vector<8x256xf32>
    %59 = arith.mulf %57, %58 : vector<8x256xf32>
    %c0_31 = arith.constant 0 : index
    %c0_32 = arith.constant 0 : index
    %60 = vector.load %arg13[%c0_31, %c0_32] : memref<72x256xf32, #tpu.memory_space<vmem>>, vector<8x256xf32>
    tpu.vector_store %arg13[%c0_31, %c0_32], %59 {strides = array<i32>} : memref<72x256xf32, #tpu.memory_space<vmem>>, vector<8x256xf32>,
    %c16_i32 = arith.constant 16 : i32
    %61 = tpu.dynamic_rotate %55 by %c16_i32 dim 1 : vector<8x256xf32>, i32 -> vector<8x256xf32>
    %c8 = arith.constant 8 : index
    %c0_33 = arith.constant 0 : index
    %62 = vector.load %arg10[%c8, %c0_33] : memref<72x256xf32, #tpu.memory_space<vmem>>, vector<8x256xf32>
    %63 = arith.mulf %61, %62 : vector<8x256xf32>
    %c8_34 = arith.constant 8 : index
    %c0_35 = arith.constant 0 : index
    %64 = vector.load %arg13[%c8_34, %c0_35] : memref<72x256xf32, #tpu.memory_space<vmem>>, vector<8x256xf32>
    tpu.vector_store %arg13[%c8_34, %c0_35], %63 {strides = array<i32>} : memref<72x256xf32, #tpu.memory_space<vmem>>, vector<8x256xf32>,
    %c15_i32 = arith.constant 15 : i32
    %65 = tpu.dynamic_rotate %55 by %c15_i32 dim 1 : vector<8x256xf32>, i32 -> vector<8x256xf32>
    %c16 = arith.constant 16 : index
    %c0_36 = arith.constant 0 : index
    %66 = vector.load %arg10[%c16, %c0_36] : memref<72x256xf32, #tpu.memory_space<vmem>>, vector<8x256xf32>
    %67 = arith.mulf %65, %66 : vector<8x256xf32>
    %c16_37 = arith.constant 16 : index
    %c0_38 = arith.constant 0 : index
    %68 = vector.load %arg13[%c16_37, %c0_38] : memref<72x256xf32, #tpu.memory_space<vmem>>, vector<8x256xf32>
    tpu.vector_store %arg13[%c16_37, %c0_38], %67 {strides = array<i32>} : memref<72x256xf32, #tpu.memory_space<vmem>>, vector<8x256xf32>,
    %c1_i32 = arith.constant 1 : i32
    %69 = tpu.dynamic_rotate %55 by %c1_i32 dim 1 : vector<8x256xf32>, i32 -> vector<8x256xf32>
    %c24 = arith.constant 24 : index
    %c0_39 = arith.constant 0 : index
    %70 = vector.load %arg10[%c24, %c0_39] : memref<72x256xf32, #tpu.memory_space<vmem>>, vector<8x256xf32>
    %71 = arith.mulf %69, %70 : vector<8x256xf32>
    %c24_40 = arith.constant 24 : index
    %c0_41 = arith.constant 0 : index
    %72 = vector.load %arg13[%c24_40, %c0_41] : memref<72x256xf32, #tpu.memory_space<vmem>>, vector<8x256xf32>
    tpu.vector_store %arg13[%c24_40, %c0_41], %71 {strides = array<i32>} : memref<72x256xf32, #tpu.memory_space<vmem>>, vector<8x256xf32>,
    %c32 = arith.constant 32 : index
    %c0_42 = arith.constant 0 : index
    %73 = vector.load %arg10[%c32, %c0_42] : memref<72x256xf32, #tpu.memory_space<vmem>>, vector<8x256xf32>
    %74 = arith.mulf %55, %73 : vector<8x256xf32>
    %c32_43 = arith.constant 32 : index
    %c0_44 = arith.constant 0 : index
    %75 = vector.load %arg13[%c32_43, %c0_44] : memref<72x256xf32, #tpu.memory_space<vmem>>, vector<8x256xf32>
    tpu.vector_store %arg13[%c32_43, %c0_44], %74 {strides = array<i32>} : memref<72x256xf32, #tpu.memory_space<vmem>>, vector<8x256xf32>,
    %c255_i32 = arith.constant 255 : i32
    %76 = tpu.dynamic_rotate %55 by %c255_i32 dim 1 : vector<8x256xf32>, i32 -> vector<8x256xf32>
    %c40 = arith.constant 40 : index
    %c0_45 = arith.constant 0 : index
    %77 = vector.load %arg10[%c40, %c0_45] : memref<72x256xf32, #tpu.memory_space<vmem>>, vector<8x256xf32>
    %78 = arith.mulf %76, %77 : vector<8x256xf32>
    %c40_46 = arith.constant 40 : index
    %c0_47 = arith.constant 0 : index
    %79 = vector.load %arg13[%c40_46, %c0_47] : memref<72x256xf32, #tpu.memory_space<vmem>>, vector<8x256xf32>
    tpu.vector_store %arg13[%c40_46, %c0_47], %78 {strides = array<i32>} : memref<72x256xf32, #tpu.memory_space<vmem>>, vector<8x256xf32>,
    %c241_i32 = arith.constant 241 : i32
    %80 = tpu.dynamic_rotate %55 by %c241_i32 dim 1 : vector<8x256xf32>, i32 -> vector<8x256xf32>
    %c48 = arith.constant 48 : index
    %c0_48 = arith.constant 0 : index
    %81 = vector.load %arg10[%c48, %c0_48] : memref<72x256xf32, #tpu.memory_space<vmem>>, vector<8x256xf32>
    %82 = arith.mulf %80, %81 : vector<8x256xf32>
    %c48_49 = arith.constant 48 : index
    %c0_50 = arith.constant 0 : index
    %83 = vector.load %arg13[%c48_49, %c0_50] : memref<72x256xf32, #tpu.memory_space<vmem>>, vector<8x256xf32>
    tpu.vector_store %arg13[%c48_49, %c0_50], %82 {strides = array<i32>} : memref<72x256xf32, #tpu.memory_space<vmem>>, vector<8x256xf32>,
    %c240_i32 = arith.constant 240 : i32
    %84 = tpu.dynamic_rotate %55 by %c240_i32 dim 1 : vector<8x256xf32>, i32 -> vector<8x256xf32>
    %c56 = arith.constant 56 : index
    %c0_51 = arith.constant 0 : index
    %85 = vector.load %arg10[%c56, %c0_51] : memref<72x256xf32, #tpu.memory_space<vmem>>, vector<8x256xf32>
    %86 = arith.mulf %84, %85 : vector<8x256xf32>
    %c56_52 = arith.constant 56 : index
    %c0_53 = arith.constant 0 : index
    %87 = vector.load %arg13[%c56_52, %c0_53] : memref<72x256xf32, #tpu.memory_space<vmem>>, vector<8x256xf32>
    tpu.vector_store %arg13[%c56_52, %c0_53], %86 {strides = array<i32>} : memref<72x256xf32, #tpu.memory_space<vmem>>, vector<8x256xf32>,
    %c239_i32 = arith.constant 239 : i32
    %88 = tpu.dynamic_rotate %55 by %c239_i32 dim 1 : vector<8x256xf32>, i32 -> vector<8x256xf32>
    %c64 = arith.constant 64 : index
    %c0_54 = arith.constant 0 : index
    %89 = vector.load %arg10[%c64, %c0_54] : memref<72x256xf32, #tpu.memory_space<vmem>>, vector<8x256xf32>
    %90 = arith.mulf %88, %89 : vector<8x256xf32>
    %c64_55 = arith.constant 64 : index
    %c0_56 = arith.constant 0 : index
    %91 = vector.load %arg13[%c64_55, %c0_56] : memref<72x256xf32, #tpu.memory_space<vmem>>, vector<8x256xf32>
    tpu.vector_store %arg13[%c64_55, %c0_56], %90 {strides = array<i32>} : memref<72x256xf32, #tpu.memory_space<vmem>>, vector<8x256xf32>,
    %c0_57 = arith.constant 0 : index
    %c0_58 = arith.constant 0 : index
    %92 = vector.load %arg13[%c0_57, %c0_58] : memref<72x256xf32, #tpu.memory_space<vmem>>, vector<72x256xf32>
    %cst_59 = arith.constant dense<0.000000e+00> : vector<32x256xf32>
    %93 = tpu.matmul %8, %92, %cst_59 {dimension_numbers = #tpu.dot_dimension_numbers<[1], [0], [0], [1], [0, 0, 1, 1], [], []>, precision = #tpu.contract_precision<fp32>} : vector<32x72xf32>, vector<72x256xf32>, vector<32x256xf32> -> vector<32x256xf32>
    %94 = vector.broadcast %5 : vector<32x1xf32> to vector<32x256xf32>
    %95 = arith.addf %93, %94 : vector<32x256xf32>
    %cst_60 = arith.constant dense<0.000000e+00> : vector<32x256xf32>
    %96 = tpu.matmul %9, %56, %cst_60 {dimension_numbers = #tpu.dot_dimension_numbers<[1], [0], [0], [1], [0, 0, 1, 1], [], []>, precision = #tpu.contract_precision<fp32>} : vector<32x8xf32>, vector<8x256xf32>, vector<32x256xf32> -> vector<32x256xf32>
    %cst_61 = arith.constant dense<0.000000e+00> : vector<32x1xf32>
    %97 = tpu.matmul %95, %10, %cst_61 {dimension_numbers = #tpu.dot_dimension_numbers<[1], [0], [0], [1], [0, 0, 1, 1], [], []>, precision = #tpu.contract_precision<fp32>} : vector<32x256xf32>, vector<256x1xf32>, vector<32x1xf32> -> vector<32x1xf32>
    %cst_62 = arith.constant 3.906250e-03 : f32
    %98 = vector.broadcast %cst_62 : f32 to vector<32x1xf32>
    %99 = arith.mulf %97, %98 : vector<32x1xf32>
    %cst_63 = arith.constant dense<0.000000e+00> : vector<32x1xf32>
    %100 = tpu.matmul %96, %10, %cst_63 {dimension_numbers = #tpu.dot_dimension_numbers<[1], [0], [0], [1], [0, 0, 1, 1], [], []>, precision = #tpu.contract_precision<fp32>} : vector<32x256xf32>, vector<256x1xf32>, vector<32x1xf32> -> vector<32x1xf32>
    %cst_64 = arith.constant 3.906250e-03 : f32
    %101 = vector.broadcast %cst_64 : f32 to vector<32x1xf32>
    %102 = arith.mulf %100, %101 : vector<32x1xf32>
    %cst_65 = arith.constant dense<0xFF800000> : vector<1xf32>
    %103 = vector.multi_reduction <maximumf>, %99, %cst_65 [0] : vector<32x1xf32> to vector<1xf32>
    %104 = vector.shape_cast %103 : vector<1xf32> to vector<1x1xf32>
    %cst_66 = arith.constant dense<0xFF800000> : vector<1xf32>
    %105 = vector.multi_reduction <maximumf>, %102, %cst_66 [0] : vector<32x1xf32> to vector<1xf32>
    %106 = vector.shape_cast %105 : vector<1xf32> to vector<1x1xf32>
    %107 = arith.maximumf %104, %106 : vector<1x1xf32>
    %108 = vector.broadcast %107 : vector<1x1xf32> to vector<32x1xf32>
    %109 = arith.subf %99, %108 : vector<32x1xf32>
    %110 = math.exp %109 : vector<32x1xf32>
    %111 = vector.broadcast %107 : vector<1x1xf32> to vector<32x1xf32>
    %112 = arith.subf %102, %111 : vector<32x1xf32>
    %113 = math.exp %112 : vector<32x1xf32>
    %cst_67 = arith.constant dense<0.000000e+00> : vector<1xf32>
    %114 = vector.multi_reduction <add>, %110, %cst_67 [0] : vector<32x1xf32> to vector<1xf32>
    %115 = vector.shape_cast %114 : vector<1xf32> to vector<1x1xf32>
    %cst_68 = arith.constant dense<0.000000e+00> : vector<1xf32>
    %116 = vector.multi_reduction <add>, %113, %cst_68 [0] : vector<32x1xf32> to vector<1xf32>
    %117 = vector.shape_cast %116 : vector<1xf32> to vector<1x1xf32>
    %118 = arith.addf %115, %117 : vector<1x1xf32>
    %119 = tpu.reciprocal %118 {approx = true} : vector<1x1xf32> -> vector<1x1xf32>
    %120 = vector.broadcast %119 : vector<1x1xf32> to vector<32x1xf32>
    %121 = arith.mulf %110, %120 : vector<32x1xf32>
    %122 = vector.broadcast %121 : vector<32x1xf32> to vector<32x256xf32>
    %123 = arith.mulf %122, %95 : vector<32x256xf32>
    %124 = vector.broadcast %119 : vector<1x1xf32> to vector<32x1xf32>
    %125 = arith.mulf %113, %124 : vector<32x1xf32>
    %126 = vector.broadcast %125 : vector<32x1xf32> to vector<32x256xf32>
    %127 = arith.mulf %126, %96 : vector<32x256xf32>
    %128 = arith.addf %123, %127 : vector<32x256xf32>
    %129 = arith.index_cast %c0_i32 : i32 to index
    %c0_69 = arith.constant 0 : index
    %c0_70 = arith.constant 0 : index
    %130 = vector.load %arg12[%129, %c0_69, %c0_70] : memref<1x32x256xf32, #tpu.memory_space<vmem>>, vector<1x32x256xf32>
    %131 = vector.shape_cast %130 : vector<1x32x256xf32> to vector<32x256xf32>
    %132 = vector.shape_cast %128 : vector<32x256xf32> to vector<1x32x256xf32>
    tpu.vector_store %arg12[%129, %c0_69, %c0_70], %132 {strides = array<i32>} : memref<1x32x256xf32, #tpu.memory_space<vmem>>, vector<1x32x256xf32>,
    %c1_i32_71 = arith.constant 1 : i32
    return
  }
  func.func @transform_0(%arg0: i32) -> (i32, i32, i32) {
    %c0_i32 = arith.constant 0 : i32
    %c0_i32_0 = arith.constant 0 : i32
    %c0_i32_1 = arith.constant 0 : i32
    return %arg0, %c0_i32, %c0_i32_0 : i32, i32, i32
  }
  func.func @transform_1(%arg0: i32) -> (i32, i32) {
    %c0_i32 = arith.constant 0 : i32
    %c0_i32_0 = arith.constant 0 : i32
    %c0_i32_1 = arith.constant 0 : i32
    return %c0_i32, %c0_i32_0 : i32, i32
  }
  func.func @transform_2(%arg0: i32) -> (i32, i32) {
    %c0_i32 = arith.constant 0 : i32
    %c0_i32_0 = arith.constant 0 : i32
    %c0_i32_1 = arith.constant 0 : i32
    return %c0_i32, %c0_i32_0 : i32, i32
  }
  func.func @transform_3(%arg0: i32) -> (i32, i32) {
    %c0_i32 = arith.constant 0 : i32
    %c0_i32_0 = arith.constant 0 : i32
    %c0_i32_1 = arith.constant 0 : i32
    return %c0_i32, %c0_i32_0 : i32, i32
  }
  func.func @transform_4(%arg0: i32) -> (i32, i32) {
    %c0_i32 = arith.constant 0 : i32
    %c0_i32_0 = arith.constant 0 : i32
    %c0_i32_1 = arith.constant 0 : i32
    return %c0_i32, %c0_i32_0 : i32, i32
  }
  func.func @transform_5(%arg0: i32) -> (i32, i32) {
    %c0_i32 = arith.constant 0 : i32
    %c0_i32_0 = arith.constant 0 : i32
    %c0_i32_1 = arith.constant 0 : i32
    return %c0_i32, %c0_i32_0 : i32, i32
  }
  func.func @transform_6(%arg0: i32) -> (i32, i32) {
    %c0_i32 = arith.constant 0 : i32
    %c0_i32_0 = arith.constant 0 : i32
    %c0_i32_1 = arith.constant 0 : i32
    return %c0_i32, %c0_i32_0 : i32, i32
  }
  func.func @transform_7(%arg0: i32) -> (i32, i32) {
    %c0_i32 = arith.constant 0 : i32
    %c0_i32_0 = arith.constant 0 : i32
    %c0_i32_1 = arith.constant 0 : i32
    return %c0_i32, %c0_i32_0 : i32, i32
  }
  func.func @transform_8(%arg0: i32) -> (i32, i32) {
    %c0_i32 = arith.constant 0 : i32
    %c0_i32_0 = arith.constant 0 : i32
    %c0_i32_1 = arith.constant 0 : i32
    return %c0_i32, %c0_i32_0 : i32, i32
  }
  func.func @transform_9(%arg0: i32) -> (i32, i32) {
    %c0_i32 = arith.constant 0 : i32
    %c0_i32_0 = arith.constant 0 : i32
    %c0_i32_1 = arith.constant 0 : i32
    return %c0_i32, %c0_i32_0 : i32, i32
  }
  func.func @transform_10(%arg0: i32) -> (i32, i32) {
    %c0_i32 = arith.constant 0 : i32
    %c0_i32_0 = arith.constant 0 : i32
    %c0_i32_1 = arith.constant 0 : i32
    return %c0_i32, %c0_i32_0 : i32, i32
  }
  func.func @transform_11(%arg0: i32) -> (i32, i32, i32) {
    %c0_i32 = arith.constant 0 : i32
    %c0_i32_0 = arith.constant 0 : i32
    %c0_i32_1 = arith.constant 0 : i32
    return %arg0, %c0_i32, %c0_i32_0 : i32, i32, i32
  }
}

</mosaic_0001>

<bundles_post_ra>
// kernel: tpu_custom_call.1
= control target key start
LH: loop header
LB: loop body
LE: loop exit
PB: predicated region body
PF: predicated region fallthrough
CT: control target
= control target key end

     0   :  { %s14095_s0 = inlined_call_operand.vmem [shape: f32[2,32,256], index: 0, kind: input, shape index: {}]   ;;  %s14096_s1 = inlined_call_operand.vmem [shape: f32[32,1], index: 1, kind: input, shape index: {}]   ;;  %s14097_s2 = inlined_call_operand.vmem [shape: f32[32,1], index: 2, kind: input, shape index: {}]   ;;  %s14098_s3 = inlined_call_operand.vmem [shape: f32[32,1], index: 3, kind: input, shape index: {}]   ;;  %s14099_s4 = inlined_call_operand.vmem [shape: f32[32,1], index: 4, kind: input, shape index: {}]   ;;  %s14100_s5 = inlined_call_operand.vmem [shape: f32[32,32], index: 5, kind: input, shape index: {}]   ;;  %s14101_s6 = inlined_call_operand.vmem [shape: f32[16,32], index: 6, kind: input, shape index: {}]   ;;  %s14102_s7 = inlined_call_operand.vmem [shape: f32[32,72], index: 7, kind: input, shape index: {}]   ;;  %s14103_s8 = inlined_call_operand.vmem [shape: f32[32,8], index: 8, kind: input, shape index: {}]   ;;  %s14104_s9 = inlined_call_operand.vmem [shape: f32[72,256], index: 9, kind: input, shape index: {}]   ;;  %s14105_s10 = inlined_call_operand.vmem [shape: f32[256,1], index: 10, kind: input, shape index: {}]   ;;  %s14106_s11 = inlined_call_operand.hbm [shape: f32[2,32,256], index: 11, kind: output, shape index: {}]  }
   0x1   :  { %14347 = sst [smem:[#allocation74_spill]] %s14095_s0 }
   0x2   :  { %16 = vsyncpa [#allocation4], 0 }
   0x3   :  { %18 = vsyncpa [#allocation4 + $0x1], 0  ;;  %s11319_s17 = smov 0   ;;  %s11321_s18 = smov 0  }
   0x4   :  { %s11323_s19 = smov 0   ;;  %s11325_s20 = smov 0  }
   0x5 LB: > { %s11340_s21 = sadd.s32 4294967295, %s11245_s20   ;;  %s8558_s22 = sadd.s32 4294967294, %s11245_s20   ;;  %s11245_s20 = sphi %s11325_s20, %s14719_s20   ;;  %s11241_s19 = sphi %s11323_s19, %s14718_s19   ;;  %s11237_s18 = sphi %s11321_s18, %s14717_s18   ;;  %s11233_s17 = sphi %s11319_s17, %s14716_s17  }
   0x6   : > { %s11344_s23 = sadd.s32 1, %s11245_s20   ;;  %s267_s24 = sadd.s32 1, %s11241_s19 }
   0x7   : > { %s264_s25 = ssub.s32 %s11245_s20, %s11344_s23  ;;  %p277_p0 = scmp.ne.s32.totalorder %s11241_s19, %s11237_s18 }
   0x8   : > { %p265_p1 = scmp.eq.s32.totalorder %s264_s25, 0  ;;  %p278_p2 = scmp.eq.s32.totalorder %s11340_s21, 1 }
   0x9   : > { %p283_p3 = scmp.ne.s32.totalorder %s11237_s18, %s11233_s17  ;;  %p284_p4 = scmp.eq.s32.totalorder %s8558_s22, 1 }
   0xa   : > { %s11355_s26 = scalar_select %p265_p1, %s11241_s19, %s267_s24  }
   0xb   : > { %p11357_p5 = por %p278_p2, %p277_p0  ;;  %p11361_p6 = por %p284_p4, %p283_p3 }
   0xc   : > { %p8561_p7 = scmp.ge.s32.totalorder %s11245_s20, 1  ;;  %p340_p8 = scmp.lt.s32.totalorder %s11245_s20, 3 }
   0xe   : > { %p341_p9 = pnand %p8561_p7, %p340_p8 }
  0x10   : > { %344 = sbr.rel (%p341_p9) target bundleno = 2943 (0xb7f), region = 64 }
  0x17   : > { %v435_v0 = vld [vmem:[%s14105_s10 + $0x80] sm:$0xff]  ;;  %v436_v1 = vld [vmem:[%s14105_s10 + $0x88] sm:$0xff]  ;;  %v437_v7 = vld [vmem:[%s14105_s10 + $0x90] sm:$0xff]  ;;  %p380_p10 = scmp.lt.s32.totalorder %s11340_s21, 1  ;;  %s14369_s0 = sld [smem:[#allocation74_spill]]  ;;  %vm1489_vm0 = vcmask 261120  }
  0x18   : > { %v419_v2 = vld [vmem:[%s14105_s10] sm:$0xff]  ;;  %v508_v3 = vand.u32 4294901760, %v435_v0  ;;  %v511_v4 = vand.u32 4294901760, %v436_v1  ;;  %v420_v5 = vld [vmem:[%s14105_s10 + $0x8] sm:$0xff]  ;;  %v438_v8 = vld [vmem:[%s14105_s10 + $0x98] sm:$0xff]  ;;  %v514_v10 = vand.u32 4294901760, %v437_v7 }
  0x19   : > { %v460_v6 = vand.u32 4294901760, %v419_v2  ;;  %v463_v9 = vand.u32 4294901760, %v420_v5  ;;  %v517_v11 = vand.u32 4294901760, %v438_v8  ;;  %v421_v12 = vld [vmem:[%s14105_s10 + $0x10] sm:$0xff]  ;;  %v422_v13 = vld [vmem:[%s14105_s10 + $0x18] sm:$0xff]  ;;  %v11394_v14 = vld [vmem:[%s14105_s10 + $0xa0] sm:$0xff] }
  0x1a   : > { %v11396_v15 = vpack.c.bf16 %v511_v4, %v508_v3  ;;  %v466_v16 = vand.u32 4294901760, %v421_v12  ;;  %v469_v17 = vand.u32 4294901760, %v422_v13  ;;  %v11401_v18 = vld [vmem:[%s14105_s10 + $0xa8] sm:$0xff]  ;;  %v520_v19 = vand.u32 4294901760, %v11394_v14  ;;  %v11407_v20 = vld [vmem:[%s14105_s10 + $0x20] sm:$0xff]  ;;  %v11424_v26 = vld [vmem:[%s14105_s10 + $0xb0] sm:$0xff] }
  0x1b   : > { %v11412_v21 = vld [vmem:[%s14105_s10 + $0x28] sm:$0xff]  ;;  %v11414_v22 = vpack.c.bf16 %v463_v9, %v460_v6  ;;  %v11416_v23 = vpack.c.bf16 %v517_v11, %v514_v10  ;;  %v523_v24 = vand.u32 4294901760, %v11401_v18  ;;  %v11419_v25 = vsub.f32 %v435_v0, %v508_v3  ;;  %v11429_v27 = vld [vmem:[%s14105_s10 + $0xb8] sm:$0xff]  ;;  %v11453_v36 = vld [vmem:[%s14105_s10 + $0x30] sm:$0xff]  ;;  %s11700_s14 = scalar_select %p380_p10, %s11340_s21, 1 }
  0x1c   : > { %14350 = vst [vmem:[#allocation6_spill] sm:$0xff] %v11396_v15  ;;  %9901 = vmatprep.subr.bf16.mxu0 %v11396_v15  ;;  %v11432_v28 = vpack.c.bf16 %v469_v17, %v466_v16  ;;  %v11434_v29 = vsub.f32 %v436_v1, %v511_v4  ;;  %v472_v30 = vand.u32 4294901760, %v11407_v20  ;;  %v475_v31 = vand.u32 4294901760, %v11412_v21  ;;  %v11475_v45 = vld [vmem:[%s14105_s10 + $0x38] sm:$0xff]  ;;  %v11505_v58 = vld [vmem:[%s14105_s10 + $0xc0] sm:$0xff]  ;;  %v11515_v63 = vld [vmem:[%s14105_s10 + $0xc8] sm:$0xff] }
  0x1d   : > { %9903 = vmatpush3.bf16.msra.mxu0 %v11414_v22  ;;  %v11443_v32 = vpack.c.bf16 %v523_v24, %v520_v19  ;;  %v14120_v33 = vand.u32 4294901760, %v11419_v25  ;;  %v11446_v34 = vsub.f32 %v419_v2, %v460_v6  ;;  %v11448_v35 = vsub.f32 %v420_v5, %v463_v9  ;;  %v11532_v4 = vld [vmem:[%s14105_s10 + $0x40] sm:$0xff]  ;;  %v11537_v5 = vld [vmem:[%s14105_s10 + $0x48] sm:$0xff]  ;;  %s8578_s30 = sshll.u32 %s11700_s14, 6  ;;  %s11249_s12 = smov 17  }
  0x1e   : > { %9905 = vmatprep.subr.bf16.mxu0 %v11416_v23  ;;  %v14119_v37 = vand.u32 4294901760, %v11434_v29  ;;  %v11461_v38 = vpack.c.bf16 %v475_v31, %v472_v30  ;;  %v526_v39 = vand.u32 4294901760, %v11424_v26  ;;  %v529_v40 = vand.u32 4294901760, %v11429_v27  ;;  %s11797_s24 = scalar_lea.vmem %s14369_s0, %s8578_s30  ;;  %s11250_s13 = smov 16  }
  0x1f   : > { %14351 = vst [vmem:[#allocation7_spill] sm:$0xff] %v11443_v32  ;;  %v732_v41 = vsub.f32 %v11419_v25, %v14120_v33  ;;  %v14116_v42 = vand.u32 4294901760, %v11446_v34  ;;  %v14115_v43 = vand.u32 4294901760, %v11448_v35  ;;  %v11470_v44 = vsub.f32 %v437_v7, %v514_v10  ;;  %s11251_s14 = smov 15   ;;  %s11253_s15 = smov 127  }
  0x20   : > { %14352 = vst [vmem:[#allocation8_spill] sm:$0xff] %v11461_v38  ;;  %v739_v46 = vsub.f32 %v11434_v29, %v14119_v37  ;;  %v11484_v47 = vpack.c.bf16 %v529_v40, %v526_v39  ;;  %v11486_v48 = vsub.f32 %v438_v8, %v517_v11  ;;  %v478_v49 = vand.u32 4294901760, %v11453_v36  ;;  %s11254_s16 = smov 113   ;;  %s11255_s22 = smov 112  }
  0x21   : > { %9907 = vmatpush3.bf16.msra.mxu0 %v11432_v28  ;;  %v733_v50 = vand.u32 4294901760, %v732_v41  ;;  %v620_v51 = vsub.f32 %v11446_v34, %v14116_v42  ;;  %v627_v52 = vsub.f32 %v11448_v35, %v14115_v43  ;;  %v14114_v53 = vand.u32 4294901760, %v11470_v44  ;;  %s11256_s25 = smov 111   ;;  %s377_s30 = sand.u32 1, %s11237_s18  }
  0x22   : > { %14353 = vst [vmem:[#allocation9_spill] sm:$0xff] %v11484_v47  ;;  %9909 = vmatprep.subr.bf16.mxu0 %v11443_v32  ;;  %v740_v54 = vand.u32 4294901760, %v739_v46  ;;  %v14113_v55 = vand.u32 4294901760, %v11486_v48  ;;  %v481_v56 = vand.u32 4294901760, %v11475_v45  ;;  %v11500_v57 = vsub.f32 %v421_v12, %v466_v16  ;;  %s11257_s29 = smov [#allocation3]  }
  0x23   : > { %v621_v59 = vand.u32 4294901760, %v620_v51  ;;  %v628_v60 = vand.u32 4294901760, %v627_v52  ;;  %v746_v61 = vsub.f32 %v11470_v44, %v14114_v53  ;;  %v11510_v62 = vsub.f32 %v422_v13, %v469_v17 }
  0x24   : > { %v11517_v0 = vpack.c.bf16 %v740_v54, %v733_v50  ;;  %v753_v1 = vsub.f32 %v11486_v48, %v14113_v55  ;;  %v11526_v2 = vpack.c.bf16 %v481_v56, %v478_v49  ;;  %v14110_v3 = vand.u32 4294901760, %v11500_v57 }
  0x25   : > { %9911 = vmatpush3.bf16.msra.mxu0 %v11461_v38  ;;  %v11540_v6 = vpack.c.bf16 %v628_v60, %v621_v59  ;;  %v747_v7 = vand.u32 4294901760, %v746_v61  ;;  %v14109_v8 = vand.u32 4294901760, %v11510_v62  ;;  %v532_v9 = vand.u32 4294901760, %v11505_v58 }
  0x26   : > { %14354 = vst [vmem:[#allocation10_spill] sm:$0xff] %v11517_v0  ;;  %14355 = vst [vmem:[#allocation11_spill] sm:$0xff] %v11526_v2  ;;  %9933 = vmatprep.subr.bf16.mxu1 %v11517_v0  ;;  %9913 = vmatprep.subr.bf16.mxu0 %v11484_v47  ;;  %v754_v10 = vand.u32 4294901760, %v753_v1  ;;  %v634_v11 = vsub.f32 %v11500_v57, %v14110_v3  ;;  %v535_v12 = vand.u32 4294901760, %v11515_v63  ;;  %v484_v41 = vand.u32 4294901760, %v11532_v4 }
  0x27   : > { %14356 = vst [vmem:[#allocation12_spill] sm:$0xff] %v11540_v6  ;;  %v11553_v13 = vsub.f32 %v11394_v14, %v520_v19  ;;  %9935 = vmatpush3.bf16.msra.mxu1 %v11540_v6  ;;  %v641_v16 = vsub.f32 %v11510_v62, %v14109_v8  ;;  %v11562_v17 = vsub.f32 %v11401_v18, %v523_v24  ;;  %v487_v46 = vand.u32 4294901760, %v11537_v5  ;;  %v11569_v14 = vld [vmem:[%s14105_s10 + $0xd0] sm:$0xff]  ;;  %v11574_v19 = vld [vmem:[%s14105_s10 + $0xd8] sm:$0xff] }
  0x28   : > { %v11576_v50 = vpack.c.bf16 %v754_v10, %v747_v7  ;;  %v635_v51 = vand.u32 4294901760, %v634_v11  ;;  %v11582_v18 = vpack.c.bf16 %v535_v12, %v532_v9  ;;  %v11596_v60 = vsub.f32 %v11407_v20, %v472_v30  ;;  %v11613_v20 = vld [vmem:[%s14105_s10 + $0x50] sm:$0xff] }
  0x29   : > { %v14107_v24 = vand.u32 4294901760, %v11553_v13  ;;  %9915 = vmatpush3.bf16.msra.mxu0 %v11526_v2  ;;  %v642_v52 = vand.u32 4294901760, %v641_v16  ;;  %v14108_v54 = vand.u32 4294901760, %v11562_v17  ;;  %v11591_v59 = vpack.c.bf16 %v487_v46, %v484_v41 }
  0x2a   : > { %14357 = vst [vmem:[#allocation13_spill] sm:$0xff] %v11576_v50  ;;  %14358 = vst [vmem:[#allocation14_spill] sm:$0xff] %v11582_v18  ;;  %9937 = vmatprep.subr.bf16.mxu1 %v11576_v50  ;;  %9917 = vmatprep.subr.bf16.mxu0 %v11582_v18  ;;  %v11606_v1 = vsub.f32 %v11412_v21, %v475_v31  ;;  %v538_v7 = vand.u32 4294901760, %v11569_v14  ;;  %v14127_v10 = vand.u32 4294901760, %v11574_v19  ;;  %v14111_v16 = vand.u32 4294901760, %v11596_v60  ;;  %v11629_v31 = vld [vmem:[%s14105_s10 + $0x58] sm:$0xff] }
  0x2b   : > { %14359 = vst [vmem:[#allocation15_spill] sm:$0xff] %v11591_v59  ;;  %v760_v61 = vsub.f32 %v11553_v13, %v14107_v24  ;;  %v11615_v30 = vpack.c.bf16 %v642_v52, %v635_v51  ;;  %v767_v11 = vsub.f32 %v11562_v17, %v14108_v54  ;;  %v11624_v21 = vsub.f32 %v11424_v26, %v526_v39 }
  0x2c   : > { %v14112_v51 = vand.u32 4294901760, %v11606_v1  ;;  %v11636_v52 = vpack.c.bf16 %v14127_v10, %v538_v7  ;;  %v11641_v54 = vsub.f32 %v11429_v27, %v529_v40  ;;  %v648_v39 = vsub.f32 %v11596_v60, %v14111_v16  ;;  %v11665_v16 = vld [vmem:[%s14105_s10 + $0xe0] sm:$0xff] }
  0x2d   : > { %14360 = vst [vmem:[#allocation16_spill] sm:$0xff] %v11615_v30  ;;  %v761_v24 = vand.u32 4294901760, %v760_v61  ;;  %9939 = vmatpush3.bf16.msra.mxu1 %v11615_v30  ;;  %v768_v26 = vand.u32 4294901760, %v767_v11  ;;  %9919 = vmatpush3.bf16.msra.mxu0 %v11591_v59  ;;  %v14118_v61 = vand.u32 4294901760, %v11624_v21  ;;  %v14122_v8 = vand.u32 4294901760, %v11613_v20 }
  0x2e   : > { %14361 = vst [vmem:[#allocation17_spill] sm:$0xff] %v11636_v52  ;;  %v655_v3 = vsub.f32 %v11606_v1, %v14112_v51  ;;  %9921 = vmatprep.subr.bf16.mxu0 %v11636_v52  ;;  %v14117_v27 = vand.u32 4294901760, %v11641_v54  ;;  %v14121_v40 = vand.u32 4294901760, %v11629_v31  ;;  %v11660_v11 = vsub.f32 %v11453_v36, %v478_v49  ;;  %v11670_v51 = vld [vmem:[%s14105_s10 + $0xe8] sm:$0xff]  ;;  %v12028_v52 = vld [vmem:[%s11797_s24 + $0x30] sm:$0xff] }
  0x2f   : > { %v11672_v55 = vpack.c.bf16 %v768_v26, %v761_v24  ;;  %v649_v53 = vand.u32 4294901760, %v648_v39  ;;  %v774_v43 = vsub.f32 %v11624_v21, %v14118_v61  ;;  %v11680_v36 = vsub.f32 %v11475_v45, %v481_v56  ;;  %v11695_v39 = vld [vmem:[%s14105_s10 + $0x60] sm:$0xff]  ;;  %v11709_v61 = vld [vmem:[%s14105_s10 + $0x68] sm:$0xff]  ;;  %14411 = vst [vmem:[#allocation50_spill] sm:$0xff] %v12028_v52 }
  0x30   : > { %v656_v49 = vand.u32 4294901760, %v655_v3  ;;  %v781_v42 = vsub.f32 %v11641_v54, %v14117_v27  ;;  %v11689_v24 = vpack.c.bf16 %v14121_v40, %v14122_v8  ;;  %v14124_v26 = vand.u32 4294901760, %v11660_v11 }
  0x31   : > { %14362 = vst [vmem:[#allocation18_spill] sm:$0xff] %v11672_v55  ;;  %9941 = vmatprep.subr.bf16.mxu1 %v11672_v55  ;;  %v775_v45 = vand.u32 4294901760, %v774_v43  ;;  %v14123_v56 = vand.u32 4294901760, %v11680_v36  ;;  %v14126_v3 = vand.u32 4294901760, %v11665_v16  ;;  %v14125_v27 = vand.u32 4294901760, %v11670_v51 }
  0x32   : > { %14363 = vst [vmem:[#allocation19_spill] sm:$0xff] %v11689_v24  ;;  %v11711_v37 = vpack.c.bf16 %v656_v49, %v649_v53  ;;  %v782_v33 = vand.u32 4294901760, %v781_v42  ;;  %9923 = vmatpush3.bf16.msra.mxu0 %v11689_v24  ;;  %v662_v43 = vsub.f32 %v11660_v11, %v14124_v26  ;;  %v11720_v40 = vsub.f32 %v11505_v58, %v532_v9  ;;  %v11740_v58 = vld [vmem:[%s14105_s10 + $0xf0] sm:$0xff]  ;;  %v11745_v9 = vld [vmem:[%s14105_s10 + $0xf8] sm:$0xff] }
  0x33   : > { %v669_v8 = vsub.f32 %v11680_v36, %v14123_v56  ;;  %v11729_v42 = vpack.c.bf16 %v14125_v27, %v14126_v3  ;;  %v11734_v53 = vsub.f32 %v11515_v63, %v535_v12  ;;  %v14130_v49 = vand.u32 4294901760, %v11695_v39 }
  0x34   : > { %14364 = vst [vmem:[#allocation20_spill] sm:$0xff] %v11711_v37  ;;  %9943 = vmatpush3.bf16.msra.mxu1 %v11711_v37  ;;  %v11748_v56 = vpack.c.bf16 %v782_v33, %v775_v45  ;;  %v663_v26 = vand.u32 4294901760, %v662_v43  ;;  %v14128_v63 = vand.u32 4294901760, %v11720_v40  ;;  %v14129_v12 = vand.u32 4294901760, %v11709_v61 }
  0x35   : > { %14365 = vst [vmem:[#allocation21_spill] sm:$0xff] %v11729_v42  ;;  %v670_v27 = vand.u32 4294901760, %v669_v8  ;;  %9925 = vmatprep.subr.bf16.mxu0 %v11729_v42  ;;  %v14131_v3 = vand.u32 4294901760, %v11734_v53  ;;  %v11758_v10 = vsub.f32 %v11532_v4, %v484_v41  ;;  %v11763_v33 = vsub.f32 %v11537_v5, %v487_v46  ;;  %v11780_v5 = vld [vmem:[%s14105_s10 + $0x70] sm:$0xff] }
  0x36   : > { %14366 = vst [vmem:[#allocation22_spill] sm:$0xff] %v11748_v56  ;;  %9945 = vmatprep.subr.bf16.mxu1 %v11748_v56  ;;  %v788_v8 = vsub.f32 %v11720_v40, %v14128_v63  ;;  %v11773_v45 = vpack.c.bf16 %v14129_v12, %v14130_v49  ;;  %v14137_v4 = vand.u32 4294901760, %v11740_v58  ;;  %v14136_v41 = vand.u32 4294901760, %v11745_v9  ;;  %v11792_v49 = vld [vmem:[%s14105_s10 + $0x78] sm:$0xff] }
  0x37   : > { %v11782_v46 = vpack.c.bf16 %v670_v27, %v663_v26  ;;  %v795_v43 = vsub.f32 %v11734_v53, %v14131_v3  ;;  %v11809_v3 = vsub.f32 %v11569_v14, %v538_v7  ;;  %v14371_v12 = vand.u32 4294901760, %v11574_v19 }
  0x38   : > { %14367 = vst [vmem:[#allocation23_spill] sm:$0xff] %v11773_v45  ;;  %v789_v27 = vand.u32 4294901760, %v788_v8  ;;  %9927 = vmatpush3.bf16.msra.mxu0 %v11773_v45  ;;  %v11804_v26 = vpack.c.bf16 %v14136_v41, %v14137_v4  ;;  %v14372_v56 = vand.u32 4294901760, %v11758_v10  ;;  %v14373_v41 = vand.u32 4294901760, %v11763_v33 }
  0x39   : > { %14368 = vst [vmem:[#allocation24_spill] sm:$0xff] %v11782_v46  ;;  %v11814_v63 = vsub.f32 %v11574_v19, %v14371_v12  ;;  %9947 = vmatpush3.bf16.msra.mxu1 %v11782_v46  ;;  %v796_v8 = vand.u32 4294901760, %v795_v43  ;;  %v14150_v14 = vand.u32 4294901760, %v11809_v3  ;;  %v505_v7 = vand.u32 4294901760, %v11792_v49 }
  0x3a   : > { %14370 = vst [vmem:[#allocation25_spill] sm:$0xff] %v11804_v26  ;;  %v676_v37 = vsub.f32 %v11758_v10, %v14372_v56  ;;  %v683_v4 = vsub.f32 %v11763_v33, %v14373_v41  ;;  %9929 = vmatprep.subr.bf16.mxu0 %v11804_v26  ;;  %v14374_v12 = vand.u32 4294901760, %v11613_v20  ;;  %v452_v56 = vld [vmem:[%s11797_s24 + $0x8] sm:$0xff]  ;;  %v14376_v55 = vand.u32 4294901760, %v11629_v31 }
  0x3b   : > { %v11834_v46 = vpack.c.bf16 %v796_v8, %v789_v27  ;;  %v802_v19 = vsub.f32 %v11809_v3, %v14150_v14  ;;  %v14377_v6 = vand.u32 4294901760, %v11814_v63  ;;  %v14382_v27 = vand.u32 4294901760, %v11665_v16 }
  0x3c   : > { %v11831_v43 = vsub.f32 %v11613_v20, %v14374_v12  ;;  %v677_v41 = vand.u32 4294901760, %v676_v37  ;;  %v684_v30 = vand.u32 4294901760, %v683_v4  ;;  %v11839_v50 = vsub.f32 %v11629_v31, %v14376_v55 }
  0x3d   : > { %14375 = vst [vmem:[#allocation26_spill] sm:$0xff] %v11834_v46  ;;  %v809_v0 = vsub.f32 %v11814_v63, %v14377_v6  ;;  %v14378_v20 = vand.u32 4294901760, %v11780_v5  ;;  %9949 = vmatprep.subr.bf16.mxu1 %v11834_v46  ;;  %v11856_v31 = vand.u32 4294901760, %v452_v56  ;;  %v11861_v8 = vsub.f32 %v11665_v16, %v14382_v27  ;;  %v11864_v6 = vld [vmem:[%s11797_s24] sm:$0xff] }
  0x3e   : > { %v14153_v37 = vand.u32 4294901760, %v11831_v43  ;;  %v11853_v4 = vpack.c.bf16 %v684_v30, %v677_v41  ;;  %14383 = vst [vmem:[#allocation30_spill] sm:$0xff] %v11864_v6  ;;  %v803_v14 = vand.u32 4294901760, %v802_v19  ;;  %v14384_v41 = vand.u32 4294901760, %v11670_v51 }
  0x3f   : > { %v11849_v12 = vpack.c.bf16 %v505_v7, %v14378_v20  ;;  %14381 = vst [vmem:[#allocation29_spill] sm:$0xff] %v11856_v31  ;;  %v810_v20 = vand.u32 4294901760, %v809_v0  ;;  %v14385_v16 = vand.u32 4294901760, %v11839_v50  ;;  %v11880_v19 = vsub.f32 %v452_v56, %v11856_v31  ;;  %841 = vmatprep.mubr.f32.mxu1 %v11856_v31 }
  0x40   : > { %14380 = vst [vmem:[#allocation28_spill] sm:$0xff] %v11853_v4  ;;  %v690_v30 = vsub.f32 %v11831_v43, %v14153_v37  ;;  %v11873_v55 = vsub.f32 %v11670_v51, %v14384_v41  ;;  %9951 = vmatpush3.bf16.msra.mxu1 %v11853_v4  ;;  %v14160_v0 = vand.u32 4294901760, %v11861_v8  ;;  %v11885_v46 = vpack.c.bf16 %v11434_v29, %v11419_v25 }
  0x41   : > { %14379 = vst [vmem:[#allocation27_spill] sm:$0xff] %v11849_v12  ;;  %9931 = vmatpush3.bf16.msra.mxu0 %v11849_v12  ;;  %v697_v27 = vsub.f32 %v11839_v50, %v14385_v16  ;;  %v11888_v37 = vpack.c.bf16 %v810_v20, %v803_v14  ;;  %v11892_v4 = vand.u32 4294901760, %v11864_v6  ;;  %v14388_v26 = vand.u32 4294901760, %v11695_v39 }
  0x42   : > { %14386 = vst [vmem:[#allocation31_spill] sm:$0xff] %v11885_v46  ;;  %v691_v51 = vand.u32 4294901760, %v690_v30  ;;  %v14167_v41 = vand.u32 4294901760, %v11873_v55  ;;  %v816_v12 = vsub.f32 %v11861_v8, %v14160_v0  ;;  %9965 = vmatprep.subr.bf16.mxu0 %v11885_v46  ;;  %v14393_v45 = vand.u32 4294901760, %v11740_v58 }
  0x43   : > { %14387 = vst [vmem:[#allocation32_spill] sm:$0xff] %v11888_v37  ;;  %v698_v16 = vand.u32 4294901760, %v697_v27  ;;  %v11902_v14 = vsub.f32 %v11695_v39, %v14388_v26  ;;  %9953 = vmatprep.subr.bf16.mxu1 %v11888_v37  ;;  %v11910_v30 = vsub.f32 %v11864_v6, %v11892_v4  ;;  %v14390_v27 = vand.u32 4294901760, %v11709_v61 }
  0x44   : > { %v823_v20 = vsub.f32 %v11873_v55, %v14167_v41  ;;  %v14392_v39 = vand.u32 4294901760, %v11880_v19  ;;  %v817_v37 = vand.u32 4294901760, %v816_v12  ;;  %v11928_v42 = vsub.f32 %v11740_v58, %v14393_v45 }
  0x45   : > { %14389 = vst [vmem:[#allocation33_spill] sm:$0xff] %v11910_v30  ;;  %v11915_v0 = vsub.f32 %v11709_v61, %v14390_v27  ;;  %v11917_v56 = vpack.c.bf16 %v698_v16, %v691_v51  ;;  %v14173_v46 = vand.u32 4294901760, %v11902_v14  ;;  %v14174_v41 = vand.u32 4294901760, %v11910_v30 }
  0x46   : > { %v558_v26 = vsub.f32 %v11880_v19, %v14392_v39  ;;  %v824_v31 = vand.u32 4294901760, %v823_v20  ;;  %v11936_v12 = vpack.c.bf16 %v11448_v35, %v11446_v34  ;;  %v14395_v16 = vand.u32 4294901760, %v11745_v9 }
  0x47   : > { %14391 = vst [vmem:[#allocation34_spill] sm:$0xff] %v11917_v56  ;;  %v14176_v6 = vand.u32 4294901760, %v11915_v0  ;;  %9955 = vmatpush3.bf16.msra.mxu1 %v11917_v56  ;;  %v704_v51 = vsub.f32 %v11902_v14, %v14173_v46  ;;  %v564_v58 = vsub.f32 %v11910_v30, %v14174_v41  ;;  %v14175_v39 = vand.u32 4294901760, %v11928_v42  ;;  %v12014_v30 = vld [vmem:[%s11797_s24 + $0x38] sm:$0xff] }
  0x48   : > { %v559_v61 = vand.u32 4294901760, %v558_v26  ;;  %14394 = vst [vmem:[#allocation35_spill] sm:$0xff] %v11936_v12  ;;  %v11941_v20 = vsub.f32 %v11745_v9, %v14395_v16  ;;  %v11943_v27 = vpack.c.bf16 %v824_v31, %v817_v37  ;;  %v14397_v9 = vand.u32 4294901760, %v11780_v5  ;;  %14409 = vst [vmem:[#allocation48_spill] sm:$0xff] %v12014_v30 }
  0x49   : > { %v711_v45 = vsub.f32 %v11915_v0, %v14176_v6  ;;  %v705_v26 = vand.u32 4294901760, %v704_v51  ;;  %v11959_v31 = vsub.f32 %v11792_v49, %v505_v7  ;;  %v565_v16 = vand.u32 4294901760, %v564_v58  ;;  %v11978_v58 = vld [vmem:[%s11797_s24 + $0x10] sm:$0xff] }
  0x4a   : > { %14396 = vst [vmem:[#allocation36_spill] sm:$0xff] %v11943_v27  ;;  %560 = vmatprep.mubr.f32.mxu0 %v559_v61  ;;  %v14177_v46 = vand.u32 4294901760, %v11941_v20  ;;  %v11956_v37 = vsub.f32 %v11780_v5, %v14397_v9  ;;  %9957 = vmatprep.subr.bf16.mxu1 %v11943_v27  ;;  %v830_v61 = vsub.f32 %v11928_v42, %v14175_v39  ;;  %v11975_v9 = vld [vmem:[%s11797_s24 + $0x18] sm:$0xff]  ;;  %14402 = vst [vmem:[#allocation41_spill] sm:$0xff] %v11978_v58  ;;  %vm5629_vm9 = vcmask 64512  }
  0x4b   : > { %14399 = vst [vmem:[#allocation38_spill] sm:$0xff] %v11959_v31  ;;  %v712_v41 = vand.u32 4294901760, %v711_v45  ;;  %v11967_v51 = vpack.c.bf16 %v11486_v48, %v11470_v44  ;;  %v14182_v7 = vand.u32 4294901760, %v11959_v31  ;;  %14401 = vst [vmem:[#allocation40_spill] sm:$0xff] %v11975_v9  ;;  %566 = vmatmul.mubr.f32.vlgmr.msra.gmra.mrb[0].mxu0 %v565_v16  ;;  %v11991_v56 = vpack.c.bf16 %v11510_v62, %v11500_v57 }
  0x4c   : > { %14398 = vst [vmem:[#allocation37_spill] sm:$0xff] %v11956_v37  ;;  %v837_v5 = vsub.f32 %v11941_v20, %v14177_v46  ;;  %v14183_v49 = vand.u32 4294901760, %v11956_v37  ;;  %v831_v39 = vand.u32 4294901760, %v830_v61  ;;  %9967 = vmatpush3.bf16.msra.mxu0 %v11936_v12  ;;  %v12003_v16 = vand.u32 4294901760, %v11975_v9 }
  0x4d   : > { %14400 = vst [vmem:[#allocation39_spill] sm:$0xff] %v11967_v51  ;;  %v11980_v45 = vpack.c.bf16 %v712_v41, %v705_v26  ;;  %v725_v27 = vsub.f32 %v11959_v31, %v14182_v7  ;;  %14404 = vst [vmem:[#allocation43_spill] sm:$0xff] %v11991_v56  ;;  %v11994_v41 = vld [vmem:[%s11797_s24 + $0x28] sm:$0xff]  ;;  %9969 = vmatprep.subr.bf16.mxu0 %v11967_v51  ;;  %v12000_v26 = vpack.c.bf16 %v11562_v17, %v11553_v13  ;;  %vm4796_vm11 = vcmask 588800  }
  0x4e   : > { %v838_v6 = vand.u32 4294901760, %v837_v5  ;;  %v718_v46 = vsub.f32 %v11956_v37, %v14183_v49  ;;  %14405 = vst [vmem:[#allocation44_spill] sm:$0xff] %v11994_v41  ;;  %v12006_v61 = vand.u32 4294901760, %v11978_v58  ;;  %v12009_v5 = vld [vmem:[%s11797_s24 + $0x20] sm:$0xff]  ;;  %v12025_v24 = vand.u32 4294901760, %v11994_v41 }
  0x4f   : > { %14403 = vst [vmem:[#allocation42_spill] sm:$0xff] %v11980_v45  ;;  %9959 = vmatpush3.bf16.msra.mxu1 %v11980_v45  ;;  %14406 = vst [vmem:[#allocation45_spill] sm:$0xff] %v12000_v26  ;;  %v726_v12 = vand.u32 4294901760, %v725_v27  ;;  %v12018_v45 = vsub.f32 %v11975_v9, %v12003_v16  ;;  %v12040_v27 = vpack.c.bf16 %v11641_v54, %v11624_v21  ;;  %v12069_v9 = vand.u32 4294901760, %v12028_v52 }
  0x50   : > { %14407 = vst [vmem:[#allocation46_spill] sm:$0xff] %v12009_v5  ;;  %v12011_v7 = vpack.c.bf16 %v838_v6, %v831_v39  ;;  %v719_v49 = vand.u32 4294901760, %v718_v46  ;;  %v12022_v51 = vsub.f32 %v11978_v58, %v12006_v61  ;;  %9971 = vmatpush3.bf16.msra.mxu0 %v11991_v56  ;;  %v12036_v46 = vpack.c.bf16 %v11606_v1, %v11596_v60 }
  0x51   : > { %14410 = vst [vmem:[#allocation49_spill] sm:$0xff] %v12018_v45  ;;  %14414 = vst [vmem:[#allocation53_spill] sm:$0xff] %v12040_v27  ;;  %v12043_v39 = vand.u32 4294901760, %v12009_v5  ;;  %9973 = vmatprep.subr.bf16.mxu0 %v12000_v26  ;;  %v12058_v58 = vpack.c.bf16 %v11680_v36, %v11660_v11  ;;  %v12062_v26 = vpack.c.bf16 %v11734_v53, %v11720_v40  ;;  %v14423_v31 = vand.u32 4294901760, %v11448_v35 }
  0x52   : > { %14408 = vst [vmem:[#allocation47_spill] sm:$0xff] %v12011_v7  ;;  %9961 = vmatprep.subr.bf16.mxu1 %v12011_v7  ;;  %v12031_v6 = vpack.c.bf16 %v726_v12, %v719_v49  ;;  %14413 = vst [vmem:[#allocation52_spill] sm:$0xff] %v12036_v46  ;;  %v12050_v49 = vsub.f32 %v11994_v41, %v12025_v24  ;;  %v12053_v7 = vand.u32 4294901760, %v12014_v30  ;;  %v14417_v41 = vand.u32 4294901760, %v12018_v45 }
  0x53   : > { %14415 = vst [vmem:[#allocation54_spill] sm:$0xff] %v12058_v58  ;;  %14416 = vst [vmem:[#allocation55_spill] sm:$0xff] %v12062_v26  ;;  %v12066_v12 = vsub.f32 %v12009_v5, %v12043_v39  ;;  %v14418_v56 = vand.u32 4294901760, %v12022_v51 }
  0x54   : > { %14412 = vst [vmem:[#allocation51_spill] sm:$0xff] %v12031_v6  ;;  %9963 = vmatpush3.bf16.msra.mxu1 %v12031_v6  ;;  %v573_v6 = vsub.f32 %v12018_v45, %v14417_v41  ;;  %v12081_v37 = vsub.f32 %v12014_v30, %v12053_v7  ;;  %9975 = vmatpush3.bf16.msra.mxu0 %v12036_v46  ;;  %v14419_v41 = vand.u32 4294901760, %v11419_v25  ;;  %v14420_v45 = vand.u32 4294901760, %v11434_v29 }
  0x55   : > { %9997 = vmatprep.subr.bf16.mxu1 %v11396_v15  ;;  %v579_v59 = vsub.f32 %v12022_v51, %v14418_v56  ;;  %v12087_v15 = vsub.f32 %v12028_v52, %v12069_v9  ;;  %v14422_v56 = vand.u32 4294901760, %v11446_v34  ;;  %9977 = vmatprep.subr.bf16.mxu0 %v12040_v27  ;;  %v14425_v52 = vand.u32 4294901760, %v12050_v49 }
  0x56   : > { %v12093_v18 = vpack.c.bf16 %v14420_v45, %v14419_v41  ;;  %v574_v5 = vand.u32 4294901760, %v573_v6  ;;  %v14224_v29 = vand.u32 4294901760, %v12081_v37  ;;  %v14426_v34 = vand.u32 4294901760, %v12066_v12 }
  0x57   : > { %v12099_v30 = vpack.c.bf16 %v14423_v31, %v14422_v56  ;;  %843 = vmatmul.mubr.f32.vlgmr.msra.gmra.mrb[0].mxu1 %v11892_v4  ;;  %v580_v46 = vand.u32 4294901760, %v579_v59  ;;  %v588_v25 = vsub.f32 %v12050_v49, %v14425_v52  ;;  %v14427_v45 = vand.u32 4294901760, %v11470_v44 }
  0x58   : > { %14421 = vst [vmem:[#allocation56_spill] sm:$0xff] %v12093_v18  ;;  %9999 = vmatpush3.bf16.msra.mxu1 %v11414_v22  ;;  %v594_v35 = vsub.f32 %v12066_v12, %v14426_v34  ;;  %848 = vmatprep.mubr.f32.mxu1 %v12003_v16  ;;  %v14428_v59 = vand.u32 4294901760, %v11486_v48  ;;  %v14430_v52 = vand.u32 4294901760, %v11500_v57  ;;  %v14431_v41 = vand.u32 4294901760, %v11510_v62 }
  0x59   : > { %14424 = vst [vmem:[#allocation57_spill] sm:$0xff] %v12099_v30  ;;  %10001 = vmatprep.subr.bf16.mxu1 %v11416_v23  ;;  %575 = vmatprep.mubr.f32.mxu0 %v574_v5  ;;  %v589_v34 = vand.u32 4294901760, %v588_v25  ;;  %v603_v31 = vsub.f32 %v12081_v37, %v14224_v29  ;;  %v14433_v44 = vand.u32 4294901760, %v11553_v13  ;;  %v14434_v48 = vand.u32 4294901760, %v11562_v17 }
  0x5a   : > { %v12117_v6 = vpack.c.bf16 %v14428_v59, %v14427_v45  ;;  %v12123_v56 = vpack.c.bf16 %v14431_v41, %v14430_v52  ;;  %v14436_v57 = vand.u32 4294901760, %v11596_v60  ;;  %v14437_v62 = vand.u32 4294901760, %v11606_v1  ;;  %9979 = vmatpush3.bf16.msra.mxu0 %v12058_v58 }
  0x5b   : > { %v12133_v45 = vpack.c.bf16 %v14434_v48, %v14433_v44  ;;  %v12144_v5 = vpack.c.bf16 %v11763_v33, %v11758_v10  ;;  %v12148_v25 = vpack.c.bf16 %v11814_v63, %v11809_v3  ;;  %v14441_v13 = vand.u32 4294901760, %v11624_v21  ;;  %9981 = vmatprep.subr.bf16.mxu0 %v12062_v26  ;;  %581 = vmatmul.mubr.f32.gmra.mrb[2].mxu0 %v580_v46 }
  0x5c   : > { %14429 = vst [vmem:[#allocation58_spill] sm:$0xff] %v12117_v6  ;;  %14432 = vst [vmem:[#allocation59_spill] sm:$0xff] %v12123_v56  ;;  %v12139_v59 = vpack.c.bf16 %v14437_v62, %v14436_v57  ;;  %v14442_v17 = vand.u32 4294901760, %v11641_v54  ;;  %v14444_v60 = vand.u32 4294901760, %v11660_v11  ;;  %v14445_v1 = vand.u32 4294901760, %v11680_v36  ;;  %10003 = vmatpush3.bf16.msra.mxu1 %v11432_v28  ;;  %590 = vmatprep.mubr.f32.mxu0 %v589_v34  ;;  %v14459_v34 = vld [vmem:[#allocation37_spill] sm:$0xff] }
  0x5d   : > { %14435 = vst [vmem:[#allocation60_spill] sm:$0xff] %v12133_v45  ;;  %14439 = vst [vmem:[#allocation62_spill] sm:$0xff] %v12144_v5  ;;  %v595_v44 = vand.u32 4294901760, %v594_v35  ;;  %v14447_v48 = vand.u32 4294901760, %v12087_v15  ;;  %v14448_v21 = vand.u32 4294901760, %v11720_v40  ;;  %v14449_v54 = vand.u32 4294901760, %v11734_v53  ;;  %10005 = vmatprep.subr.bf16.mxu1 %v11443_v32  ;;  %850 = vmatmul.mubr.f32.gmra.mrb[2].mxu1 %v12006_v61 }
  0x5e   : > { %14438 = vst [vmem:[#allocation61_spill] sm:$0xff] %v12139_v59  ;;  %14440 = vst [vmem:[#allocation63_spill] sm:$0xff] %v12148_v25  ;;  %v12154_v52 = vpack.c.bf16 %v14442_v17, %v14441_v13  ;;  %v12160_v41 = vpack.c.bf16 %v14445_v1, %v14444_v60  ;;  %v14451_v11 = vand.u32 4294901760, %v11758_v10  ;;  %v14452_v36 = vand.u32 4294901760, %v11763_v33  ;;  %9983 = vmatpush3.bf16.msra.mxu0 %v12144_v5  ;;  %v14460_v17 = vld [vmem:[#allocation38_spill] sm:$0xff] }
  0x5f   : > { %v609_v57 = vsub.f32 %v12087_v15, %v14447_v48  ;;  %v12170_v62 = vpack.c.bf16 %v14449_v54, %v14448_v21  ;;  %v604_v46 = vand.u32 4294901760, %v603_v31  ;;  %v12184_v40 = vpack.c.bf16 %v11839_v50, %v11831_v43  ;;  %855 = vmatprep.mubr.f32.mxu1 %v12025_v24  ;;  %9985 = vmatprep.subr.bf16.mxu0 %v12148_v25  ;;  %v14458_v31 = vld [vmem:[#allocation14_spill] sm:$0xff]  ;;  %v14464_v48 = vld [vmem:[#allocation17_spill] sm:$0xff] }
  0x60   : > { %14443 = vst [vmem:[#allocation64_spill] sm:$0xff] %v12154_v52  ;;  %14446 = vst [vmem:[#allocation65_spill] sm:$0xff] %v12160_v41  ;;  %v12176_v13 = vpack.c.bf16 %v14452_v36, %v14451_v11  ;;  %596 = vmatmul.mubr.f32.gmra.mrb[4].mxu0 %v595_v44  ;;  %v12190_v10 = vpack.c.bf16 %v11873_v55, %v11861_v8  ;;  %10007 = vmatpush3.bf16.msra.mxu1 %v11461_v38  ;;  %v14462_v1 = vand.u32 4294901760, %v11880_v19  ;;  %v14463_v44 = vld [vmem:[#allocation15_spill] sm:$0xff]  ;;  %v14466_v21 = vld [vmem:[#allocation33_spill] sm:$0xff] }
  0x61   : > { %14450 = vst [vmem:[#allocation66_spill] sm:$0xff] %v12170_v62  ;;  %14454 = vst [vmem:[#allocation68_spill] sm:$0xff] %v12184_v40  ;;  %v610_v53 = vand.u32 4294901760, %v609_v57  ;;  %605 = vmatprep.mubr.f32.mxu0 %v604_v46  ;;  %10009 = vmatprep.subr.bf16.mxu1 %v11484_v47  ;;  %v12198_v33 = vpack.c.bf16 %v11915_v0, %v11902_v14  ;;  %v12204_v35 = vpack.c.bf16 %v11941_v20, %v11928_v42  ;;  %v14465_v57 = vld [vmem:[#allocation19_spill] sm:$0xff]  ;;  %v14467_v54 = vld [vmem:[#allocation21_spill] sm:$0xff] }
  0x62   : > { %14453 = vst [vmem:[#allocation67_spill] sm:$0xff] %v12176_v13  ;;  %14455 = vst [vmem:[#allocation69_spill] sm:$0xff] %v12190_v10  ;;  %857 = vmatmul.mubr.f32.gmra.mrb[4].mxu1 %v12043_v39  ;;  %9987 = vmatpush3.bf16.msra.mxu0 %v12184_v40  ;;  %v12213_v60 = vpack.c.bf16 %v14460_v17, %v14459_v34  ;;  %v14469_v11 = vld [vmem:[#allocation23_spill] sm:$0xff]  ;;  %v14470_v36 = vld [vmem:[#allocation25_spill] sm:$0xff] }
  0x63   : > { %14456 = vst [vmem:[#allocation70_spill] sm:$0xff] %v12198_v33  ;;  %862 = vmatprep.mubr.f32.mxu1 %v12053_v7  ;;  %9989 = vmatprep.subr.bf16.mxu0 %v12190_v10  ;;  %14457 = vst [vmem:[#allocation71_spill] sm:$0xff] %v12204_v35  ;;  %v14471_v46 = vld [vmem:[#allocation27_spill] sm:$0xff] }
  0x64   : > { %611 = vmatmul.mubr.f32.gmra.mrb[6].mxu0 %v610_v53  ;;  %10011 = vmatpush3.bf16.msra.mxu1 %v11526_v2  ;;  %14461 = vst [vmem:[#allocation37_spill] sm:$0xff] %v12213_v60  ;;  %v14472_v53 = vld [vmem:[#allocation6_spill] sm:$0xff] }
  0x65   : > { %999 = vmatprep.mubr.f32.mxu0 %v11880_v19  ;;  %10013 = vmatprep.subr.bf16.mxu1 %v14458_v31  ;;  %v14468_v19 = vld [vmem:[#allocation49_spill] sm:$0xff] }
  0x66   : > { %864 = vmatmul.mubr.f32.gmra.mrb[6].mxu1 %v12069_v9  ;;  %9991 = vmatpush3.bf16.msra.mxu0 %v12198_v33  ;;  %v14474_v29 = vand.u32 4294901760, %v14468_v19 }
  0x67   : > { %1133 = vmatprep.mubr.f32.mxu1 %v14462_v1  ;;  %9993 = vmatprep.subr.bf16.mxu0 %v12204_v35  ;;  %v14473_v1 = vand.u32 4294901760, %v14466_v21 }
  0x68   : > { %10015 = vmatpush3.bf16.msra.mxu1 %v14463_v44 }
  0x69   : > { %10017 = vmatprep.subr.bf16.mxu1 %v14464_v48 }
  0x6a   : > { %9995 = vmatpush3.bf16.msra.mxu0 %v12213_v60 }
  0x6b   : > { %10029 = vmatprep.subr.bf16.mxu0 %v12093_v18 }
  0x6c   : > { %10019 = vmatpush3.bf16.msra.mxu1 %v14465_v57 }
  0x6d   : > { %1002 = vmatmul.mubr.f32.vlgmr.msra.gmra.mrb[8].mxu0 %v14466_v21  ;;  %10021 = vmatprep.subr.bf16.mxu1 %v14467_v54  ;;  %v14477_v21 = vand.u32 4294901760, %v11809_v3  ;;  %v14484_v3 = vand.u32 4294901760, %v12066_v12 }
  0x6e   : > { %10031 = vmatpush3.bf16.msra.mxu0 %v12099_v30  ;;  %1008 = vmatprep.mubr.f32.mxu0 %v14468_v19 }
  0x6f   : > { %10033 = vmatprep.subr.bf16.mxu0 %v12117_v6 }
  0x70   : > { %10023 = vmatpush3.bf16.msra.mxu1 %v14469_v11 }
  0x71   : > { %1011 = vmatmul.mubr.f32.gmra.mrb[10].mxu0 %v12022_v51  ;;  %10025 = vmatprep.subr.bf16.mxu1 %v14470_v36 }
  0x72   : > { %10035 = vmatpush3.bf16.msra.mxu0 %v12123_v56  ;;  %1017 = vmatprep.mubr.f32.mxu0 %v12050_v49 }
  0x73   : > { %10037 = vmatprep.subr.bf16.mxu0 %v12133_v45  ;;  %v14475_v45 = vld [vmem:[#allocation29_spill] sm:$0xff] }
  0x74   : > { %10027 = vmatpush3.bf16.msra.mxu1 %v14471_v46 }
  0x75   : > { %1020 = vmatmul.mubr.f32.gmra.mrb[12].mxu0 %v12066_v12  ;;  %10061 = vmatprep.subr.bf16.mxu1 %v14472_v53 }
  0x76   : > { %10039 = vmatpush3.bf16.msra.mxu0 %v12139_v59  ;;  %1026 = vmatprep.mubr.f32.mxu0 %v12081_v37  ;;  %v14476_v59 = vand.u32 4294901760, %v12022_v51  ;;  %v14481_v51 = vand.u32 4294901760, %v11831_v43  ;;  %v14490_v43 = vand.u32 4294901760, %v11915_v0  ;;  %v14496_v0 = vand.u32 4294901760, %v14459_v34 }
  0x77   : > { %1137 = vmatmul.mubr.f32.vlgmr.msra.gmra.mrb[8].mxu1 %v14473_v1  ;;  %10041 = vmatprep.subr.bf16.mxu0 %v12154_v52  ;;  %v14478_v1 = vand.u32 4294901760, %v11814_v63  ;;  %v14485_v63 = vand.u32 4294901760, %v11861_v8  ;;  %v14492_v8 = vand.u32 4294901760, %v12087_v15 }
  0x78   : > { %10063 = vmatpush3.bf16.msra.mxu1 %v11414_v22  ;;  %1144 = vmatprep.mubr.f32.mxu1 %v14474_v29  ;;  %v14480_v29 = vand.u32 4294901760, %v12050_v49  ;;  %v14486_v49 = vand.u32 4294901760, %v11873_v55  ;;  %v14493_v55 = vand.u32 4294901760, %v11928_v42  ;;  %v405_v42 = vld [vmem:[%s14100_s5] sm:$0xff] }
  0x79   : > { %1029 = vmatmul.mubr.f32.gmra.mrb[14].mxu0 %v12087_v15  ;;  %10065 = vmatprep.subr.bf16.mxu1 %v11416_v23  ;;  %v12256_v52 = vpack.c.bf16 %v14478_v1, %v14477_v21  ;;  %v14488_v1 = vand.u32 4294901760, %v12081_v37  ;;  %v14494_v37 = vand.u32 4294901760, %v11941_v20  ;;  %v14497_v15 = vand.u32 4294901760, %v14460_v17 }
  0x7a   : > { %10043 = vmatpush3.bf16.msra.mxu0 %v12160_v41  ;;  %1336 = vmatprep.mubr.f32.mxu0 %v14475_v45  ;;  %v12276_v21 = vpack.c.bf16 %v14486_v49, %v14485_v63 }
  0x7b   : > { %1148 = vmatmul.mubr.f32.gmra.mrb[10].mxu1 %v14476_v59  ;;  %10045 = vmatprep.subr.bf16.mxu0 %v12170_v62  ;;  %14479 = vst [vmem:[#allocation38_spill] sm:$0xff] %v12256_v52  ;;  %v14482_v59 = vand.u32 4294901760, %v11839_v50  ;;  %v14489_v50 = vand.u32 4294901760, %v11902_v14  ;;  %v12306_v14 = vpack.c.bf16 %v14497_v15, %v14496_v0 }
  0x7c   : > { %10067 = vmatpush3.bf16.msra.mxu1 %v11432_v28  ;;  %1155 = vmatprep.mubr.f32.mxu1 %v14480_v29  ;;  %14487 = vst [vmem:[#allocation49_spill] sm:$0xff] %v12276_v21  ;;  %v12296_v29 = vpack.c.bf16 %v14494_v37, %v14493_v55 }
  0x7d   : > { %10069 = vmatprep.subr.bf16.mxu1 %v11443_v32  ;;  %v12267_v19 = vpack.c.bf16 %v14482_v59, %v14481_v51  ;;  %v12287_v12 = vpack.c.bf16 %v14490_v43, %v14489_v50  ;;  %14498 = vst [vmem:[#allocation72_spill] sm:$0xff] %v12306_v14 }
  0x7e   : > { %10047 = vmatpush3.bf16.msra.mxu0 %v12176_v13  ;;  %14495 = vst [vmem:[#allocation29_spill] sm:$0xff] %v12296_v29 }
  0x7f   : > { %14483 = vst [vmem:[#allocation33_spill] sm:$0xff] %v12267_v19  ;;  %1159 = vmatmul.mubr.f32.gmra.mrb[12].mxu1 %v14484_v3  ;;  %10049 = vmatprep.subr.bf16.mxu0 %v12256_v52  ;;  %14491 = vst [vmem:[#allocation6_spill] sm:$0xff] %v12287_v12 }
  0x80   : > { %10071 = vmatpush3.bf16.msra.mxu1 %v11461_v38  ;;  %1166 = vmatprep.mubr.f32.mxu1 %v14488_v1 }
  0x81   : > { %10073 = vmatprep.subr.bf16.mxu1 %v11484_v47 }
  0x82   : > { %10051 = vmatpush3.bf16.msra.mxu0 %v12267_v19 }
  0x83   : > { %1170 = vmatmul.mubr.f32.gmra.mrb[14].mxu1 %v14492_v8  ;;  %10053 = vmatprep.subr.bf16.mxu0 %v12276_v21 }
  0x84   : > { %10075 = vmatpush3.bf16.msra.mxu1 %v11526_v2  ;;  %1461 = vmatprep.mubr.f32.mxu1 %v14475_v45 }
  0x85   : > { %10077 = vmatprep.subr.bf16.mxu1 %v14458_v31 }
  0x86   : > { %10055 = vmatpush3.bf16.msra.mxu0 %v12287_v12 }
  0x87   : > { %10057 = vmatprep.subr.bf16.mxu0 %v12296_v29 }
  0x88   : > { %10079 = vmatpush3.bf16.msra.mxu1 %v14463_v44 }
  0x89   : > { %10081 = vmatprep.subr.bf16.mxu1 %v14464_v48 }
  0x8a   : > { %10059 = vmatpush3.bf16.msra.mxu0 %v12306_v14 }
  0x8c   : > { %10083 = vmatpush3.bf16.msra.mxu1 %v14465_v57 }
  0x8d   : > { %1338 = vmatmul.mubr.f32.vlgmr.msra.gmra.mrb[16].mxu0 %v11892_v4  ;;  %10085 = vmatprep.subr.bf16.mxu1 %v14467_v54 }
  0x8e   : > { %1343 = vmatprep.mubr.f32.mxu0 %v12003_v16 }
  0x90   : > { %10087 = vmatpush3.bf16.msra.mxu1 %v14469_v11 }
  0x91   : > { %1345 = vmatmul.mubr.f32.gmra.mrb[18].mxu0 %v12006_v61  ;;  %10089 = vmatprep.subr.bf16.mxu1 %v14470_v36 }
  0x92   : > { %1350 = vmatprep.mubr.f32.mxu0 %v12025_v24 }
  0x94   : > { %10091 = vmatpush3.bf16.msra.mxu1 %v14471_v46 }
  0x95   : > { %1352 = vmatmul.mubr.f32.gmra.mrb[20].mxu0 %v12043_v39  ;;  %10141 = vmatprep.subr.bf16.mxu1 %v14472_v53 }
  0x96   : > { %1357 = vmatprep.mubr.f32.mxu0 %v12053_v7 }
  0x97   : > { %1463 = vmatmul.mubr.f32.vlgmr.msra.gmra.mrb[16].mxu1 %v11892_v4  ;;  %v1491_v4 = vsel %vm1489_vm0, %v405_v42, 0 }
  0x98   : > { %1468 = vmatprep.mubr.f32.mxu1 %v12003_v16  ;;  %10143 = vmatpush3.bf16.msra.mxu1 %v11414_v22  ;;  %v12352_v20 = vand.u32 4294901760, %v1491_v4 }
  0x99   : > { %1359 = vmatmul.mubr.f32.gmra.mrb[22].mxu0 %v12069_v9  ;;  %10145 = vmatprep.subr.bf16.mxu1 %v11416_v23 }
  0x9b   : > { %1470 = vmatmul.mubr.f32.gmra.mrb[18].mxu1 %v12006_v61 }
  0x9c   : > { %1475 = vmatprep.mubr.f32.mxu1 %v12025_v24  ;;  %10147 = vmatpush3.bf16.msra.mxu1 %v11432_v28  ;;  %v14499_v24 = vld [vmem:[#allocation10_spill] sm:$0xff] }
  0x9d   : > { %10149 = vmatprep.subr.bf16.mxu1 %v11443_v32 }
  0x9f   : > { %1477 = vmatmul.mubr.f32.gmra.mrb[20].mxu1 %v12043_v39 }
  0xa0   : > { %1482 = vmatprep.mubr.f32.mxu1 %v12053_v7  ;;  %10151 = vmatpush3.bf16.msra.mxu1 %v11461_v38  ;;  %v12355_v7 = vsub.f32 %v1491_v4, %v12352_v20 }
  0xa1   : > { %10153 = vmatprep.subr.bf16.mxu1 %v11484_v47 }
  0xa3   : > { %1484 = vmatmul.mubr.f32.gmra.mrb[22].mxu1 %v12069_v9  ;;  %v12358_v9 = vand.u32 4294901760, %v12355_v7 }
  0xa4   : > { %10155 = vmatpush3.bf16.msra.mxu1 %v11526_v2 }
  0xa5   : > { %10157 = vmatprep.subr.bf16.mxu1 %v14458_v31  ;;  %v1574_v16 = vsub.f32 %v12355_v7, %v12358_v9 }
  0xa7   : > { %v12362_v61 = vand.u32 4294901760, %v1574_v16 }
  0xa8   : > { %10159 = vmatpush3.bf16.msra.mxu1 %v14463_v44 }
  0xa9   : > { %10161 = vmatprep.subr.bf16.mxu1 %v14464_v48  ;;  %14500 = vst [vmem:[#allocation73_spill] sm:$0xff] %v12362_v61  ;;  %9740 = vmatprep.mubr.f32.mxu0 %v12362_v61 }
  0xac   : > { %10163 = vmatpush3.bf16.msra.mxu1 %v14465_v57 }
  0xad   : > { %10165 = vmatprep.subr.bf16.mxu1 %v14467_v54 }
  0xb0   : > { %10167 = vmatpush3.bf16.msra.mxu1 %v14469_v11 }
  0xb1   : > { %10169 = vmatprep.subr.bf16.mxu1 %v14470_v36 }
  0xb4   : > { %10171 = vmatpush3.bf16.msra.mxu1 %v14471_v46 }
  0xb5   : > { %10173 = vmatprep.subr.bf16.mxu1 %v14499_v24 }
 0x11e   : > { %v8612_v39 = vpop.f32.mrb[0].mxu0 }
 0x11f   : > { %v8613_v45 = vpop.f32.mrb[1].mxu0 }
 0x120   : > { %v8614_v34 = vadd.f32 %v8613_v45, %v8612_v39 }
 0x12a   : > { %v8656_v17 = vpop.f32.mrb[0].mxu1 }
 0x12b   : > { %v8657_v51 = vpop.f32.mrb[1].mxu1 }
 0x12c   : > { %v8658_v59 = vadd.f32 %v8657_v51, %v8656_v17 }
 0x12e   : > { %v845_v3 = vadd.f32 %v8658_v59, %v8614_v34  ;;  %v8615_v63 = vpop.f32.mrb[2].mxu0 }
 0x12f   : > { %v8616_v49 = vpop.f32.mrb[3].mxu0 }
 0x130   : > { %v8659_v1 = vpop.f32.mrb[2].mxu1  ;;  %v8617_v50 = vadd.f32 %v8616_v49, %v8615_v63 }
 0x131   : > { %v8660_v43 = vpop.f32.mrb[3].mxu1 }
 0x132   : > { %v8661_v8 = vadd.f32 %v8660_v43, %v8659_v1 }
 0x133   : > { %v8618_v55 = vpop.f32.mrb[4].mxu0 }
 0x134   : > { %v8619_v37 = vpop.f32.mrb[5].mxu0  ;;  %v852_v0 = vadd.f32 %v8661_v8, %v8617_v50 }
 0x135   : > { %v8620_v15 = vadd.f32 %v8619_v37, %v8618_v55  ;;  %v8662_v42 = vpop.f32.mrb[4].mxu1 }
 0x136   : > { %v8663_v4 = vpop.f32.mrb[5].mxu1 }
 0x137   : > { %v8621_v16 = vpop.f32.mrb[6].mxu0  ;;  %v8664_v24 = vadd.f32 %v8663_v4, %v8662_v42 }
 0x138   : > { %v8622_v61 = vpop.f32.mrb[7].mxu0 }
 0x139   : > { %v8623_v39 = vadd.f32 %v8622_v61, %v8621_v16  ;;  %v859_v45 = vadd.f32 %v8664_v24, %v8620_v15  ;;  %v8665_v46 = vpop.f32.mrb[6].mxu1 }
 0x13a   : > { %v8666_v17 = vpop.f32.mrb[7].mxu1 }
 0x13b   : > { %v8667_v34 = vadd.f32 %v8666_v17, %v8665_v46 }
 0x13d   : > { %v866_v51 = vadd.f32 %v8667_v34, %v8623_v39 }
 0x140   : > { %v8700_v59 = vpop.f32.mrb[8].mxu0 }
 0x141   : > { %v8701_v36 = vpop.f32.mrb[9].mxu0 }
 0x142   : > { %v8702_v63 = vadd.f32 %v8701_v36, %v8700_v59 }
 0x144   : > { %v1004_v49 = vadd.f32 %v8702_v63, %v845_v3  ;;  %v8703_v1 = vpop.f32.mrb[10].mxu0 }
 0x145   : > { %v8704_v43 = vpop.f32.mrb[11].mxu0 }
 0x146   : > { %v8705_v11 = vadd.f32 %v8704_v43, %v8703_v1 }
 0x148   : > { %v1013_v50 = vadd.f32 %v8705_v11, %v852_v0  ;;  %v8706_v8 = vpop.f32.mrb[12].mxu0 }
 0x149   : > { %v8707_v55 = vpop.f32.mrb[13].mxu0 }
 0x14a   : > { %v8744_v37 = vpop.f32.mrb[8].mxu1  ;;  %v8708_v54 = vadd.f32 %v8707_v55, %v8706_v8 }
 0x14b   : > { %v8745_v42 = vpop.f32.mrb[9].mxu1 }
 0x14c   : > { %v1022_v4 = vadd.f32 %v8708_v54, %v859_v45  ;;  %v8746_v61 = vadd.f32 %v8745_v42, %v8744_v37  ;;  %v8709_v24 = vpop.f32.mrb[14].mxu0 }
 0x14d   : > { %v8710_v15 = vpop.f32.mrb[15].mxu0 }
 0x14e   : > { %v1139_v16 = vadd.f32 %v8746_v61, %v1004_v49  ;;  %v8747_v46 = vpop.f32.mrb[10].mxu1  ;;  %v8711_v39 = vadd.f32 %v8710_v15, %v8709_v24 }
 0x14f   : > { %v8748_v17 = vpop.f32.mrb[11].mxu1 }
 0x150   : > { %v1031_v34 = vadd.f32 %v8711_v39, %v866_v51  ;;  %v8749_v36 = vadd.f32 %v8748_v17, %v8747_v46 }
 0x152   : > { %v1150_v3 = vadd.f32 %v8749_v36, %v1013_v50  ;;  %v8750_v59 = vpop.f32.mrb[12].mxu1  ;;  %v406_v50 = vld [vmem:[%s14100_s5 + $0x8] sm:$0xff] }
 0x153   : > { %v8751_v63 = vpop.f32.mrb[13].mxu1  ;;  %v1494_v36 = vsel %vm1489_vm0, %v406_v50, 0 }
 0x154   : > { %v8752_v1 = vadd.f32 %v8751_v63, %v8750_v59 }
 0x156   : > { %v1161_v11 = vadd.f32 %v8752_v1, %v1022_v4  ;;  %v8753_v0 = vpop.f32.mrb[14].mxu1 }
 0x157   : > { %v8754_v43 = vpop.f32.mrb[15].mxu1 }
 0x158   : > { %v8755_v57 = vadd.f32 %v8754_v43, %v8753_v0 }
 0x15a   : > { %v1172_v8 = vadd.f32 %v8755_v57, %v1031_v34  ;;  %v407_v57 = vld [vmem:[%s14100_s5 + $0x10] sm:$0xff] }
 0x15b   : > { %v1497_v43 = vsel %vm1489_vm0, %v407_v57, 0 }
 0x160   : > { %v8788_v55 = vpop.f32.mrb[16].mxu0 }
 0x161   : > { %v8789_v54 = vpop.f32.mrb[17].mxu0 }
 0x162   : > { %v8790_v45 = vadd.f32 %v8789_v54, %v8788_v55  ;;  %v12376_v54 = vand.u32 4294901760, %v1494_v36 }
 0x164   : > { %v1340_v37 = vadd.f32 %v8790_v45, %v1139_v16  ;;  %v8791_v42 = vpop.f32.mrb[18].mxu0 }
 0x165   : > { %v8792_v49 = vpop.f32.mrb[19].mxu0 }
 0x166   : > { %v8793_v61 = vadd.f32 %v8792_v49, %v8791_v42 }
 0x168   : > { %v1347_v24 = vadd.f32 %v8793_v61, %v1150_v3  ;;  %v8794_v15 = vpop.f32.mrb[20].mxu0  ;;  %v408_v3 = vld [vmem:[%s14100_s5 + $0x18] sm:$0xff]  ;;  %v12379_v61 = vand.u32 4294901760, %v1497_v43 }
 0x169   : > { %v8795_v51 = vpop.f32.mrb[21].mxu0  ;;  %v1500_v49 = vsel %vm1489_vm0, %v408_v3, 0 }
 0x16a   : > { %v8832_v46 = vpop.f32.mrb[16].mxu1  ;;  %v8796_v4 = vadd.f32 %v8795_v51, %v8794_v15 }
 0x16b   : > { %v8833_v39 = vpop.f32.mrb[17].mxu1 }
 0x16c   : > { %v1354_v17 = vadd.f32 %v8796_v4, %v1161_v11  ;;  %v8834_v34 = vadd.f32 %v8833_v39, %v8832_v46  ;;  %v8797_v16 = vpop.f32.mrb[22].mxu0  ;;  %v12384_v4 = vand.u32 4294901760, %v1500_v49 }
 0x16d   : > { %v8798_v59 = vpop.f32.mrb[23].mxu0 }
 0x16e   : > { %v1465_v63 = vadd.f32 %v8834_v34, %v1340_v37  ;;  %v8835_v1 = vpop.f32.mrb[18].mxu1  ;;  %v8799_v0 = vadd.f32 %v8798_v59, %v8797_v16  ;;  %v12382_v37 = vsub.f32 %v1494_v36, %v12376_v54  ;;  %v12387_v16 = vsub.f32 %v1497_v43, %v12379_v61 }
 0x16f   : > { %v8836_v55 = vpop.f32.mrb[19].mxu1  ;;  %v12395_v36 = vsub.f32 %v1500_v49, %v12384_v4 }
 0x170   : > { %v1503_v45 = vand.u32 4294901760, %v1465_v63  ;;  %v1361_v42 = vadd.f32 %v8799_v0, %v1172_v8  ;;  %v8837_v11 = vadd.f32 %v8836_v55, %v8835_v1  ;;  %v12400_v43 = vand.u32 4294901760, %v12387_v16 }
 0x172   : > { %v1613_v15 = vsub.f32 %v1465_v63, %v1503_v45  ;;  %v1472_v51 = vadd.f32 %v8837_v11, %v1347_v24  ;;  %v8838_v50 = vpop.f32.mrb[20].mxu1  ;;  %v12392_v24 = vand.u32 4294901760, %v12382_v37  ;;  %v1594_v31 = vsub.f32 %v12387_v16, %v12400_v43 }
 0x173   : > { %v8839_v46 = vpop.f32.mrb[21].mxu1 }
 0x174   : > { %v1506_v39 = vand.u32 4294901760, %v1472_v51  ;;  %v8840_v57 = vadd.f32 %v8839_v46, %v8838_v50  ;;  %v1614_v34 = vand.u32 4294901760, %v1613_v15  ;;  %v1584_v49 = vsub.f32 %v12382_v37, %v12392_v24 }
 0x176   : > { %v12389_v8 = vpack.c.bf16 %v1506_v39, %v1503_v45  ;;  %v1620_v59 = vsub.f32 %v1472_v51, %v1506_v39  ;;  %v1479_v3 = vadd.f32 %v8840_v57, %v1354_v17  ;;  %v8841_v1 = vpop.f32.mrb[22].mxu1  ;;  %v1615_v11 = vsub.f32 %v1613_v15, %v1614_v34 }
 0x177   : > { %v8842_v63 = vpop.f32.mrb[23].mxu1  ;;  %v12405_v57 = vand.u32 4294901760, %v12395_v36 }
 0x178   : > { %v1509_v0 = vand.u32 4294901760, %v1479_v3  ;;  %v8843_v55 = vadd.f32 %v8842_v63, %v8841_v1  ;;  %10093 = vmatprep.subr.bf16.mxu0 %v12389_v8  ;;  %v1621_v50 = vand.u32 4294901760, %v1620_v59  ;;  %v10108_v17 = vpack.c.bf16 %v1620_v59, %v1613_v15 }
 0x179   : > { %10095 = vmatpush3.bf16.msra.mxu0 %v12389_v8  ;;  %v1616_v63 = vand.u32 4294901760, %v1615_v11 }
 0x17a   : > { %v1627_v45 = vsub.f32 %v1479_v3, %v1509_v0  ;;  %v1486_v51 = vadd.f32 %v8843_v55, %v1361_v42  ;;  %v1622_v46 = vsub.f32 %v1620_v59, %v1621_v50  ;;  %v10124_v39 = vpack.c.bf16 %v1621_v50, %v1614_v34 }
 0x17b   : > { %v12409_v3 = vand.u32 4294901760, %v1584_v49  ;;  %v1604_v42 = vsub.f32 %v12395_v36, %v12405_v57  ;;  %v12413_v50 = vand.u32 4294901760, %v1594_v31  ;;  %v14502_v31 = vld [vmem:[#allocation35_spill] sm:$0xff] }
 0x17c   : > { %v1512_v1 = vand.u32 4294901760, %v1486_v51  ;;  %v1623_v48 = vand.u32 4294901760, %v1622_v46  ;;  %v1628_v44 = vand.u32 4294901760, %v1627_v45 }
 0x17e   : > { %v10096_v2 = vpack.c.bf16 %v1512_v1, %v1509_v0  ;;  %v1634_v47 = vsub.f32 %v1486_v51, %v1512_v1  ;;  %v10100_v15 = vpack.c.bf16 %v1623_v48, %v1616_v63  ;;  %v1629_v34 = vsub.f32 %v1627_v45, %v1628_v44 }
 0x17f   : > { %v12416_v0 = vand.u32 4294901760, %v1604_v42 }
 0x180   : > { %10097 = vmatprep.subr.bf16.mxu0 %v10096_v2  ;;  %v1635_v59 = vand.u32 4294901760, %v1634_v47  ;;  %v10112_v55 = vpack.c.bf16 %v1634_v47, %v1627_v45  ;;  %v1630_v48 = vand.u32 4294901760, %v1629_v34  ;;  %v14506_v45 = vld [vmem:[#allocation52_spill] sm:$0xff] }
 0x181   : > { %10099 = vmatpush3.bf16.msra.mxu0 %v10096_v2 }
 0x182   : > { %10101 = vmatprep.subr.bf16.mxu0 %v10100_v15  ;;  %v1636_v11 = vsub.f32 %v1634_v47, %v1635_v59  ;;  %v10128_v46 = vpack.c.bf16 %v1635_v59, %v1628_v44  ;;  %v14501_v47 = vld [vmem:[#allocation31_spill] sm:$0xff] }
 0x183   : > { %v14503_v44 = vld [vmem:[#allocation39_spill] sm:$0xff] }
 0x184   : > { %9741 = vmatmul.mubr.f32.vlgmr.msra.gmra.mrb[24].mxu0 %v12409_v3  ;;  %v1637_v51 = vand.u32 4294901760, %v1636_v11 }
 0x185   : > { %10103 = vmatpush3.bf16.msra.mxu0 %v10100_v15  ;;  %9743 = vmatprep.mubr.f32.mxu0 %v12413_v50 }
 0x186   : > { %v10104_v49 = vpack.c.bf16 %v1637_v51, %v1630_v48  ;;  %v386_v48 = vld [vmem:[%s14096_s1 + $0x8] sm:$0xff]  ;;  %v389_v51 = vld [vmem:[%s14097_s2] sm:$0xff] }
 0x188   : > { %9744 = vmatmul.mubr.f32.gmra.mrb[26].mxu0 %v12416_v0  ;;  %10105 = vmatprep.subr.bf16.mxu0 %v10104_v49 }
 0x189   : > { %10107 = vmatpush3.bf16.msra.mxu0 %v10104_v49  ;;  %9754 = vmatprep.mubr.f32.mxu0 %v12352_v20  ;;  %v388_v49 = vld [vmem:[%s14096_s1 + $0x18] sm:$0xff] }
 0x18a   : > { %10109 = vmatprep.subr.bf16.mxu0 %v10108_v17 }
 0x18c   : > { %9755 = vmatmul.mubr.f32.vlgmr.msra.gmra.mrb[24].mxu0 %v12376_v54 }
 0x18d   : > { %10111 = vmatpush3.bf16.msra.mxu0 %v10108_v17  ;;  %9757 = vmatprep.mubr.f32.mxu0 %v12379_v61  ;;  %v14505_v17 = vld [vmem:[#allocation45_spill] sm:$0xff] }
 0x18e   : > { %10113 = vmatprep.subr.bf16.mxu0 %v10112_v55 }
 0x190   : > { %9758 = vmatmul.mubr.f32.gmra.mrb[26].mxu0 %v12384_v4 }
 0x191   : > { %10115 = vmatpush3.bf16.msra.mxu0 %v10112_v55  ;;  %9768 = vmatprep.mubr.f32.mxu0 %v12355_v7  ;;  %v385_v55 = vld [vmem:[%s14096_s1] sm:$0xff] }
 0x192   : > { %10117 = vmatprep.subr.bf16.mxu0 %v12389_v8 }
 0x194   : > { %9769 = vmatmul.mubr.f32.vlgmr.msra.gmra.mrb[24].mxu0 %v12382_v37 }
 0x195   : > { %10119 = vmatpush3.bf16.msra.mxu0 %v12389_v8  ;;  %9771 = vmatprep.mubr.f32.mxu0 %v12387_v16 }
 0x196   : > { %10121 = vmatprep.subr.bf16.mxu0 %v10096_v2 }
 0x198   : > { %9772 = vmatmul.mubr.f32.gmra.mrb[26].mxu0 %v12395_v36 }
 0x199   : > { %10123 = vmatpush3.bf16.msra.mxu0 %v10096_v2  ;;  %9782 = vmatprep.mubr.f32.mxu0 %v12358_v9 }
 0x19a   : > { %10125 = vmatprep.subr.bf16.mxu0 %v10124_v39 }
 0x19c   : > { %9783 = vmatmul.mubr.f32.vlgmr.msra.gmra.mrb[24].mxu0 %v12392_v24 }
 0x19d   : > { %10127 = vmatpush3.bf16.msra.mxu0 %v10124_v39  ;;  %9785 = vmatprep.mubr.f32.mxu0 %v12400_v43 }
 0x19e   : > { %10129 = vmatprep.subr.bf16.mxu0 %v10128_v46 }
 0x1a0   : > { %9786 = vmatmul.mubr.f32.gmra.mrb[26].mxu0 %v12405_v57 }
 0x1a1   : > { %10131 = vmatpush3.bf16.msra.mxu0 %v10128_v46  ;;  %9796 = vmatprep.mubr.f32.mxu0 %v12352_v20  ;;  %v387_v46 = vld [vmem:[%s14096_s1 + $0x10] sm:$0xff] }
 0x1a2   : > { %10133 = vmatprep.subr.bf16.mxu0 %v12389_v8 }
 0x1a4   : > { %9797 = vmatmul.mubr.f32.vlgmr.msra.gmra.mrb[24].mxu0 %v12376_v54 }
 0x1a5   : > { %10135 = vmatpush3.bf16.msra.mxu0 %v12389_v8  ;;  %9799 = vmatprep.mubr.f32.mxu0 %v12379_v61  ;;  %v14504_v8 = vld [vmem:[#allocation43_spill] sm:$0xff] }
 0x1a6   : > { %10137 = vmatprep.subr.bf16.mxu0 %v10096_v2 }
 0x1a8   : > { %9800 = vmatmul.mubr.f32.gmra.mrb[26].mxu0 %v12384_v4 }
 0x1a9   : > { %10139 = vmatpush3.bf16.msra.mxu0 %v10096_v2  ;;  %9810 = vmatprep.mubr.f32.mxu0 %v12352_v20  ;;  %v11247_v2 = vmov 0  }
 0x1aa   : > { %10205 = vmatprep.subr.bf16.mxu0 %v14501_v47  ;;  %11106 = vset.pattern.permute.xlu0 %v11247_v2 }
 0x1ab   : > { %11107 = vset.pattern.permute.xlu1 %v11247_v2  ;;  %v390_v2 = vld [vmem:[%s14097_s2 + $0x8] sm:$0xff] }
 0x1ac   : > { %9811 = vmatmul.mubr.f32.vlgmr.msra.gmra.mrb[24].mxu0 %v12376_v54 }
 0x1ad   : > { %9813 = vmatprep.mubr.f32.mxu0 %v12379_v61  ;;  %10207 = vmatpush3.bf16.msra.mxu0 %v14502_v31 }
 0x1ae   : > { %10209 = vmatprep.subr.bf16.mxu0 %v14503_v44 }
 0x1b0   : > { %9814 = vmatmul.mubr.f32.gmra.mrb[26].mxu0 %v12384_v4 }
 0x1b1   : > { %10211 = vmatpush3.bf16.msra.mxu0 %v14504_v8 }
 0x1b2   : > { %10213 = vmatprep.subr.bf16.mxu0 %v14505_v17 }
 0x1b5   : > { %10215 = vmatpush3.bf16.msra.mxu0 %v14506_v45 }
 0x1b6   : > { %10217 = vmatprep.subr.bf16.mxu0 %v12040_v27 }
 0x1b9   : > { %10219 = vmatpush3.bf16.msra.mxu0 %v12058_v58 }
 0x1ba   : > { %10221 = vmatprep.subr.bf16.mxu0 %v12062_v26  ;;  %v14516_v26 = vld [vmem:[#allocation48_spill] sm:$0xff] }
 0x1bd   : > { %10223 = vmatpush3.bf16.msra.mxu0 %v12144_v5 }
 0x1be   : > { %10225 = vmatprep.subr.bf16.mxu0 %v12148_v25 }
 0x1c1   : > { %10227 = vmatpush3.bf16.msra.mxu0 %v12184_v40  ;;  %v14514_v40 = vld [vmem:[#allocation50_spill] sm:$0xff] }
 0x1c2   : > { %10229 = vmatprep.subr.bf16.mxu0 %v12190_v10 }
 0x1c5   : > { %10231 = vmatpush3.bf16.msra.mxu0 %v12198_v33 }
 0x1c6   : > { %10233 = vmatprep.subr.bf16.mxu0 %v12204_v35 }
 0x1c9   : > { %10235 = vmatpush3.bf16.msra.mxu0 %v12213_v60 }
 0x1ca   : > { %10269 = vmatprep.subr.bf16.mxu0 %v12093_v18  ;;  %v14512_v18 = vld [vmem:[#allocation44_spill] sm:$0xff] }
 0x27f   : > { %v9812_v39 = vpop.f32.mrb[24].mxu0 }
 0x280   : > { %v2094_v1 = vpop.f32.mrb[25].mxu0  ;;  %v2117_v34 = vmul.f32 0.001953125, %v9812_v39 }
 0x281   : > { %v2116_v63 = vmul.f32 0.001953125, %v2094_v1  ;;  %v14507_v1 = vld [vmem:[#allocation30_spill] sm:$0xff] }
 0x283   : > { %2122 = vperm.xlu0 %11106, %v2116_v63   ;;  %v9815_v15 = vpop.f32.mrb[26].mxu0 }
 0x284   : > { %v2106_v42 = vpop.f32.mrb[27].mxu0  ;;  %v2119_v11 = vmul.f32 0.001953125, %v9815_v15  ;;  %v11174_v15 = vld [vmem:[%s11797_s24 + $0x8] sm:$0xff] }
 0x285   : > { %v2118_v59 = vmul.f32 0.001953125, %v2106_v42 }
 0x287   : > { %2127 = vperm.xlu0 %11106, %v2117_v34   ;;  %2132 = vperm.xlu1 %11107, %v2118_v59  }
 0x28b   : > { %3874 = vperm.xlu0 %11106, %v385_v55   ;;  %2137 = vperm.xlu1 %11107, %v2119_v11  }
 0x28f   : > { %3884 = vperm.xlu0 %11106, %v387_v46   ;;  %3879 = vperm.xlu1 %11107, %v386_v48  }
 0x293   : > { %3902 = vperm.xlu0 %11106, %v389_v51   ;;  %3889 = vperm.xlu1 %11107, %v388_v49   ;;  %v14508_v51 = vld [vmem:[#allocation41_spill] sm:$0xff] }
 0x297   : > { %3907 = vperm.xlu1 %11107, %v390_v2   ;;  %v14509_v2 = vld [vmem:[#allocation40_spill] sm:$0xff] }
 0x302   : > { %v2123_v39 = vpop.permute.xlu0 %2122 }
 0x303   : > { %v12480_v63 = vsub.f32 %v14507_v1, %v2123_v39  ;;  %v12483_v42 = vsub.f32 %v11174_v15, %v2123_v39  ;;  %v14510_v39 = vld [vmem:[#allocation46_spill] sm:$0xff] }
 0x305   : > { %v2148_v34 = vmul.f32 %v12480_v63, %v12480_v63  ;;  %v2149_v59 = vmul.f32 %v12483_v42, %v12483_v42 }
 0x306   : > { %v2128_v55 = vpop.permute.xlu0 %2127  ;;  %v2133_v11 = vpop.permute.xlu1 %2132 }
 0x307   : > { %v12489_v46 = vand.u32 4294901760, %v2149_v59  ;;  %v12491_v48 = vand.u32 4294901760, %v2148_v34  ;;  %v12494_v49 = vsub.f32 %v14508_v51, %v2128_v55  ;;  %v12497_v1 = vsub.f32 %v14509_v2, %v2128_v55 }
 0x308   : > { %v12500_v15 = vsub.f32 %v14510_v39, %v2133_v11  ;;  %v12503_v60 = vsub.f32 %v14512_v18, %v2133_v11 }
 0x309   : > { %v12506_v35 = vsub.f32 %v2148_v34, %v12491_v48  ;;  %v2150_v33 = vmul.f32 %v12494_v49, %v12494_v49  ;;  %v2151_v10 = vmul.f32 %v12497_v1, %v12497_v1  ;;  %v12513_v51 = vsub.f32 %v2149_v59, %v12489_v46 }
 0x30a   : > { %14511 = vst [vmem:[#allocation30_spill] sm:$0xff] %v12500_v15  ;;  %14513 = vst [vmem:[#allocation41_spill] sm:$0xff] %v12503_v60  ;;  %v2152_v55 = vmul.f32 %v12500_v15, %v12500_v15  ;;  %v2153_v2 = vmul.f32 %v12503_v60, %v12503_v60  ;;  %v2138_v18 = vpop.permute.xlu1 %2137 }
 0x30b   : > { %v12520_v34 = vand.u32 4294901760, %v2151_v10  ;;  %v12522_v39 = vand.u32 4294901760, %v2150_v33  ;;  %v12525_v25 = vsub.f32 %v14514_v40, %v2138_v18  ;;  %2696 = vmatprep.mubr.f32.mxu0 %v12513_v51  ;;  %v12533_v58 = vsub.f32 %v14516_v26, %v2138_v18 }
 0x30c   : > { %v12528_v59 = vand.u32 4294901760, %v2153_v2  ;;  %v12530_v5 = vand.u32 4294901760, %v2152_v55  ;;  %2699 = vmatmul.mubr.f32.vlgmr.msra.gmra.mrb[28].mxu0 %v12506_v35  ;;  %v14270_v11 = vand.u32 4294901760, %v12513_v51  ;;  %v14518_v27 = vand.u32 4294901760, %v12506_v35 }
 0x30d   : > { %14515 = vst [vmem:[#allocation40_spill] sm:$0xff] %v12525_v25  ;;  %14517 = vst [vmem:[#allocation46_spill] sm:$0xff] %v12533_v58  ;;  %v2154_v40 = vmul.f32 %v12525_v25, %v12525_v25  ;;  %10271 = vmatpush3.bf16.msra.mxu0 %v12099_v30  ;;  %v12544_v17 = vsub.f32 %v2151_v10, %v12520_v34  ;;  %v12547_v8 = vsub.f32 %v2150_v33, %v12522_v39  ;;  %v14521_v25 = vld [vmem:[#allocation12_spill] sm:$0xff] }
 0x30e   : > { %v2261_v45 = vsub.f32 %v12506_v35, %v14518_v27  ;;  %v2155_v26 = vmul.f32 %v12533_v58, %v12533_v58  ;;  %10273 = vmatprep.subr.bf16.mxu0 %v12117_v6  ;;  %v2255_v27 = vsub.f32 %v12513_v51, %v14270_v11  ;;  %v12556_v18 = vsub.f32 %v2153_v2, %v12528_v59 }
 0x30f   : > { %v12559_v30 = vsub.f32 %v2152_v55, %v12530_v5  ;;  %v12561_v44 = vand.u32 4294901760, %v2154_v40  ;;  %2705 = vmatprep.mubr.f32.mxu0 %v12544_v17  ;;  %v14275_v33 = vand.u32 4294901760, %v12544_v17  ;;  %v14278_v31 = vand.u32 4294901760, %v12547_v8 }
 0x310   : > { %v2262_v10 = vand.u32 4294901760, %v2261_v45  ;;  %v12566_v6 = vand.u32 4294901760, %v2155_v26  ;;  %2708 = vmatmul.mubr.f32.gmra.mrb[30].mxu0 %v12547_v8  ;;  %v2256_v11 = vand.u32 4294901760, %v2255_v27  ;;  %v14519_v27 = vld [vmem:[#allocation60_spill] sm:$0xff] }
 0x311   : > { %10275 = vmatpush3.bf16.msra.mxu0 %v12123_v56  ;;  %2714 = vmatprep.mubr.f32.mxu0 %v12556_v18  ;;  %v2270_v45 = vsub.f32 %v12544_v17, %v14275_v33  ;;  %v2276_v55 = vsub.f32 %v12547_v8, %v14278_v31  ;;  %v12579_v47 = vsub.f32 %v2154_v40, %v12561_v44  ;;  %v14279_v60 = vand.u32 4294901760, %v12559_v30  ;;  %v14522_v31 = vld [vmem:[#allocation61_spill] sm:$0xff] }
 0x312   : > { %2257 = vmatprep.mubr.f32.mxu1 %v2256_v11  ;;  %10277 = vmatprep.subr.bf16.mxu0 %v14519_v27  ;;  %v12584_v2 = vsub.f32 %v2155_v26, %v12566_v6  ;;  %v14520_v56 = vand.u32 4294901760, %v12556_v18  ;;  %v14523_v27 = vld [vmem:[#allocation13_spill] sm:$0xff] }
 0x313   : > { %2263 = vmatmul.mubr.f32.vlgmr.msra.gmra.mrb[24].mxu1 %v2262_v10  ;;  %v2271_v33 = vand.u32 4294901760, %v2270_v45  ;;  %v2277_v58 = vand.u32 4294901760, %v2276_v55  ;;  %v2291_v11 = vsub.f32 %v12559_v30, %v14279_v60  ;;  %v14281_v26 = vand.u32 4294901760, %v12579_v47  ;;  %v14524_v45 = vld [vmem:[#allocation64_spill] sm:$0xff] }
 0x314   : > { %v2285_v15 = vsub.f32 %v12556_v18, %v14520_v56  ;;  %10175 = vmatpush3.bf16.msra.mxu1 %v14521_v25  ;;  %2717 = vmatmul.mubr.f32.gmra.mrb[32].mxu0 %v12559_v30  ;;  %v14280_v40 = vand.u32 4294901760, %v12584_v2  ;;  %v14525_v55 = vld [vmem:[#allocation16_spill] sm:$0xff] }
 0x315   : > { %10279 = vmatpush3.bf16.msra.mxu0 %v14522_v31  ;;  %2272 = vmatprep.mubr.f32.mxu1 %v2271_v33  ;;  %v14526_v33 = vld [vmem:[#allocation18_spill] sm:$0xff]  ;;  %v2292_v60 = vand.u32 4294901760, %v2291_v11  ;;  %v2306_v31 = vsub.f32 %v12579_v47, %v14281_v26  ;;  %v14529_v11 = vld [vmem:[#allocation24_spill] sm:$0xff] }
 0x316   : > { %10177 = vmatprep.subr.bf16.mxu1 %v14523_v27  ;;  %2723 = vmatprep.mubr.f32.mxu0 %v12584_v2  ;;  %v2286_v56 = vand.u32 4294901760, %v2285_v15  ;;  %v2300_v10 = vsub.f32 %v12584_v2, %v14280_v40  ;;  %v14530_v26 = vld [vmem:[#allocation26_spill] sm:$0xff] }
 0x317   : > { %2278 = vmatmul.mubr.f32.gmra.mrb[26].mxu1 %v2277_v58  ;;  %10281 = vmatprep.subr.bf16.mxu0 %v14524_v45  ;;  %v14527_v58 = vld [vmem:[#allocation20_spill] sm:$0xff]  ;;  %v2307_v40 = vand.u32 4294901760, %v2306_v31  ;;  %v14533_v31 = vld [vmem:[#allocation34_spill] sm:$0xff]  ;;  %v14545_v45 = vld [vmem:[#allocation21_spill] sm:$0xff] }
 0x318   : > { %10179 = vmatpush3.bf16.msra.mxu1 %v14525_v55  ;;  %2287 = vmatprep.mubr.f32.mxu1 %v2286_v56  ;;  %v2301_v15 = vand.u32 4294901760, %v2300_v10  ;;  %v14528_v56 = vld [vmem:[#allocation22_spill] sm:$0xff]  ;;  %v14532_v10 = vld [vmem:[#allocation32_spill] sm:$0xff] }
 0x319   : > { %2726 = vmatmul.mubr.f32.gmra.mrb[34].mxu0 %v12579_v47  ;;  %10181 = vmatprep.subr.bf16.mxu1 %v14526_v33 }
 0x31a   : > { %10283 = vmatpush3.bf16.msra.mxu0 %v12160_v41  ;;  %3033 = vmatprep.mubr.f32.mxu0 %v12489_v46  ;;  %v14544_v41 = vld [vmem:[#allocation19_spill] sm:$0xff] }
 0x31b   : > { %2293 = vmatmul.mubr.f32.gmra.mrb[28].mxu1 %v2292_v60  ;;  %10285 = vmatprep.subr.bf16.mxu0 %v12170_v62  ;;  %v14531_v60 = vld [vmem:[#allocation28_spill] sm:$0xff]  ;;  %v14543_v62 = vld [vmem:[#allocation17_spill] sm:$0xff] }
 0x31c   : > { %10183 = vmatpush3.bf16.msra.mxu1 %v14527_v58  ;;  %2302 = vmatprep.mubr.f32.mxu1 %v2301_v15  ;;  %v14535_v15 = vld [vmem:[#allocation42_spill] sm:$0xff] }
 0x31d   : > { %10185 = vmatprep.subr.bf16.mxu1 %v14528_v56 }
 0x31e   : > { %10287 = vmatpush3.bf16.msra.mxu0 %v12176_v13  ;;  %v14542_v13 = vld [vmem:[#allocation15_spill] sm:$0xff] }
 0x31f   : > { %2308 = vmatmul.mubr.f32.gmra.mrb[30].mxu1 %v2307_v40  ;;  %10289 = vmatprep.subr.bf16.mxu0 %v12256_v52  ;;  %v14534_v40 = vld [vmem:[#allocation36_spill] sm:$0xff]  ;;  %v14541_v52 = vld [vmem:[#allocation14_spill] sm:$0xff] }
 0x320   : > { %10187 = vmatpush3.bf16.msra.mxu1 %v14529_v11  ;;  %2538 = vmatprep.mubr.f32.mxu1 %v12489_v46 }
 0x321   : > { %10189 = vmatprep.subr.bf16.mxu1 %v14530_v26 }
 0x322   : > { %10291 = vmatpush3.bf16.msra.mxu0 %v12267_v19  ;;  %v14536_v19 = vld [vmem:[#allocation47_spill] sm:$0xff] }
 0x323   : > { %10293 = vmatprep.subr.bf16.mxu0 %v12276_v21  ;;  %v14537_v21 = vld [vmem:[#allocation51_spill] sm:$0xff] }
 0x324   : > { %10191 = vmatpush3.bf16.msra.mxu1 %v14531_v60 }
 0x325   : > { %10193 = vmatprep.subr.bf16.mxu1 %v14532_v10 }
 0x326   : > { %10295 = vmatpush3.bf16.msra.mxu0 %v12287_v12  ;;  %v14540_v12 = vand.u32 4294901760, %v12513_v51  ;;  %v14550_v51 = vand.u32 4294901760, %v12544_v17  ;;  %v14554_v17 = vand.u32 4294901760, %v12584_v2 }
 0x327   : > { %10297 = vmatprep.subr.bf16.mxu0 %v12296_v29  ;;  %v14539_v29 = vld [vmem:[#allocation11_spill] sm:$0xff] }
 0x328   : > { %10195 = vmatpush3.bf16.msra.mxu1 %v14533_v31  ;;  %v14552_v31 = vand.u32 4294901760, %v12556_v18 }
 0x329   : > { %10197 = vmatprep.subr.bf16.mxu1 %v14534_v40  ;;  %v14551_v40 = vand.u32 4294901760, %v12547_v8  ;;  %v14555_v8 = vand.u32 4294901760, %v12579_v47 }
 0x32a   : > { %10299 = vmatpush3.bf16.msra.mxu0 %v12306_v14  ;;  %v14538_v14 = vld [vmem:[#allocation9_spill] sm:$0xff] }
 0x32c   : > { %10199 = vmatpush3.bf16.msra.mxu1 %v14535_v15  ;;  %v14548_v15 = vld [vmem:[#allocation27_spill] sm:$0xff] }
 0x32d   : > { %3035 = vmatmul.mubr.f32.vlgmr.msra.gmra.mrb[36].mxu0 %v12491_v48  ;;  %10201 = vmatprep.subr.bf16.mxu1 %v14536_v19  ;;  %v14547_v19 = vld [vmem:[#allocation25_spill] sm:$0xff] }
 0x32e   : > { %3040 = vmatprep.mubr.f32.mxu0 %v12520_v34 }
 0x330   : > { %10203 = vmatpush3.bf16.msra.mxu1 %v14537_v21  ;;  %v14546_v21 = vld [vmem:[#allocation23_spill] sm:$0xff] }
 0x331   : > { %3042 = vmatmul.mubr.f32.gmra.mrb[38].mxu0 %v12522_v39  ;;  %10237 = vmatprep.subr.bf16.mxu1 %v14472_v53 }
 0x332   : > { %3047 = vmatprep.mubr.f32.mxu0 %v12528_v59 }
 0x333   : > { %2540 = vmatmul.mubr.f32.vlgmr.msra.gmra.mrb[32].mxu1 %v12491_v48 }
 0x334   : > { %2545 = vmatprep.mubr.f32.mxu1 %v12520_v34  ;;  %10239 = vmatpush3.bf16.msra.mxu1 %v11414_v22 }
 0x335   : > { %3049 = vmatmul.mubr.f32.gmra.mrb[40].mxu0 %v12530_v5  ;;  %10241 = vmatprep.subr.bf16.mxu1 %v11416_v23 }
 0x336   : > { %3054 = vmatprep.mubr.f32.mxu0 %v12566_v6 }
 0x337   : > { %2547 = vmatmul.mubr.f32.gmra.mrb[34].mxu1 %v12522_v39 }
 0x338   : > { %2552 = vmatprep.mubr.f32.mxu1 %v12528_v59  ;;  %10243 = vmatpush3.bf16.msra.mxu1 %v11432_v28 }
 0x339   : > { %3056 = vmatmul.mubr.f32.gmra.mrb[42].mxu0 %v12561_v44  ;;  %10245 = vmatprep.subr.bf16.mxu1 %v11443_v32 }
 0x33a   : > { %9838 = vmatprep.mubr.f32.mxu0 %v12352_v20 }
 0x33b   : > { %2554 = vmatmul.mubr.f32.gmra.mrb[36].mxu1 %v12530_v5 }
 0x33c   : > { %2559 = vmatprep.mubr.f32.mxu1 %v12566_v6  ;;  %10247 = vmatpush3.bf16.msra.mxu1 %v11461_v38 }
 0x33d   : > { %10249 = vmatprep.subr.bf16.mxu1 %v14538_v14 }
 0x33f   : > { %2561 = vmatmul.mubr.f32.gmra.mrb[38].mxu1 %v12561_v44 }
 0x340   : > { %10251 = vmatpush3.bf16.msra.mxu1 %v14539_v29  ;;  %2830 = vmatprep.mubr.f32.mxu1 %v14540_v12  ;;  %v14549_v12 = vand.u32 4294901760, %v12506_v35  ;;  %v14553_v35 = vand.u32 4294901760, %v12559_v30  ;;  %v14556_v30 = vld [vmem:[#allocation73_spill] sm:$0xff] }
 0x341   : > { %10253 = vmatprep.subr.bf16.mxu1 %v14541_v52 }
 0x344   : > { %10255 = vmatpush3.bf16.msra.mxu1 %v14542_v13 }
 0x345   : > { %10257 = vmatprep.subr.bf16.mxu1 %v14543_v62 }
 0x348   : > { %10259 = vmatpush3.bf16.msra.mxu1 %v14544_v41 }
 0x349   : > { %10261 = vmatprep.subr.bf16.mxu1 %v14545_v45 }
 0x34c   : > { %10263 = vmatpush3.bf16.msra.mxu1 %v14546_v21 }
 0x34d   : > { %10265 = vmatprep.subr.bf16.mxu1 %v14547_v19 }
 0x350   : > { %10267 = vmatpush3.bf16.msra.mxu1 %v14548_v15 }
 0x351   : > { %10301 = vmatprep.subr.bf16.mxu1 %v14472_v53 }
 0x353   : > { %2834 = vmatmul.mubr.f32.vlgmr.msra.gmra.mrb[40].mxu1 %v14549_v12 }
 0x354   : > { %2841 = vmatprep.mubr.f32.mxu1 %v14550_v51  ;;  %10303 = vmatpush3.bf16.msra.mxu1 %v11414_v22 }
 0x355   : > { %10305 = vmatprep.subr.bf16.mxu1 %v11416_v23 }
 0x357   : > { %2845 = vmatmul.mubr.f32.gmra.mrb[42].mxu1 %v14551_v40 }
 0x358   : > { %2852 = vmatprep.mubr.f32.mxu1 %v14552_v31  ;;  %10307 = vmatpush3.bf16.msra.mxu1 %v11432_v28 }
 0x359   : > { %10309 = vmatprep.subr.bf16.mxu1 %v11443_v32 }
 0x35b   : > { %2856 = vmatmul.mubr.f32.gmra.mrb[44].mxu1 %v14553_v35 }
 0x35c   : > { %2863 = vmatprep.mubr.f32.mxu1 %v14554_v17  ;;  %10311 = vmatpush3.bf16.msra.mxu1 %v11461_v38 }
 0x35d   : > { %10313 = vmatprep.subr.bf16.mxu1 %v14538_v14 }
 0x35f   : > { %2867 = vmatmul.mubr.f32.gmra.mrb[46].mxu1 %v14555_v8 }
 0x360   : > { %10315 = vmatpush3.bf16.msra.mxu1 %v14539_v29  ;;  %3158 = vmatprep.mubr.f32.mxu1 %v12489_v46 }
 0x361   : > { %10317 = vmatprep.subr.bf16.mxu1 %v14541_v52 }
 0x364   : > { %10319 = vmatpush3.bf16.msra.mxu1 %v14542_v13 }
 0x365   : > { %10321 = vmatprep.subr.bf16.mxu1 %v14543_v62 }
 0x368   : > { %10323 = vmatpush3.bf16.msra.mxu1 %v14544_v41 }
 0x369   : > { %10325 = vmatprep.subr.bf16.mxu1 %v14545_v45 }
 0x36c   : > { %10327 = vmatpush3.bf16.msra.mxu1 %v14546_v21 }
 0x36d   : > { %10329 = vmatprep.subr.bf16.mxu1 %v14547_v19 }
 0x370   : > { %10331 = vmatpush3.bf16.msra.mxu1 %v14548_v15 }
 0x373   : > { %3160 = vmatmul.mubr.f32.vlgmr.msra.gmra.mrb[48].mxu1 %v12491_v48 }
 0x374   : > { %3165 = vmatprep.mubr.f32.mxu1 %v12520_v34 }
 0x377   : > { %3167 = vmatmul.mubr.f32.gmra.mrb[50].mxu1 %v12522_v39 }
 0x378   : > { %3172 = vmatprep.mubr.f32.mxu1 %v12528_v59 }
 0x37b   : > { %3174 = vmatmul.mubr.f32.gmra.mrb[52].mxu1 %v12530_v5 }
 0x37c   : > { %3179 = vmatprep.mubr.f32.mxu1 %v12566_v6 }
 0x37f   : > { %3181 = vmatmul.mubr.f32.gmra.mrb[54].mxu1 %v12561_v44 }
 0x380   : > { %9824 = vmatprep.mubr.f32.mxu1 %v14556_v30 }
 0x3df   : > { %v9012_v47 = vpop.f32.mrb[28].mxu0 }
 0x3e0   : > { %v9013_v46 = vpop.f32.mrb[29].mxu0 }
 0x3e1   : > { %v9014_v18 = vadd.f32 %v9013_v46, %v9012_v47 }
 0x3e3   : > { %v9015_v2 = vpop.f32.mrb[30].mxu0 }
 0x3e4   : > { %v9016_v31 = vpop.f32.mrb[31].mxu0 }
 0x3e5   : > { %v9017_v48 = vadd.f32 %v9016_v31, %v9015_v2 }
 0x3e6   : > { %v8924_v40 = vpop.f32.mrb[24].mxu1 }
 0x3e7   : > { %v8925_v34 = vpop.f32.mrb[25].mxu1  ;;  %v9018_v12 = vpop.f32.mrb[32].mxu0 }
 0x3e8   : > { %v8926_v39 = vadd.f32 %v8925_v34, %v8924_v40  ;;  %v9019_v51 = vpop.f32.mrb[33].mxu0 }
 0x3e9   : > { %v9020_v59 = vadd.f32 %v9019_v51, %v9018_v12 }
 0x3ea   : > { %v8927_v35 = vpop.f32.mrb[26].mxu1 }
 0x3eb   : > { %v8928_v5 = vpop.f32.mrb[27].mxu1 }
 0x3ec   : > { %v8929_v17 = vadd.f32 %v8928_v5, %v8927_v35  ;;  %v9021_v6 = vpop.f32.mrb[34].mxu0 }
 0x3ed   : > { %v9022_v8 = vpop.f32.mrb[35].mxu0 }
 0x3ee   : > { %v9023_v44 = vadd.f32 %v9022_v8, %v9021_v6  ;;  %v8930_v10 = vpop.f32.mrb[28].mxu1 }
 0x3ef   : > { %v8931_v30 = vpop.f32.mrb[29].mxu1 }
 0x3f0   : > { %v8932_v60 = vadd.f32 %v8931_v30, %v8930_v10 }
 0x3f2   : > { %v8933_v26 = vpop.f32.mrb[30].mxu1 }
 0x3f3   : > { %v8934_v47 = vpop.f32.mrb[31].mxu1 }
 0x3f4   : > { %v8935_v46 = vadd.f32 %v8934_v47, %v8933_v26 }
 0x400   : > { %v9100_v11 = vpop.f32.mrb[36].mxu0 }
 0x401   : > { %v9101_v2 = vpop.f32.mrb[37].mxu0 }
 0x402   : > { %v9102_v31 = vadd.f32 %v9101_v2, %v9100_v11 }
 0x404   : > { %v9103_v56 = vpop.f32.mrb[38].mxu0 }
 0x405   : > { %v9104_v58 = vpop.f32.mrb[39].mxu0 }
 0x406   : > { %v9105_v40 = vadd.f32 %v9104_v58, %v9103_v56  ;;  %v8968_v34 = vpop.f32.mrb[32].mxu1 }
 0x407   : > { %v8969_v12 = vpop.f32.mrb[33].mxu1 }
 0x408   : > { %v8970_v51 = vadd.f32 %v8969_v12, %v8968_v34  ;;  %v9106_v33 = vpop.f32.mrb[40].mxu0 }
 0x409   : > { %v9107_v35 = vpop.f32.mrb[41].mxu0 }
 0x40a   : > { %v2542_v5 = vadd.f32 %v8970_v51, %v8926_v39  ;;  %v9108_v55 = vadd.f32 %v9107_v35, %v9106_v33  ;;  %v8971_v6 = vpop.f32.mrb[34].mxu1 }
 0x40b   : > { %v8972_v8 = vpop.f32.mrb[35].mxu1 }
 0x40c   : > { %v8973_v27 = vadd.f32 %v8972_v8, %v8971_v6  ;;  %v9109_v10 = vpop.f32.mrb[42].mxu0  ;;  %v2701_v30 = vadd.f32 %v9014_v18, %v2542_v5 }
 0x40d   : > { %v9110_v25 = vpop.f32.mrb[43].mxu0 }
 0x40e   : > { %v2549_v26 = vadd.f32 %v8973_v27, %v8929_v17  ;;  %v9111_v47 = vadd.f32 %v9110_v25, %v9109_v10  ;;  %v8974_v15 = vpop.f32.mrb[36].mxu1 }
 0x40f   : > { %v8975_v11 = vpop.f32.mrb[37].mxu1 }
 0x410   : > { %v8976_v2 = vadd.f32 %v8975_v11, %v8974_v15  ;;  %v2710_v19 = vadd.f32 %v9017_v48, %v2549_v26 }
 0x412   : > { %v2556_v58 = vadd.f32 %v8976_v2, %v8932_v60  ;;  %v8977_v56 = vpop.f32.mrb[38].mxu1 }
 0x413   : > { %v8978_v21 = vpop.f32.mrb[39].mxu1 }
 0x414   : > { %v8979_v34 = vadd.f32 %v8978_v21, %v8977_v56  ;;  %v2719_v12 = vadd.f32 %v9020_v59, %v2556_v58 }
 0x416   : > { %v2563_v45 = vadd.f32 %v8979_v34, %v8935_v46 }
 0x418   : > { %v2728_v39 = vadd.f32 %v9023_v44, %v2563_v45 }
 0x426   : > { %v9056_v33 = vpop.f32.mrb[40].mxu1 }
 0x427   : > { %v9057_v51 = vpop.f32.mrb[41].mxu1 }
 0x428   : > { %v9058_v35 = vadd.f32 %v9057_v51, %v9056_v33 }
 0x42a   : > { %v2836_v6 = vadd.f32 %v9058_v35, %v2701_v30  ;;  %v9059_v8 = vpop.f32.mrb[42].mxu1 }
 0x42b   : > { %v9060_v18 = vpop.f32.mrb[43].mxu1 }
 0x42c   : > { %v9061_v5 = vadd.f32 %v9060_v18, %v9059_v8  ;;  %v3037_v27 = vadd.f32 %v9102_v31, %v2836_v6 }
 0x42e   : > { %v2847_v25 = vadd.f32 %v9061_v5, %v2710_v19  ;;  %v9062_v17 = vpop.f32.mrb[44].mxu1 }
 0x42f   : > { %v9063_v10 = vpop.f32.mrb[45].mxu1 }
 0x430   : > { %v9064_v15 = vadd.f32 %v9063_v10, %v9062_v17  ;;  %v3044_v48 = vadd.f32 %v9105_v40, %v2847_v25 }
 0x432   : > { %v2858_v60 = vadd.f32 %v9064_v15, %v2719_v12  ;;  %v9065_v26 = vpop.f32.mrb[46].mxu1 }
 0x433   : > { %v9066_v11 = vpop.f32.mrb[47].mxu1 }
 0x434   : > { %v9067_v21 = vadd.f32 %v9066_v11, %v9065_v26  ;;  %v3051_v59 = vadd.f32 %v9108_v55, %v2858_v60 }
 0x436   : > { %v2869_v46 = vadd.f32 %v9067_v21, %v2728_v39 }
 0x438   : > { %v3058_v45 = vadd.f32 %v9111_v47, %v2869_v46 }
 0x446   : > { %v9144_v44 = vpop.f32.mrb[48].mxu1 }
 0x447   : > { %v9145_v2 = vpop.f32.mrb[49].mxu1 }
 0x448   : > { %v9146_v58 = vadd.f32 %v9145_v2, %v9144_v44 }
 0x44a   : > { %v3162_v30 = vadd.f32 %v9146_v58, %v3037_v27  ;;  %v9147_v56 = vpop.f32.mrb[50].mxu1 }
 0x44b   : > { %v9148_v34 = vpop.f32.mrb[51].mxu1 }
 0x44c   : > { %v3187_v33 = vand.u32 4294901760, %v3162_v30  ;;  %v9149_v31 = vadd.f32 %v9148_v34, %v9147_v56 }
 0x44e   : > { %v3297_v19 = vsub.f32 %v3162_v30, %v3187_v33  ;;  %v3169_v51 = vadd.f32 %v9149_v31, %v3044_v48  ;;  %v9150_v35 = vpop.f32.mrb[52].mxu1 }
 0x44f   : > { %v9151_v6 = vpop.f32.mrb[53].mxu1 }
 0x450   : > { %v3190_v40 = vand.u32 4294901760, %v3169_v51  ;;  %v9152_v12 = vadd.f32 %v9151_v6, %v9150_v35  ;;  %v3298_v8 = vand.u32 4294901760, %v3297_v19 }
 0x452   : > { %v12703_v18 = vpack.c.bf16 %v3190_v40, %v3187_v33  ;;  %v3304_v55 = vsub.f32 %v3169_v51, %v3190_v40  ;;  %v3176_v39 = vadd.f32 %v9152_v12, %v3051_v59  ;;  %v9153_v47 = vpop.f32.mrb[54].mxu1  ;;  %v3299_v27 = vsub.f32 %v3297_v19, %v3298_v8 }
 0x453   : > { %v9154_v5 = vpop.f32.mrb[55].mxu1 }
 0x454   : > { %v3193_v25 = vand.u32 4294901760, %v3176_v39  ;;  %v9155_v17 = vadd.f32 %v9154_v5, %v9153_v47  ;;  %10333 = vmatprep.subr.bf16.mxu1 %v12703_v18  ;;  %v3305_v10 = vand.u32 4294901760, %v3304_v55  ;;  %v10348_v15 = vpack.c.bf16 %v3304_v55, %v3297_v19 }
 0x455   : > { %10335 = vmatpush3.bf16.msra.mxu1 %v12703_v18  ;;  %v3300_v46 = vand.u32 4294901760, %v3299_v27 }
 0x456   : > { %v3311_v48 = vsub.f32 %v3176_v39, %v3193_v25  ;;  %v3183_v60 = vadd.f32 %v9155_v17, %v3058_v45  ;;  %v3306_v26 = vsub.f32 %v3304_v55, %v3305_v10  ;;  %v10364_v11 = vpack.c.bf16 %v3305_v10, %v3298_v8 }
 0x458   : > { %v3196_v21 = vand.u32 4294901760, %v3183_v60  ;;  %v3307_v44 = vand.u32 4294901760, %v3306_v26  ;;  %v3312_v2 = vand.u32 4294901760, %v3311_v48 }
 0x45a   : > { %v10336_v59 = vpack.c.bf16 %v3196_v21, %v3193_v25  ;;  %v3318_v58 = vsub.f32 %v3183_v60, %v3196_v21  ;;  %v10340_v30 = vpack.c.bf16 %v3307_v44, %v3300_v46  ;;  %v3313_v56 = vsub.f32 %v3311_v48, %v3312_v2 }
 0x45c   : > { %10337 = vmatprep.subr.bf16.mxu1 %v10336_v59  ;;  %10341 = vmatprep.subr.bf16.mxu0 %v10340_v30  ;;  %v3319_v34 = vand.u32 4294901760, %v3318_v58  ;;  %v10352_v33 = vpack.c.bf16 %v3318_v58, %v3311_v48  ;;  %v3314_v51 = vand.u32 4294901760, %v3313_v56 }
 0x45d   : > { %10339 = vmatpush3.bf16.msra.mxu1 %v10336_v59  ;;  %10343 = vmatpush3.bf16.msra.mxu0 %v10340_v30 }
 0x45e   : > { %v3320_v31 = vsub.f32 %v3318_v58, %v3319_v34  ;;  %v10368_v19 = vpack.c.bf16 %v3319_v34, %v3312_v2 }
 0x460   : > { %v3321_v45 = vand.u32 4294901760, %v3320_v31  ;;  %9825 = vmatmul.mubr.f32.vlgmr.msra.gmra.mrb[56].mxu1 %v12409_v3 }
 0x461   : > { %9827 = vmatprep.mubr.f32.mxu1 %v12413_v50 }
 0x462   : > { %v10344_v35 = vpack.c.bf16 %v3321_v45, %v3314_v51 }
 0x464   : > { %10345 = vmatprep.subr.bf16.mxu0 %v10344_v35  ;;  %9828 = vmatmul.mubr.f32.gmra.mrb[58].mxu1 %v12416_v0 }
 0x465   : > { %10347 = vmatpush3.bf16.msra.mxu0 %v10344_v35 }
 0x466   : > { %10349 = vmatprep.subr.bf16.mxu0 %v10348_v15 }
 0x468   : > { %9839 = vmatmul.mubr.f32.vlgmr.msra.gmra.mrb[44].mxu0 %v12376_v54 }
 0x469   : > { %10351 = vmatpush3.bf16.msra.mxu0 %v10348_v15  ;;  %9841 = vmatprep.mubr.f32.mxu0 %v12379_v61 }
 0x46a   : > { %10353 = vmatprep.subr.bf16.mxu0 %v10352_v33 }
 0x46c   : > { %9842 = vmatmul.mubr.f32.gmra.mrb[46].mxu0 %v12384_v4 }
 0x46d   : > { %10355 = vmatpush3.bf16.msra.mxu0 %v10352_v33  ;;  %9852 = vmatprep.mubr.f32.mxu0 %v12355_v7 }
 0x46e   : > { %10357 = vmatprep.subr.bf16.mxu0 %v12703_v18 }
 0x470   : > { %9853 = vmatmul.mubr.f32.vlgmr.msra.gmra.mrb[44].mxu0 %v12382_v37 }
 0x471   : > { %10359 = vmatpush3.bf16.msra.mxu0 %v12703_v18  ;;  %9855 = vmatprep.mubr.f32.mxu0 %v12387_v16 }
 0x472   : > { %10361 = vmatprep.subr.bf16.mxu0 %v10336_v59 }
 0x474   : > { %9856 = vmatmul.mubr.f32.gmra.mrb[46].mxu0 %v12395_v36 }
 0x475   : > { %10363 = vmatpush3.bf16.msra.mxu0 %v10336_v59  ;;  %9866 = vmatprep.mubr.f32.mxu0 %v12358_v9 }
 0x476   : > { %10365 = vmatprep.subr.bf16.mxu0 %v10364_v11 }
 0x478   : > { %9867 = vmatmul.mubr.f32.vlgmr.msra.gmra.mrb[44].mxu0 %v12392_v24 }
 0x479   : > { %10367 = vmatpush3.bf16.msra.mxu0 %v10364_v11  ;;  %9869 = vmatprep.mubr.f32.mxu0 %v12400_v43 }
 0x47a   : > { %10369 = vmatprep.subr.bf16.mxu0 %v10368_v19 }
 0x47c   : > { %9870 = vmatmul.mubr.f32.gmra.mrb[46].mxu0 %v12405_v57 }
 0x47d   : > { %10371 = vmatpush3.bf16.msra.mxu0 %v10368_v19  ;;  %9880 = vmatprep.mubr.f32.mxu0 %v12352_v20 }
 0x47e   : > { %10373 = vmatprep.subr.bf16.mxu0 %v12703_v18 }
 0x480   : > { %9881 = vmatmul.mubr.f32.vlgmr.msra.gmra.mrb[44].mxu0 %v12376_v54 }
 0x481   : > { %10375 = vmatpush3.bf16.msra.mxu0 %v12703_v18  ;;  %9883 = vmatprep.mubr.f32.mxu0 %v12379_v61 }
 0x482   : > { %10377 = vmatprep.subr.bf16.mxu0 %v10336_v59 }
 0x484   : > { %9884 = vmatmul.mubr.f32.gmra.mrb[46].mxu0 %v12384_v4 }
 0x485   : > { %10379 = vmatpush3.bf16.msra.mxu0 %v10336_v59  ;;  %9894 = vmatprep.mubr.f32.mxu0 %v12352_v20 }
 0x488   : > { %9895 = vmatmul.mubr.f32.vlgmr.msra.gmra.mrb[44].mxu0 %v12376_v54 }
 0x489   : > { %9897 = vmatprep.mubr.f32.mxu0 %v12379_v61 }
 0x48c   : > { %9898 = vmatmul.mubr.f32.gmra.mrb[46].mxu0 %v12384_v4 }
 0x533   : > { %v9826_v7 = vpop.f32.mrb[56].mxu1 }
 0x534   : > { %v3261_v9 = vpop.f32.mrb[57].mxu1 }
 0x537   : > { %v9829_v37 = vpop.f32.mrb[58].mxu1 }
 0x538   : > { %v3281_v16 = vpop.f32.mrb[59].mxu1 }
 0x55b   : > { %v9896_v24 = vpop.f32.mrb[44].mxu0 }
 0x55c   : > { %v10908_v36 = vadd.f32 %v9896_v24, %v9826_v7  ;;  %v3778_v43 = vpop.f32.mrb[45].mxu0  ;;  %v392_v7 = vld [vmem:[%s14097_s2 + $0x18] sm:$0xff]  ;;  %v393_v24 = vld [vmem:[%s14098_s3] sm:$0xff] }
 0x55d   : > { %v10909_v57 = vadd.f32 %v3778_v43, %v3261_v9  ;;  %v391_v9 = vld [vmem:[%s14097_s2 + $0x10] sm:$0xff] }
 0x55e   : > { %v3801_v3 = vmul.f32 0.0019569471, %v10908_v36  ;;  %v395_v36 = vld [vmem:[%s14098_s3 + $0x10] sm:$0xff] }
 0x55f   : > { %v3800_v50 = vmul.f32 0.0019569471, %v10909_v57  ;;  %v9899_v0 = vpop.f32.mrb[46].mxu0  ;;  %v399_v57 = vsub.f32 1.0, %v395_v36 }
 0x560   : > { %v3805_v6 = vmax.f32 %v3801_v3, 0.0  ;;  %v10910_v40 = vadd.f32 %v9899_v0, %v9829_v37  ;;  %v3790_v20 = vpop.f32.mrb[47].mxu0  ;;  %v394_v37 = vld [vmem:[%s14098_s3 + $0x8] sm:$0xff]  ;;  %v14305_v0 = vmov 0.0  }
 0x561   : > { %v3804_v12 = vmax.f32 %v3800_v50, 0.0  ;;  %v10911_v54 = vadd.f32 %v3790_v20, %v3281_v16  ;;  %v396_v16 = vld [vmem:[%s14098_s3 + $0x18] sm:$0xff]  ;;  %v398_v3 = vsub.f32 1.0, %v394_v37  ;;  %v397_v50 = vsub.f32 1.0, %v393_v24  ;;  %4126 = vmatprep.mubr.f32.mxu1 %v14305_v0  ;;  %4891 = vmatprep.mubr.f32.mxu0 %v14305_v0 }
 0x562   : > { %11108 = vrsqrt.f32 %v3805_v6  ;;  %v3803_v61 = vmul.f32 0.0019569471, %v10910_v40  ;;  %vm3817_vm1 = vcmp.eq.f32.partialorder %v3805_v6, inf  ;;  %v3820_v5 = vand.u32 2147483648, %v3805_v6  ;;  %v3875_v40 = vpop.permute.xlu0 %3874 }
 0x563   : > { %11110 = vrsqrt.f32 %v3804_v12  ;;  %v3802_v4 = vmul.f32 0.0019569471, %v10911_v54  ;;  %vm3819_vm2 = vcmp.eq.f32.partialorder %v3805_v6, 0.0  ;;  %vm3810_vm3 = vcmp.eq.f32.partialorder %v3804_v12, inf }
 0x564   : > { %v3807_v8 = vmax.f32 %v3803_v61, 0.0  ;;  %v3813_v27 = vand.u32 2147483648, %v3804_v12  ;;  %vm3812_vm4 = vcmp.eq.f32.partialorder %v3804_v12, 0.0  ;;  %v400_v43 = vsub.f32 1.0, %v396_v16 }
 0x565   : > { %v3806_v18 = vmax.f32 %v3802_v4, 0.0 }
 0x566   : > { %11112 = vrsqrt.f32 %v3807_v8  ;;  %vm3831_vm5 = vcmp.eq.f32.partialorder %v3807_v8, inf  ;;  %v3834_v44 = vand.u32 2147483648, %v3807_v8  ;;  %vm3833_vm6 = vcmp.eq.f32.partialorder %v3807_v8, 0.0 }
 0x567   : > { %11114 = vrsqrt.f32 %v3806_v18  ;;  %vm3824_vm7 = vcmp.eq.f32.partialorder %v3806_v18, inf  ;;  %v3827_v58 = vand.u32 2147483648, %v3806_v18  ;;  %vm3826_vm8 = vcmp.eq.f32.partialorder %v3806_v18, 0.0 }
 0x56c   : > { %v11109_v55 = vpop.eup %11108 }
 0x56d   : > { %v11111_v39 = vpop.eup %11110  ;;  %v3816_v47 = vmul.f32 %v11109_v55, %v3805_v6 }
 0x56e   : > { %v3809_v25 = vmul.f32 %v11111_v39, %v3804_v12 }
 0x56f   : > { %v3818_v17 = vsel %vm3817_vm1, %v3805_v6, %v3816_v47  ;;  %v3880_v6 = vpop.permute.xlu1 %3879 }
 0x570   : > { %v3821_v10 = vsel %vm3819_vm2, %v3820_v5, %v3818_v17  ;;  %v3811_v15 = vsel %vm3810_vm3, %v3804_v12, %v3809_v25  ;;  %v11113_v26 = vpop.eup %11112  ;;  %v3885_v12 = vpop.permute.xlu0 %3884  ;;  %vm8322_vm3 = vcmask 7168  }
 0x571   : > { %v3837_v48 = vadd.f32 1e-10, %v3821_v10  ;;  %v3814_v60 = vsel %vm3812_vm4, %v3813_v27, %v3811_v15  ;;  %v11115_v21 = vpop.eup %11114  ;;  %v3830_v46 = vmul.f32 %v11113_v26, %v3807_v8 }
 0x572   : > { %v3836_v11 = vadd.f32 1e-10, %v3814_v60  ;;  %v3823_v2 = vmul.f32 %v11115_v21, %v3806_v18 }
 0x573   : > { %11116 = vrcp.f32 %v3837_v48  ;;  %v3832_v59 = vsel %vm3831_vm5, %v3807_v8, %v3830_v46  ;;  %v3890_v20 = vpop.permute.xlu1 %3889  ;;  %v14557_v46 = vld [vmem:[#allocation40_spill] sm:$0xff] }
 0x574   : > { %11118 = vrcp.f32 %v3836_v11  ;;  %v3835_v30 = vsel %vm3833_vm6, %v3834_v44, %v3832_v59  ;;  %v3825_v56 = vsel %vm3824_vm7, %v3806_v18, %v3823_v2  ;;  %v3903_v61 = vpop.permute.xlu0 %3902  ;;  %v14558_v44 = vld [vmem:[#allocation46_spill] sm:$0xff] }
 0x575   : > { %v3839_v34 = vadd.f32 1e-10, %v3835_v30  ;;  %v3828_v33 = vsel %vm3826_vm8, %v3827_v58, %v3825_v56  ;;  %v14559_v58 = vld [vmem:[#allocation30_spill] sm:$0xff]  ;;  %v14560_v30 = vld [vmem:[#allocation41_spill] sm:$0xff] }
 0x576   : > { %v3838_v31 = vadd.f32 1e-10, %v3828_v33 }
 0x577   : > { %11120 = vrcp.f32 %v3839_v34  ;;  %v3908_v54 = vpop.permute.xlu1 %3907 }
 0x578   : > { %11122 = vrcp.f32 %v3838_v31 }
 0x57d   : > { %v11117_v19 = vpop.eup %11116 }
 0x57e   : > { %v11119_v51 = vpop.eup %11118  ;;  %3851 = vperm.xlu1 %11107, %v11117_v19  }
 0x57f   : > { %3846 = vperm.xlu0 %11106, %v11119_v51  }
 0x581   : > { %v11121_v45 = vpop.eup %11120 }
 0x582   : > { %v11123_v35 = vpop.eup %11122  ;;  %3861 = vperm.xlu1 %11107, %v11121_v45  }
 0x583   : > { %3856 = vperm.xlu0 %11106, %v11123_v35  }
 0x586   : > { %3917 = vperm.xlu1 %11107, %v392_v7  }
 0x587   : > { %3912 = vperm.xlu0 %11106, %v391_v9  }
 0x58a   : > { %3991 = vperm.xlu1 %11107, %v394_v37  }
 0x58b   : > { %3986 = vperm.xlu0 %11106, %v393_v24  }
 0x58e   : > { %4029 = vperm.xlu1 %11107, %v400_v43  }
 0x58f   : > { %4024 = vperm.xlu0 %11106, %v399_v57  }
 0x592   : > { %4001 = vperm.xlu1 %11107, %v396_v16  }
 0x593   : > { %3996 = vperm.xlu0 %11106, %v395_v36  }
 0x596   : > { %4019 = vperm.xlu1 %11107, %v398_v3  }
 0x597   : > { %4014 = vperm.xlu0 %11106, %v397_v50  }
 0x5fd   : > { %v3852_v4 = vpop.permute.xlu1 %3851 }
 0x5fe   : > { %v3866_v8 = vmul.f32 %v3852_v4, %v12494_v49  ;;  %v3867_v18 = vmul.f32 %v3852_v4, %v12497_v1  ;;  %v3847_v55 = vpop.permute.xlu0 %3846 }
 0x5ff   : > { %v3864_v39 = vmul.f32 %v3847_v55, %v12480_v63  ;;  %v3865_v47 = vmul.f32 %v3847_v55, %v12483_v42 }
 0x600   : > { %v3894_v5 = vmul.f32 %v3880_v6, %v3866_v8  ;;  %v3895_v25 = vmul.f32 %v3880_v6, %v3867_v18 }
 0x601   : > { %v3892_v17 = vmul.f32 %v3875_v40, %v3864_v39  ;;  %v3893_v27 = vmul.f32 %v3875_v40, %v3865_v47  ;;  %v3862_v26 = vpop.permute.xlu1 %3861  ;;  %v409_v40 = vld [vmem:[%s14101_s6] sm:$0xff] }
 0x602   : > { %v3922_v10 = vadd.f32 %v3908_v54, %v3894_v5  ;;  %v3923_v15 = vadd.f32 %v3908_v54, %v3895_v25  ;;  %v3870_v49 = vmul.f32 %v3862_v26, %v14557_v46  ;;  %v3871_v1 = vmul.f32 %v3862_v26, %v14558_v44  ;;  %v3857_v2 = vpop.permute.xlu0 %3856 }
 0x603   : > { %v3920_v48 = vadd.f32 %v3903_v61, %v3892_v17  ;;  %v3921_v60 = vadd.f32 %v3903_v61, %v3893_v27  ;;  %v3868_v42 = vmul.f32 %v3857_v2, %v14559_v58  ;;  %v3869_v56 = vmul.f32 %v3857_v2, %v14560_v30 }
 0x604   : > { %v8567_v11 = vmul.f32 -1.442695, %v3922_v10  ;;  %v8568_v21 = vmul.f32 -1.442695, %v3923_v15  ;;  %v3898_v34 = vmul.f32 %v3890_v20, %v3870_v49  ;;  %v3899_v33 = vmul.f32 %v3890_v20, %v3871_v1 }
 0x605   : > { %v8565_v59 = vmul.f32 -1.442695, %v3920_v48  ;;  %v8566_v63 = vmul.f32 -1.442695, %v3921_v60  ;;  %v3918_v31 = vpop.permute.xlu1 %3917  ;;  %v3896_v19 = vmul.f32 %v3885_v12, %v3868_v42  ;;  %v3897_v51 = vmul.f32 %v3885_v12, %v3869_v56  ;;  %v410_v60 = vld [vmem:[%s14101_s6 + $0x8] sm:$0xff]  ;;  %v11175_v42 = vld [vmem:[%s11797_s24 + $0x10] sm:$0xff] }
 0x606   : > { %11124 = vpow2.f32 %v8567_v11  ;;  %v3926_v45 = vadd.f32 %v3918_v31, %v3898_v34  ;;  %v3927_v35 = vadd.f32 %v3918_v31, %v3899_v33  ;;  %v3913_v7 = vpop.permute.xlu0 %3912  ;;  %v4049_v18 = vsel %vm1489_vm0, %v409_v40, 0  ;;  %v11176_v56 = vld [vmem:[%s11797_s24 + $0x18] sm:$0xff]  ;;  %v11177_v33 = vld [vmem:[%s11797_s24] sm:$0xff] }
 0x607   : > { %11126 = vpow2.f32 %v8568_v21  ;;  %v3924_v9 = vadd.f32 %v3913_v7, %v3896_v19  ;;  %v3925_v37 = vadd.f32 %v3913_v7, %v3897_v51  ;;  %v12765_v25 = vand.u32 4294901760, %v4049_v18  ;;  %v11178_v19 = vld [vmem:[%s11797_s24 + $0x8] sm:$0xff] }
 0x608   : > { %11128 = vpow2.f32 %v8565_v59  ;;  %v8571_v16 = vmul.f32 -1.442695, %v3926_v45  ;;  %v8572_v24 = vmul.f32 -1.442695, %v3927_v35  ;;  %v4052_v21 = vsel %vm1489_vm0, %v410_v60, 0 }
 0x609   : > { %11130 = vpow2.f32 %v8566_v63  ;;  %v8569_v36 = vmul.f32 -1.442695, %v3924_v9  ;;  %v8570_v43 = vmul.f32 -1.442695, %v3925_v37  ;;  %v3992_v6 = vpop.permute.xlu1 %3991  ;;  %v12771_v11 = vsub.f32 %v4049_v18, %v12765_v25 }
 0x60a   : > { %11132 = vpow2.f32 %v8571_v16  ;;  %v3987_v54 = vpop.permute.xlu0 %3986  ;;  %v12775_v63 = vand.u32 4294901760, %v4052_v21 }
 0x60b   : > { %11134 = vpow2.f32 %v8572_v24  ;;  %v4129_v59 = vand.u32 4294901760, %v12771_v11 }
 0x60c   : > { %11136 = vpow2.f32 %v8569_v36  ;;  %v12787_v9 = vsub.f32 %v4052_v21, %v12775_v63  ;;  %v11179_v36 = vld [vmem:[%s11797_s24 + $0x30] sm:$0xff] }
 0x60d   : > { %11138 = vpow2.f32 %v8570_v43  ;;  %v4030_v5 = vpop.permute.xlu1 %4029  ;;  %v12784_v7 = vsub.f32 %v12771_v11, %v4129_v59 }
 0x60e   : > { %v4025_v10 = vpop.permute.xlu0 %4024 }
 0x610   : > { %v11125_v57 = vpop.eup %11124 }
 0x611   : > { %v11127_v3 = vpop.eup %11126  ;;  %v3954_v50 = vadd.f32 1.0, %v11125_v57  ;;  %v4002_v49 = vpop.permute.xlu1 %4001 }
 0x612   : > { %v11129_v20 = vpop.eup %11128  ;;  %v3955_v12 = vadd.f32 1.0, %v11127_v3  ;;  %v3997_v1 = vpop.permute.xlu0 %3996 }
 0x613   : > { %v11131_v61 = vpop.eup %11130  ;;  %11140 = vrcp.f32 %v3954_v50  ;;  %v3952_v4 = vadd.f32 1.0, %v11129_v20  ;;  %v11180_v20 = vld [vmem:[%s11797_s24 + $0x38] sm:$0xff] }
 0x614   : > { %11142 = vrcp.f32 %v3955_v12  ;;  %v3953_v8 = vadd.f32 1.0, %v11131_v61  ;;  %v11133_v55 = vpop.eup %11132 }
 0x615   : > { %11144 = vrcp.f32 %v3952_v4  ;;  %v11135_v39 = vpop.eup %11134  ;;  %v3958_v47 = vadd.f32 1.0, %v11133_v55  ;;  %v4020_v35 = vpop.permute.xlu1 %4019 }
 0x616   : > { %11146 = vrcp.f32 %v3953_v8  ;;  %v11137_v17 = vpop.eup %11136  ;;  %v3959_v27 = vadd.f32 1.0, %v11135_v39  ;;  %v4015_v3 = vpop.permute.xlu0 %4014  ;;  %v11181_v39 = vld [vmem:[%s11797_s24 + $0x20] sm:$0xff] }
 0x617   : > { %v11139_v15 = vpop.eup %11138  ;;  %11148 = vrcp.f32 %v3958_v47  ;;  %v3956_v48 = vadd.f32 1.0, %v11137_v17 }
 0x618   : > { %11150 = vrcp.f32 %v3959_v27  ;;  %v3957_v26 = vadd.f32 1.0, %v11139_v15  ;;  %v11182_v15 = vld [vmem:[%s11797_s24 + $0x28] sm:$0xff]  ;;  %s11252_s24 = smov 1  }
 0x619   : > { %11152 = vrcp.f32 %v3956_v48 }
 0x61a   : > { %11154 = vrcp.f32 %v3957_v26 }
 0x61d   : > { %v11141_v46 = vpop.eup %11140 }
 0x61e   : > { %v11143_v44 = vpop.eup %11142  ;;  %v3978_v30 = vmul.f32 %v11175_v42, %v11141_v46 }
 0x61f   : > { %v11145_v2 = vpop.eup %11144  ;;  %v3979_v34 = vmul.f32 %v11176_v56, %v11143_v44 }
 0x620   : > { %v11147_v58 = vpop.eup %11146  ;;  %v3976_v31 = vmul.f32 %v11177_v33, %v11145_v2  ;;  %v4006_v16 = vmul.f32 %v3992_v6, %v3978_v30  ;;  %v4034_v57 = vmul.f32 %v4020_v35, %v3978_v30 }
 0x621   : > { %v3977_v51 = vmul.f32 %v11178_v19, %v11147_v58  ;;  %v11149_v45 = vpop.eup %11148  ;;  %v4007_v24 = vmul.f32 %v3992_v6, %v3979_v34  ;;  %v4035_v61 = vmul.f32 %v4020_v35, %v3979_v34 }
 0x622   : > { %v11151_v37 = vpop.eup %11150  ;;  %v3982_v43 = vmul.f32 %v11179_v36, %v11149_v45  ;;  %v4004_v40 = vmul.f32 %v3987_v54, %v3976_v31  ;;  %v4032_v4 = vmul.f32 %v4015_v3, %v3976_v31 }
 0x623   : > { %v11153_v50 = vpop.eup %11152  ;;  %v3983_v12 = vmul.f32 %v11180_v20, %v11151_v37  ;;  %v4005_v18 = vmul.f32 %v3987_v54, %v3977_v51  ;;  %v4033_v60 = vmul.f32 %v4015_v3, %v3977_v51 }
 0x624   : > { %v11155_v8 = vpop.eup %11154  ;;  %v4038_v55 = vmul.f32 %v4030_v5, %v3982_v43  ;;  %v3980_v47 = vmul.f32 %v11181_v39, %v11153_v50  ;;  %v4010_v17 = vmul.f32 %v4002_v49, %v3982_v43 }
 0x625   : > { %v4039_v27 = vmul.f32 %v4030_v5, %v3983_v12  ;;  %v3981_v6 = vmul.f32 %v11182_v15, %v11155_v8  ;;  %v4011_v48 = vmul.f32 %v4002_v49, %v3983_v12  ;;  %v4131_v15 = vand.u32 4294901760, %v12784_v7 }
 0x626   : > { %v4042_v26 = vadd.f32 %v4038_v55, %v4006_v16  ;;  %v4036_v21 = vmul.f32 %v4025_v10, %v3980_v47  ;;  %v4008_v46 = vmul.f32 %v3997_v1, %v3980_v47  ;;  %v4046_v44 = vadd.f32 %v4034_v57, %v4010_v17 }
 0x627   : > { %v4043_v2 = vadd.f32 %v4039_v27, %v4007_v24  ;;  %v4037_v58 = vmul.f32 %v4025_v10, %v3981_v6  ;;  %v4009_v42 = vmul.f32 %v3997_v1, %v3981_v6  ;;  %v4047_v30 = vadd.f32 %v4035_v61, %v4011_v48 }
 0x628   : > { %v4060_v56 = vand.u32 4294901760, %v4042_v26  ;;  %v4040_v34 = vadd.f32 %v4036_v21, %v4004_v40  ;;  %v4068_v54 = vand.u32 4294901760, %v4046_v44  ;;  %v4044_v33 = vadd.f32 %v4032_v4, %v4008_v46 }
 0x629   : > { %v4058_v31 = vand.u32 4294901760, %v4043_v2  ;;  %v4041_v19 = vadd.f32 %v4037_v58, %v4005_v18  ;;  %v4066_v45 = vand.u32 4294901760, %v4047_v30  ;;  %v4045_v5 = vadd.f32 %v4033_v60, %v4009_v42 }
 0x62a   : > { %v12793_v35 = vsub.f32 %v4042_v26, %v4060_v56  ;;  %v4056_v49 = vand.u32 4294901760, %v4040_v34  ;;  %v12795_v51 = vsub.f32 %v4046_v44, %v4068_v54  ;;  %v4064_v37 = vand.u32 4294901760, %v4044_v33 }
 0x62b   : > { %v12797_v16 = vsub.f32 %v4043_v2, %v4058_v31  ;;  %v4054_v24 = vand.u32 4294901760, %v4041_v19  ;;  %v4062_v10 = vand.u32 4294901760, %v4045_v5  ;;  %v4140_v1 = vand.u32 4294901760, %v12787_v9 }
 0x62c   : > { %v4169_v36 = vand.u32 4294901760, %v12793_v35  ;;  %v12801_v43 = vsub.f32 %v4040_v34, %v4056_v49  ;;  %v12803_v57 = vsub.f32 %v4047_v30, %v4066_v45  ;;  %v12805_v3 = vsub.f32 %v4044_v33, %v4064_v37 }
 0x62d   : > { %v12807_v50 = vsub.f32 %v4041_v19, %v4054_v24  ;;  %v12809_v40 = vsub.f32 %v4045_v5, %v4062_v10  ;;  %v12811_v20 = vpack.c.bf16 %v4058_v31, %v4054_v24  ;;  %v12813_v12 = vpack.c.bf16 %v4060_v56, %v4056_v49 }
 0x62e   : > { %v4157_v61 = vand.u32 4294901760, %v12801_v43  ;;  %v4193_v4 = vand.u32 4294901760, %v12795_v51  ;;  %v4181_v8 = vand.u32 4294901760, %v12805_v3  ;;  %v12818_v18 = vpack.c.bf16 %v4066_v45, %v4062_v10 }
 0x62f   : > { %10381 = vmatprep.subr.bf16.mxu1 %v12811_v20  ;;  %v4151_v55 = vand.u32 4294901760, %v12807_v50  ;;  %v4163_v39 = vand.u32 4294901760, %v12797_v16  ;;  %v4170_v47 = vsub.f32 %v12793_v35, %v4169_v36  ;;  %v4175_v17 = vand.u32 4294901760, %v12809_v40 }
 0x630   : > { %10383 = vmatpush1.bf16.msra.mxu1 %v12813_v12  ;;  %v12828_v27 = vpack.c.bf16 %v4068_v54, %v4064_v37  ;;  %v4158_v6 = vsub.f32 %v12801_v43, %v4157_v61  ;;  %v4187_v48 = vand.u32 4294901760, %v12803_v57  ;;  %v4182_v7 = vsub.f32 %v12805_v3, %v4181_v8 }
 0x631   : > { %10385 = vmatprep.subr.bf16.mxu1 %v12818_v18  ;;  %v4152_v60 = vsub.f32 %v12807_v50, %v4151_v55  ;;  %v4164_v26 = vsub.f32 %v12797_v16, %v4163_v39  ;;  %v4171_v21 = vand.u32 4294901760, %v4170_v47  ;;  %v4176_v46 = vsub.f32 %v12809_v40, %v4175_v17 }
 0x632   : > { %v4159_v44 = vand.u32 4294901760, %v4158_v6  ;;  %v4188_v2 = vsub.f32 %v12803_v57, %v4187_v48  ;;  %v4194_v58 = vsub.f32 %v12795_v51, %v4193_v4  ;;  %v4141_v34 = vsub.f32 %v12787_v9, %v4140_v1 }
 0x633   : > { %v4153_v42 = vand.u32 4294901760, %v4152_v60  ;;  %v4165_v30 = vand.u32 4294901760, %v4164_v26  ;;  %v4177_v56 = vand.u32 4294901760, %v4176_v46  ;;  %v4183_v19 = vand.u32 4294901760, %v4182_v7 }
 0x634   : > { %10387 = vmatpush1.bf16.msra.mxu1 %v12828_v27  ;;  %v10390_v54 = vpack.c.bf16 %v4171_v21, %v4159_v44  ;;  %v4189_v33 = vand.u32 4294901760, %v4188_v2  ;;  %v4195_v45 = vand.u32 4294901760, %v4194_v58  ;;  %v4142_v49 = vand.u32 4294901760, %v4141_v34 }
 0x635   : > { %v10388_v31 = vpack.c.bf16 %v4165_v30, %v4153_v42  ;;  %v10396_v24 = vpack.c.bf16 %v12797_v16, %v12807_v50  ;;  %v10398_v10 = vpack.c.bf16 %v12793_v35, %v12801_v43  ;;  %v10400_v47 = vpack.c.bf16 %v12803_v57, %v12809_v40  ;;  %v418_v43 = vld [vmem:[%s14103_s8 + $0x18] sm:$0xff] }
 0x636   : > { %v10392_v5 = vpack.c.bf16 %v4189_v33, %v4177_v56  ;;  %v10394_v37 = vpack.c.bf16 %v4195_v45, %v4183_v19  ;;  %v10412_v16 = vpack.c.bf16 %v4163_v39, %v4151_v55  ;;  %v10414_v57 = vpack.c.bf16 %v4169_v36, %v4157_v61 }
 0x637   : > { %4132 = vmatmul.mubr.f32.vlgmr.msra.gmra.mrb[60].mxu1 %v4131_v15  ;;  %10389 = vmatprep.subr.bf16.mxu1 %v10388_v31  ;;  %v10402_v15 = vpack.c.bf16 %v12795_v51, %v12805_v3  ;;  %v10416_v50 = vpack.c.bf16 %v4187_v48, %v4175_v17  ;;  %v10418_v40 = vpack.c.bf16 %v4193_v4, %v4181_v8  ;;  %v5640_v61 = vsel %vm5629_vm9, %v418_v43, 0  ;;  %v4656_v43 = vld [vmem:[%s14104_s9 + $0x8] sm:$0xff] }
 0x638   : > { %10391 = vmatpush1.bf16.msra.mxu1 %v10390_v54  ;;  %4137 = vmatprep.mubr.f32.mxu1 %v14305_v0  ;;  %v12936_v17 = vand.u32 4294901760, %v5640_v61 }
 0x639   : > { %10393 = vmatprep.subr.bf16.mxu1 %v10392_v5 }
 0x63a   : > { %v12951_v44 = vsub.f32 %v5640_v61, %v12936_v17  ;;  %v4668_v61 = vld [vmem:[%s14104_s9 + $0x10] sm:$0xff] }
 0x63b   : > { %4143 = vmatmul.mubr.f32.gmra.mrb[62].mxu1 %v4142_v49 }
 0x63c   : > { %10395 = vmatpush1.bf16.msra.mxu1 %v10394_v37  ;;  %4253 = vmatprep.mubr.f32.mxu1 %v14305_v0  ;;  %v5744_v34 = vand.u32 4294901760, %v12951_v44  ;;  %v401_v37 = vld [vmem:[%s14099_s4] sm:$0xff] }
 0x63d   : > { %10397 = vmatprep.subr.bf16.mxu1 %v10396_v24  ;;  %v402_v24 = vld [vmem:[%s14099_s4 + $0x8] sm:$0xff] }
 0x63e   : > { %v5745_v45 = vsub.f32 %v12951_v44, %v5744_v34 }
 0x63f   : > { %4255 = vmatmul.mubr.f32.vlgmr.msra.gmra.mrb[60].mxu1 %v12765_v25 }
 0x640   : > { %10399 = vmatpush1.bf16.msra.mxu1 %v10398_v10  ;;  %4260 = vmatprep.mubr.f32.mxu1 %v14305_v0  ;;  %v5746_v49 = vand.u32 4294901760, %v5745_v45  ;;  %v403_v10 = vld [vmem:[%s14099_s4 + $0x10] sm:$0xff] }
 0x641   : > { %10401 = vmatprep.subr.bf16.mxu1 %v10400_v47  ;;  %v404_v47 = vld [vmem:[%s14099_s4 + $0x18] sm:$0xff] }
 0x643   : > { %4262 = vmatmul.mubr.f32.gmra.mrb[62].mxu1 %v12775_v63 }
 0x644   : > { %10403 = vmatpush1.bf16.msra.mxu1 %v10402_v15  ;;  %4348 = vmatprep.mubr.f32.mxu1 %v14305_v0  ;;  %v4650_v15 = vlaneseq }
 0x645   : > { %10405 = vmatprep.subr.bf16.mxu1 %v12811_v20 }
 0x647   : > { %4351 = vmatmul.mubr.f32.vlgmr.msra.gmra.mrb[60].mxu1 %v12771_v11  ;;  %v415_v11 = vld [vmem:[%s14103_s8] sm:$0xff] }
 0x648   : > { %10407 = vmatpush1.bf16.msra.mxu1 %v12813_v12  ;;  %4356 = vmatprep.mubr.f32.mxu1 %v14305_v0 }
 0x649   : > { %10409 = vmatprep.subr.bf16.mxu1 %v12818_v18 }
 0x64b   : > { %4359 = vmatmul.mubr.f32.gmra.mrb[62].mxu1 %v12787_v9  ;;  %v416_v9 = vld [vmem:[%s14103_s8 + $0x8] sm:$0xff] }
 0x64c   : > { %10411 = vmatpush1.bf16.msra.mxu1 %v12828_v27  ;;  %4437 = vmatprep.mubr.f32.mxu1 %v14305_v0  ;;  %v5634_v51 = vsel %vm5629_vm9, %v416_v9, 0  ;;  %v14562_v9 = vld [vmem:[#allocation23_spill] sm:$0xff] }
 0x64d   : > { %10413 = vmatprep.subr.bf16.mxu1 %v10412_v16  ;;  %v13064_v16 = vand.u32 127, %v4650_v15 }
 0x64f   : > { %4441 = vmatmul.mubr.f32.vlgmr.msra.gmra.mrb[60].mxu1 %v4129_v59  ;;  %v5631_v59 = vsel %vm5629_vm9, %v415_v11, 0  ;;  %vm4652_vm10 = vcmp.lt.s32.totalorder %v13064_v16, 17  ;;  %vm4665_vm12 = vcmp.lt.s32.totalorder %v13064_v16, 16  ;;  %vm4678_vm13 = vcmp.lt.s32.totalorder %v13064_v16, 15 }
 0x650   : > { %10415 = vmatpush1.bf16.msra.mxu1 %v10414_v57  ;;  %4446 = vmatprep.mubr.f32.mxu1 %v14305_v0  ;;  %v12904_v35 = vand.u32 4294901760, %v5631_v59  ;;  %v4701_v57 = vld [vmem:[%s14104_s9 + $0x48] sm:$0xff]  ;;  %vm4691_vm14 = vcmp.lt.s32.totalorder %v13064_v16, 1  ;;  %vm4710_vm15 = vcmp.lt.s32.totalorder %v13064_v16, 127  ;;  %vm4723_vm0 = vcmp.lt.s32.totalorder %v13064_v16, 113 }
 0x651   : > { %10417 = vmatprep.subr.bf16.mxu1 %v10416_v50  ;;  %v14561_v50 = vld [vmem:[#allocation21_spill] sm:$0xff]  ;;  %vm4736_vm1 = vcmp.lt.s32.totalorder %v13064_v16, 112  ;;  %vm4749_vm2 = vcmp.lt.s32.totalorder %v13064_v16, 111 }
 0x653   : > { %4450 = vmatmul.mubr.f32.gmra.mrb[62].mxu1 %v4140_v1  ;;  %v12912_v1 = vand.u32 4294901760, %v5634_v51 }
 0x654   : > { %10419 = vmatpush1.bf16.msra.mxu1 %v10418_v40  ;;  %4544 = vmatprep.mubr.f32.mxu1 %v14305_v0 }
 0x655   : > { %10421 = vmatprep.subr.bf16.mxu1 %v12811_v20  ;;  %v12919_v20 = vsub.f32 %v5634_v51, %v12912_v1  ;;  %v4700_v51 = vld [vmem:[%s14104_s9 + $0x40] sm:$0xff] }
 0x657   : > { %4546 = vmatmul.mubr.f32.vlgmr.msra.gmra.mrb[60].mxu1 %v12765_v25  ;;  %v5722_v55 = vand.u32 4294901760, %v12919_v20 }
 0x658   : > { %10423 = vmatpush1.bf16.msra.mxu1 %v12813_v12  ;;  %4551 = vmatprep.mubr.f32.mxu1 %v14305_v0 }
 0x659   : > { %10425 = vmatprep.subr.bf16.mxu1 %v12818_v18  ;;  %v5723_v21 = vsub.f32 %v12919_v20, %v5722_v55 }
 0x65b   : > { %4553 = vmatmul.mubr.f32.gmra.mrb[62].mxu1 %v12775_v63  ;;  %v5724_v30 = vand.u32 4294901760, %v5723_v21 }
 0x65c   : > { %10427 = vmatpush1.bf16.msra.mxu1 %v12828_v27  ;;  %4631 = vmatprep.mubr.f32.mxu1 %v14305_v0 }
 0x65f   : > { %4633 = vmatmul.mubr.f32.vlgmr.msra.gmra.mrb[60].mxu1 %v12765_v25  ;;  %v417_v25 = vld [vmem:[%s14103_s8 + $0x10] sm:$0xff] }
 0x660   : > { %4638 = vmatprep.mubr.f32.mxu1 %v14305_v0  ;;  %v5637_v36 = vsel %vm5629_vm9, %v417_v25, 0  ;;  %v412_v25 = vld [vmem:[%s14102_s7 + $0x8] sm:$0xff] }
 0x661   : > { %v12921_v12 = vand.u32 4294901760, %v5637_v36 }
 0x663   : > { %4640 = vmatmul.mubr.f32.gmra.mrb[62].mxu1 %v12775_v63  ;;  %v12910_v63 = vsub.f32 %v5631_v59, %v12904_v35  ;;  %v12934_v39 = vsub.f32 %v5637_v36, %v12921_v12  ;;  %v411_v59 = vld [vmem:[%s14102_s7] sm:$0xff] }
 0x664   : > { %5708 = vmatprep.mubr.f32.mxu1 %v14305_v0 }
 0x665   : > { %v5711_v3 = vand.u32 4294901760, %v12910_v63  ;;  %v5733_v46 = vand.u32 4294901760, %v12934_v39 }
 0x667   : > { %v5712_v18 = vsub.f32 %v12910_v63, %v5711_v3  ;;  %v5734_v56 = vsub.f32 %v12934_v39, %v5733_v46 }
 0x669   : > { %v5713_v60 = vand.u32 4294901760, %v5712_v18  ;;  %v5735_v19 = vand.u32 4294901760, %v5734_v56 }
 0x732   : > { %v12923_v4 = vpop.f32.mrb[60].mxu1 }
 0x733   : > { %4646 = vrot.lane.b32.xlu0 %v12923_v4, %s11249_s12  ;;  %v12926_v8 = vpop.f32.mrb[61].mxu1  ;;  %v13101_v18 = vmul.f32 %v4700_v51, %v12923_v4 }
 0x734   : > { %4648 = vrot.lane.b32.xlu1 %v12926_v8, %s11249_s12  ;;  %v13073_v11 = vmul.f32 %v4701_v57, %v12926_v8  ;;  %s8562_s12 = sshll.u32 %s377_s30, 6 }
 0x736   : > { %v4641_v27 = vpop.f32.mrb[62].mxu1 }
 0x737   : > { %v12938_v6 = vand.u32 4294901760, %v4641_v27  ;;  %4661 = vrot.lane.b32.xlu0 %v12923_v4, %s11250_s13  ;;  %v4643_v48 = vpop.f32.mrb[63].mxu1 }
 0x738   : > { %v12942_v26 = vand.u32 4294901760, %v4643_v48  ;;  %4663 = vrot.lane.b32.xlu1 %v12926_v8, %s11250_s13 }
 0x739   : > { %v12954_v2 = vsub.f32 %v4641_v27, %v12938_v6 }
 0x73a   : > { %v12957_v7 = vsub.f32 %v4643_v48, %v12942_v26  ;;  %5643 = vmatprep.subr.mxu1 %v12942_v26  ;;  %v14565_v48 = vld [vmem:[#allocation31_spill] sm:$0xff] }
 0x73b   : > { %v5761_v58 = vand.u32 4294901760, %v12954_v2  ;;  %4674 = vrot.lane.b32.xlu0 %v12923_v4, %s11251_s14  ;;  %5645 = vmatpush1.msra.mxu1 %v12938_v6 }
 0x73c   : > { %v5755_v42 = vand.u32 4294901760, %v12957_v7  ;;  %4676 = vrot.lane.b32.xlu1 %v12926_v8, %s11251_s14  ;;  %5714 = vmatmul.mubr.f32.vlgmr.msra.gmra.mrb[64].mxu1 %v5713_v60  ;;  %s8579_s14 = sshll.u32 %s11340_s21, 10 }
 0x73d   : > { %v5762_v54 = vsub.f32 %v12954_v2, %v5761_v58  ;;  %5719 = vmatprep.mubr.f32.mxu1 %v14305_v0 }
 0x73e   : > { %v5756_v33 = vsub.f32 %v12957_v7, %v5755_v42 }
 0x73f   : > { %4687 = vrot.lane.b32.xlu0 %v12923_v4, %s11252_s24  ;;  %v5763_v5 = vand.u32 4294901760, %v5762_v54 }
 0x740   : > { %4689 = vrot.lane.b32.xlu1 %v12926_v8, %s11252_s24  ;;  %5725 = vmatmul.mubr.f32.gmra.mrb[66].mxu1 %v5724_v30  ;;  %v5757_v31 = vand.u32 4294901760, %v5756_v33  ;;  %s379_s24 = scalar_lea.vmem [#allocation3], %s8562_s12  ;;  %s11187_s12 = sshll.u32 %s11257_s29, 4  ;;  %s11188_s12 = int_to_ptr.vmem [resolvable:$false] %s11187_s12 }
 0x741   : > { %5730 = vmatprep.mubr.f32.mxu1 %v14305_v0 }
 0x742   : > { %5758 = vmatprep.subr.mxu1 %v5757_v31 }
 0x743   : > { %4706 = vrot.lane.b32.xlu0 %v12923_v4, %s11253_s15  ;;  %5764 = vmatpush1.msra.mxu1 %v5763_v5 }
 0x744   : > { %4708 = vrot.lane.b32.xlu1 %v12926_v8, %s11253_s15  ;;  %5736 = vmatmul.mubr.f32.gmra.mrb[68].mxu1 %v5735_v19  ;;  %v4681_v19 = vld [vmem:[%s14104_s9 + $0x20] sm:$0xff]  ;;  %s8496_s15 = sshll.u32 %s379_s24, 4  ;;  %s14049_s15 = int_to_ptr.vmem [resolvable:$true] %s8496_s15 }
 0x745   : > { %5858 = vmatprep.subr.mxu1 %v12957_v7  ;;  %5741 = vmatprep.mubr.f32.mxu1 %v14305_v0  ;;  %v413_v7 = vld [vmem:[%s14102_s7 + $0x10] sm:$0xff]  ;;  %s11183_s0 = scalar_lea.vmem %s14049_s15, 1024  ;;  %p11190_p0 = scmp.lt.s32.totalorder %s14049_s15, %s11188_s12 }
 0x746   : > { %p11184_p11 = scmp.ne.s32.totalorder %s14049_s15, %s11183_s0 }
 0x747   : > { %4719 = vrot.lane.b32.xlu0 %v12923_v4, %s11254_s16 }
 0x748   : > { %4721 = vrot.lane.b32.xlu1 %v12926_v8, %s11254_s16  ;;  %5747 = vmatmul.mubr.f32.gmra.mrb[70].mxu1 %v5746_v49  ;;  %v4804_v49 = vsel %vm4796_vm11, %v413_v7, 0  ;;  %p11185_p12 = pnand %p11184_p11, %p11357_p5 }
 0x749   : > { %5827 = vmatprep.mubr.f32.mxu1 %v14305_v0 }
 0x74a   : > { %p11186_p13 = pneg %p11185_p12 }
 0x74b   : > { %4732 = vrot.lane.b32.xlu0 %v12923_v4, %s11255_s22 }
 0x74c   : > { %4734 = vrot.lane.b32.xlu1 %v12926_v8, %s11255_s22  ;;  %5829 = vmatmul.mubr.f32.vlgmr.msra.gmra.mrb[64].mxu1 %v12904_v35  ;;  %s14047_s22 = scalar_lea.hbm %s14106_s11, %s8579_s14  ;;  %s11189_s14 = scalar_lea.vmem %s11188_s12, 2048 }
 0x74d   : > { %5861 = vmatpush1.msra.mxu1 %v12954_v2  ;;  %5834 = vmatprep.mubr.f32.mxu1 %v14305_v0  ;;  %p11191_p1 = scmp.lt.s32.totalorder %s11189_s14, %s11183_s0 }
 0x74e   : > { %5958 = vmatprep.subr.mxu1 %v12942_v26 }
 0x74f   : > { %4745 = vrot.lane.b32.xlu0 %v12923_v4, %s11256_s25  ;;  %p11192_p2 = por %p11191_p1, %p11190_p0 }
 0x750   : > { %4747 = vrot.lane.b32.xlu1 %v12926_v8, %s11256_s25  ;;  %5836 = vmatmul.mubr.f32.gmra.mrb[66].mxu1 %v12912_v1  ;;  %v4669_v8 = vld [vmem:[%s14104_s9 + $0x18] sm:$0xff]  ;;  %s14053_s25 = scalar_lea.sflag [#allocation4], %s377_s30 }
 0x751   : > { %5841 = vmatprep.mubr.f32.mxu1 %v14305_v0  ;;  %p11193_p3 = pnand %p11192_p2, %p11186_p13 }
 0x753   : > { %4778 = vperm.xlu0 %11106, %v401_v37  }
 0x754   : > { %4783 = vperm.xlu1 %11107, %v402_v24   ;;  %5843 = vmatmul.mubr.f32.gmra.mrb[68].mxu1 %v12921_v12  ;;  %v4682_v24 = vld [vmem:[%s14104_s9 + $0x28] sm:$0xff] }
 0x755   : > { %5848 = vmatprep.mubr.f32.mxu1 %v14305_v0 }
 0x757   : > { %4788 = vperm.xlu0 %11106, %v403_v10  }
 0x758   : > { %4793 = vperm.xlu1 %11107, %v404_v47   ;;  %5850 = vmatmul.mubr.f32.gmra.mrb[70].mxu1 %v12936_v17 }
 0x759   : > { %5924 = vmatprep.mubr.f32.mxu1 %v14305_v0 }
 0x75c   : > { %5927 = vmatmul.mubr.f32.vlgmr.msra.gmra.mrb[64].mxu1 %v12910_v63  ;;  %v14563_v63 = vld [vmem:[#allocation25_spill] sm:$0xff] }
 0x75d   : > { %5960 = vmatpush1.msra.mxu1 %v12938_v6  ;;  %5932 = vmatprep.mubr.f32.mxu1 %v14305_v0 }
 0x75e   : > { %6063 = vmatprep.subr.mxu1 %v5755_v42  ;;  %v14310_v42 = vand.u32 4294901760, %v13101_v18 }
 0x760   : > { %5935 = vmatmul.mubr.f32.gmra.mrb[66].mxu1 %v12919_v20  ;;  %v4798_v20 = vsel %vm4796_vm11, %v411_v59, 0  ;;  %v4695_v59 = vld [vmem:[%s14104_s9 + $0x38] sm:$0xff] }
 0x761   : > { %5940 = vmatprep.mubr.f32.mxu1 %v14305_v0 }
 0x764   : > { %5943 = vmatmul.mubr.f32.gmra.mrb[68].mxu1 %v12934_v39  ;;  %v4801_v39 = vsel %vm4796_vm11, %v412_v25, 0 }
 0x765   : > { %5948 = vmatprep.mubr.f32.mxu1 %v14305_v0  ;;  %v13118_v2 = vand.u32 4294901760, %v4801_v39 }
 0x767   : > { %v13151_v47 = vsub.f32 %v4801_v39, %v13118_v2 }
 0x768   : > { %5951 = vmatmul.mubr.f32.gmra.mrb[70].mxu1 %v12951_v44 }
 0x769   : > { %6023 = vmatprep.mubr.f32.mxu1 %v14305_v0  ;;  %v14309_v39 = vand.u32 4294901760, %v13151_v47 }
 0x76c   : > { %6027 = vmatmul.mubr.f32.vlgmr.msra.gmra.mrb[64].mxu1 %v5711_v3 }
 0x76d   : > { %6067 = vmatpush1.msra.mxu1 %v5761_v58  ;;  %6032 = vmatprep.mubr.f32.mxu1 %v14305_v0 }
 0x76e   : > { %6160 = vmatprep.subr.mxu1 %v12942_v26 }
 0x770   : > { %6036 = vmatmul.mubr.f32.gmra.mrb[66].mxu1 %v5722_v55  ;;  %v14308_v55 = vand.u32 4294901760, %v13073_v11 }
 0x771   : > { %6041 = vmatprep.mubr.f32.mxu1 %v14305_v0 }
 0x772   : > { %v13127_v30 = vsub.f32 %v13073_v11, %v14308_v55 }
 0x774   : > { %6045 = vmatmul.mubr.f32.gmra.mrb[68].mxu1 %v5733_v46  ;;  %v13111_v46 = vand.u32 4294901760, %v4798_v20  ;;  %v14304_v51 = vand.u32 4294901760, %v13127_v30 }
 0x775   : > { %6050 = vmatprep.mubr.f32.mxu1 %v14305_v0 }
 0x776   : > { %v13139_v5 = vsub.f32 %v4798_v20, %v13111_v46 }
 0x778   : > { %6054 = vmatmul.mubr.f32.gmra.mrb[70].mxu1 %v5744_v34 }
 0x779   : > { %6130 = vmatprep.mubr.f32.mxu1 %v14305_v0 }
 0x77c   : > { %6132 = vmatmul.mubr.f32.vlgmr.msra.gmra.mrb[64].mxu1 %v12904_v35 }
 0x77d   : > { %6162 = vmatpush1.msra.mxu1 %v12938_v6  ;;  %6137 = vmatprep.mubr.f32.mxu1 %v14305_v0 }
 0x77e   : > { %10525 = vmatprep.subr.bf16.mxu1 %v14472_v53 }
 0x780   : > { %6139 = vmatmul.mubr.f32.gmra.mrb[66].mxu1 %v12912_v1 }
 0x781   : > { %6144 = vmatprep.mubr.f32.mxu1 %v14305_v0 }
 0x784   : > { %6146 = vmatmul.mubr.f32.gmra.mrb[68].mxu1 %v12921_v12 }
 0x785   : > { %6151 = vmatprep.mubr.f32.mxu1 %v14305_v0 }
 0x788   : > { %6153 = vmatmul.mubr.f32.gmra.mrb[70].mxu1 %v12936_v17 }
 0x789   : > { %6225 = vmatprep.mubr.f32.mxu1 %v14305_v0 }
 0x78c   : > { %6227 = vmatmul.mubr.f32.vlgmr.msra.gmra.mrb[64].mxu1 %v12904_v35 }
 0x78d   : > { %6232 = vmatprep.mubr.f32.mxu1 %v14305_v0  ;;  %10527 = vmatpush3.bf16.msra.mxu1 %v11414_v22 }
 0x78e   : > { %10529 = vmatprep.subr.bf16.mxu1 %v11416_v23 }
 0x790   : > { %6234 = vmatmul.mubr.f32.gmra.mrb[66].mxu1 %v12912_v1  ;;  %v4655_v1 = vld [vmem:[%s14104_s9] sm:$0xff] }
 0x791   : > { %6239 = vmatprep.mubr.f32.mxu1 %v14305_v0  ;;  %10531 = vmatpush3.bf16.msra.mxu1 %v11432_v28 }
 0x792   : > { %10533 = vmatprep.subr.bf16.mxu1 %v11443_v32 }
 0x794   : > { %6241 = vmatmul.mubr.f32.gmra.mrb[68].mxu1 %v12921_v12 }
 0x795   : > { %6246 = vmatprep.mubr.f32.mxu1 %v14305_v0  ;;  %10535 = vmatpush3.bf16.msra.mxu1 %v11461_v38 }
 0x796   : > { %10537 = vmatprep.subr.bf16.mxu1 %v14538_v14 }
 0x798   : > { %6248 = vmatmul.mubr.f32.gmra.mrb[70].mxu1 %v12936_v17  ;;  %v14564_v17 = vld [vmem:[#allocation27_spill] sm:$0xff] }
 0x799   : > { %10539 = vmatpush3.bf16.msra.mxu1 %v14539_v29 }
 0x79a   : > { %10541 = vmatprep.subr.bf16.mxu1 %v14541_v52 }
 0x79d   : > { %10543 = vmatpush3.bf16.msra.mxu1 %v14542_v13 }
 0x79e   : > { %10545 = vmatprep.subr.bf16.mxu1 %v14543_v62 }
 0x7a1   : > { %10547 = vmatpush3.bf16.msra.mxu1 %v14544_v41 }
 0x7a2   : > { %10549 = vmatprep.subr.bf16.mxu1 %v14561_v50 }
 0x7a5   : > { %v4647_v40 = vpop.permute.xlu0 %4646  ;;  %10551 = vmatpush3.bf16.msra.mxu1 %v14562_v9 }
 0x7a6   : > { %v4649_v35 = vpop.permute.xlu1 %4648  ;;  %10553 = vmatprep.subr.bf16.mxu1 %v14563_v63 }
 0x7a7   : > { %v4654_v36 = vsel %vm4652_vm10, %v4649_v35, %v4647_v40  ;;  %v4653_v3 = vsel %vm4652_vm10, %v4647_v40, %v4649_v35  ;;  %v4694_v40 = vld [vmem:[%s14104_s9 + $0x30] sm:$0xff]  ;;  %v13164_v35 = vsub.f32 %v13101_v18, %v14310_v42 }
 0x7a8   : > { %v13106_v27 = vmul.f32 %v4655_v1, %v4654_v36  ;;  %v13109_v60 = vmul.f32 %v4656_v43, %v4653_v3  ;;  %v13169_v36 = vand.u32 4294901760, %v4804_v49 }
 0x7a9   : > { %v4662_v12 = vpop.permute.xlu0 %4661  ;;  %10555 = vmatpush3.bf16.msra.mxu1 %v14564_v17 }
 0x7aa   : > { %v4664_v6 = vpop.permute.xlu1 %4663  ;;  %10589 = vmatprep.subr.bf16.mxu1 %v14565_v48  ;;  %v4811_v56 = vand.u32 4294901760, %v13106_v27  ;;  %v4809_v31 = vand.u32 4294901760, %v13109_v60 }
 0x7ab   : > { %v4666_v26 = vsel %vm4665_vm12, %v4662_v12, %v4664_v6  ;;  %v4667_v21 = vsel %vm4665_vm12, %v4664_v6, %v4662_v12  ;;  %v14307_v12 = vand.u32 4294901760, %v13139_v5 }
 0x7ac   : > { %v13113_v44 = vmul.f32 %v4668_v61, %v4667_v21  ;;  %v13115_v4 = vmul.f32 %v4669_v8, %v4666_v26  ;;  %v4713_v26 = vld [vmem:[%s14104_s9 + $0x50] sm:$0xff]  ;;  %v13188_v21 = vsub.f32 %v13127_v30, %v14304_v51  ;;  %v13225_v0 = vsub.f32 %v13109_v60, %v4809_v31 }
 0x7ad   : > { %v4675_v58 = vpop.permute.xlu0 %4674 }
 0x7ae   : > { %v4813_v34 = vand.u32 4294901760, %v13115_v4  ;;  %v4815_v54 = vand.u32 4294901760, %v13113_v44  ;;  %v4677_v33 = vpop.permute.xlu1 %4676 }
 0x7af   : > { %v4680_v45 = vsel %vm4678_vm13, %v4677_v33, %v4675_v58  ;;  %v4679_v10 = vsel %vm4678_vm13, %v4675_v58, %v4677_v33  ;;  %v414_v58 = vld [vmem:[%s14102_s7 + $0x18] sm:$0xff] }
 0x7b0   : > { %v13142_v37 = vpack.c.bf16 %v4815_v54, %v4811_v56  ;;  %v13153_v57 = vpack.c.bf16 %v4813_v34, %v4809_v31  ;;  %v13167_v25 = vmul.f32 %v4681_v19, %v4680_v45  ;;  %v13171_v43 = vmul.f32 %v4682_v24, %v4679_v10  ;;  %v4714_v24 = vld [vmem:[%s14104_s9 + $0x58] sm:$0xff]  ;;  %v4727_v31 = vld [vmem:[%s14104_s9 + $0x68] sm:$0xff] }
 0x7b1   : > { %v4688_v15 = vpop.permute.xlu0 %4687  ;;  %v13222_v7 = vsel %vm4796_vm11, %v414_v58, 0 }
 0x7b2   : > { %v4690_v1 = vpop.permute.xlu1 %4689  ;;  %10429 = vmatprep.subr.bf16.mxu0 %v13153_v57  ;;  %v4819_v33 = vand.u32 4294901760, %v13167_v25 }
 0x7b3   : > { %v4692_v3 = vsel %vm4691_vm14, %v4688_v15, %v4690_v1  ;;  %v4693_v20 = vsel %vm4691_vm14, %v4690_v1, %v4688_v15  ;;  %10431 = vmatpush1.bf16.msra.mxu0 %v13142_v37  ;;  %v13200_v15 = vsub.f32 %v4804_v49, %v13169_v36  ;;  %v13219_v49 = vsub.f32 %v13151_v47, %v14309_v39 }
 0x7b4   : > { %v13175_v61 = vmul.f32 %v4694_v40, %v4693_v20  ;;  %v4697_v8 = vmul.f32 %v4695_v59, %v4692_v3  ;;  %v4817_v40 = vand.u32 4294901760, %v13171_v43  ;;  %v13210_v3 = vsub.f32 %v13139_v5, %v14307_v12 }
 0x7b5   : > { %v4707_v6 = vpop.permute.xlu0 %4706  ;;  %v14568_v63 = vand.u32 4294901760, %v13200_v15 }
 0x7b6   : > { %v4821_v19 = vand.u32 4294901760, %v4697_v8  ;;  %v4823_v45 = vand.u32 4294901760, %v13175_v61  ;;  %v4709_v10 = vpop.permute.xlu1 %4708 }
 0x7b7   : > { %v4711_v59 = vsel %vm4710_vm15, %v4707_v6, %v4709_v10  ;;  %v4712_v1 = vsel %vm4710_vm15, %v4709_v10, %v4707_v6  ;;  %v13228_v6 = vsub.f32 %v13113_v44, %v4815_v54  ;;  %v4726_v44 = vld [vmem:[%s14104_s9 + $0x60] sm:$0xff]  ;;  %v13281_v9 = vsub.f32 %v13200_v15, %v14568_v63 }
 0x7b8   : > { %v13212_v20 = vpack.c.bf16 %v4823_v45, %v4819_v33  ;;  %v13214_v51 = vmul.f32 %v4713_v26, %v4711_v59  ;;  %v4716_v10 = vmul.f32 %v4714_v24, %v4712_v1  ;;  %v13230_v55 = vpack.c.bf16 %v4821_v19, %v4817_v40 }
 0x7b9   : > { %v4720_v12 = vpop.permute.xlu0 %4719  ;;  %v13233_v26 = vsub.f32 %v13106_v27, %v4811_v56  ;;  %v13236_v59 = vsub.f32 %v13115_v4, %v4813_v34  ;;  %v13248_v4 = vsub.f32 %v4697_v8, %v4821_v19  ;;  %v14566_v56 = vand.u32 4294901760, %v13101_v18  ;;  %v4739_v18 = vld [vmem:[%s14104_s9 + $0x70] sm:$0xff]  ;;  %v4740_v8 = vld [vmem:[%s14104_s9 + $0x78] sm:$0xff] }
 0x7ba   : > { %v4831_v39 = vand.u32 4294901760, %v13214_v51  ;;  %v4722_v58 = vpop.permute.xlu1 %4721  ;;  %v4829_v60 = vand.u32 4294901760, %v4716_v10  ;;  %10433 = vmatprep.subr.bf16.mxu0 %v13230_v55  ;;  %v14567_v19 = vand.u32 4294901760, %v13073_v11  ;;  %v13284_v11 = vsub.f32 %v13171_v43, %v4817_v40 }
 0x7bb   : > { %v4724_v54 = vsel %vm4723_vm0, %v4720_v12, %v4722_v58  ;;  %v4725_v24 = vsel %vm4723_vm0, %v4722_v58, %v4720_v12  ;;  %10435 = vmatpush1.bf16.msra.mxu0 %v13212_v20  ;;  %v13274_v58 = vand.u32 4294901760, %v13222_v7  ;;  %v14313_v17 = vand.u32 4294901760, %v13236_v59 }
 0x7bc   : > { %v13252_v34 = vpack.c.bf16 %v4831_v39, %v14566_v56  ;;  %v13270_v56 = vpack.c.bf16 %v4829_v60, %v14567_v19  ;;  %v4728_v42 = vmul.f32 %v4726_v44, %v4724_v54  ;;  %v4729_v19 = vmul.f32 %v4727_v31, %v4725_v24 }
 0x7bd   : > { %v4733_v27 = vpop.permute.xlu0 %4732  ;;  %v13292_v44 = vsub.f32 %v13175_v61, %v4823_v45  ;;  %v14569_v43 = vand.u32 4294901760, %v13228_v6  ;;  %v13300_v31 = vsub.f32 %v13167_v25, %v4819_v33  ;;  %v13302_v24 = vsub.f32 %v4716_v10, %v4829_v60  ;;  %v4752_v10 = vld [vmem:[%s14104_s9 + $0x80] sm:$0xff] }
 0x7be   : > { %v4735_v48 = vpop.permute.xlu1 %4734  ;;  %10437 = vmatprep.subr.bf16.mxu0 %v13270_v56  ;;  %v4835_v45 = vand.u32 4294901760, %v4728_v42  ;;  %v4951_v25 = vsub.f32 %v13236_v59, %v14313_v17  ;;  %v4833_v33 = vand.u32 4294901760, %v4729_v19  ;;  %v13323_v41 = vsub.f32 %v13214_v51, %v4831_v39 }
 0x7bf   : > { %v4737_v12 = vsel %vm4736_vm1, %v4733_v27, %v4735_v48  ;;  %v4738_v50 = vsel %vm4736_vm1, %v4735_v48, %v4733_v27  ;;  %10439 = vmatpush1.bf16.msra.mxu0 %v13252_v34  ;;  %v4957_v40 = vsub.f32 %v13228_v6, %v14569_v43  ;;  %v14570_v27 = vand.u32 4294901760, %v13225_v0 }
 0x7c0   : > { %v4741_v54 = vmul.f32 %v4739_v18, %v4737_v12  ;;  %v4742_v1 = vmul.f32 %v4740_v8, %v4738_v50  ;;  %v4753_v8 = vld [vmem:[%s14104_s9 + $0x88] sm:$0xff]  ;;  %v14571_v17 = vand.u32 4294901760, %v13248_v4  ;;  %v14322_v16 = vand.u32 4294901760, %v13302_v24 }
 0x7c1   : > { %v4746_v48 = vpop.permute.xlu0 %4745  ;;  %v4939_v61 = vsub.f32 %v13225_v0, %v14570_v27  ;;  %v14323_v51 = vand.u32 4294901760, %v13300_v31  ;;  %v13341_v63 = vsub.f32 %v13222_v7, %v13274_v58  ;;  %v13343_v27 = vsub.f32 %v4729_v19, %v4833_v33 }
 0x7c2   : > { %v4837_v50 = vand.u32 4294901760, %v4742_v1  ;;  %v4839_v18 = vand.u32 4294901760, %v4741_v54  ;;  %v4748_v12 = vpop.permute.xlu1 %4747  ;;  %v4975_v13 = vsub.f32 %v13248_v4, %v14571_v17  ;;  %v4958_v7 = vand.u32 4294901760, %v4957_v40 }
 0x7c3   : > { %v4750_v60 = vsel %vm4749_vm2, %v4746_v48, %v4748_v12  ;;  %v4751_v43 = vsel %vm4749_vm2, %v4748_v12, %v4746_v48  ;;  %v14572_v48 = vand.u32 4294901760, %v13233_v26  ;;  %v4940_v19 = vand.u32 4294901760, %v4939_v61 }
 0x7c4   : > { %v13325_v62 = vpack.c.bf16 %v4839_v18, %v4835_v45  ;;  %v13330_v52 = vsub.f32 %v4742_v1, %v4837_v50  ;;  %v4755_v29 = vmul.f32 %v4753_v8, %v4751_v43  ;;  %v13332_v14 = vpack.c.bf16 %v4837_v50, %v4833_v33 }
 0x7c5   : > { %v4945_v12 = vsub.f32 %v13233_v26, %v14572_v48  ;;  %v4754_v39 = vmul.f32 %v4752_v10, %v4750_v60  ;;  %v4952_v1 = vand.u32 4294901760, %v4951_v25  ;;  %v14573_v50 = vand.u32 4294901760, %v13284_v11 }
 0x7c6   : > { %v13345_v17 = vand.u32 4294901760, %v4755_v29  ;;  %10441 = vmatprep.subr.bf16.mxu0 %v13332_v14  ;;  %v14574_v43 = vand.u32 4294901760, %v13292_v44  ;;  %v13355_v60 = vsub.f32 %v4741_v54, %v4839_v18  ;;  %v4976_v33 = vand.u32 4294901760, %v4975_v13 }
 0x7c7   : > { %v4963_v8 = vsub.f32 %v13284_v11, %v14573_v50  ;;  %10443 = vmatpush1.bf16.msra.mxu0 %v13325_v62  ;;  %v4999_v25 = vsub.f32 %v13302_v24, %v14322_v16  ;;  %v13366_v10 = vsub.f32 %v4728_v42, %v4835_v45  ;;  %v13368_v54 = vand.u32 4294901760, %v4754_v39 }
 0x7c8   : > { %v4981_v48 = vsub.f32 %v13292_v44, %v14574_v43  ;;  %4842 = vmatprep.subr.mxu0 %v13345_v17  ;;  %v4969_v43 = vsub.f32 %v13300_v31, %v14323_v51  ;;  %v4946_v18 = vand.u32 4294901760, %v4945_v12  ;;  %v10444_v40 = vpack.c.bf16 %v4952_v1, %v4940_v19 }
 0x7c9   : > { %v4964_v38 = vand.u32 4294901760, %v4963_v8  ;;  %v14575_v32 = vand.u32 4294901760, %v13323_v41  ;;  %v13378_v45 = vsub.f32 %v4755_v29, %v13345_v17  ;;  %v14576_v12 = vand.u32 4294901760, %v13210_v3 }
 0x7ca   : > { %v10446_v51 = vpack.c.bf16 %v4958_v7, %v4946_v18  ;;  %v4982_v42 = vand.u32 4294901760, %v4981_v48  ;;  %v5000_v8 = vand.u32 4294901760, %v4999_v25  ;;  %v14577_v19 = vand.u32 4294901760, %v13330_v52 }
 0x7cb   : > { %v5005_v16 = vsub.f32 %v13323_v41, %v14575_v32  ;;  %4844 = vmatpush1.msra.mxu0 %v13368_v54  ;;  %v10448_v1 = vpack.c.bf16 %v4976_v33, %v4964_v38  ;;  %v5016_v32 = vand.u32 4294901760, %v13366_v10  ;;  %v4970_v50 = vand.u32 4294901760, %v4969_v43 }
 0x7cc   : > { %10445 = vmatprep.subr.bf16.mxu0 %v10444_v40  ;;  %4897 = vmatmul.mubr.f32.vlgmr.msra.gmra.mrb[48].mxu0 %v14576_v12  ;;  %v5023_v13 = vsub.f32 %v13330_v52, %v14577_v19  ;;  %v14578_v61 = vmov 0.0   ;;  %v14579_v48 = vand.u32 4294901760, %v13164_v35  ;;  %v4988_v3 = vand.u32 4294901760, %v13188_v21 }
 0x7cd   : > { %10447 = vmatpush1.bf16.msra.mxu0 %v10446_v51  ;;  %4902 = vmatprep.mubr.f32.mxu0 %v14578_v61  ;;  %v14580_v38 = vand.u32 4294901760, %v13343_v27  ;;  %v4918_v33 = vand.u32 4294901760, %v13281_v9  ;;  %v14581_v25 = vand.u32 4294901760, %v13355_v60  ;;  %v13399_v43 = vsub.f32 %v4754_v39, %v13368_v54 }
 0x7ce   : > { %v4993_v29 = vsub.f32 %v13164_v35, %v14579_v48  ;;  %10449 = vmatprep.subr.bf16.mxu0 %v10448_v1  ;;  %v10450_v18 = vpack.c.bf16 %v4982_v42, %v4970_v50  ;;  %v5006_v40 = vand.u32 4294901760, %v5005_v16  ;;  %v10452_v12 = vpack.c.bf16 %v5000_v8, %v4988_v3 }
 0x7cf   : > { %v5011_v7 = vsub.f32 %v13343_v27, %v14580_v38  ;;  %v5029_v51 = vsub.f32 %v13355_v60, %v14581_v25  ;;  %v14582_v1 = vand.u32 4294901760, %v13219_v49  ;;  %v5024_v21 = vand.u32 4294901760, %v5023_v13 }
 0x7d0   : > { %v5034_v19 = vand.u32 4294901760, %v13378_v45  ;;  %v14583_v48 = vand.u32 4294901760, %v13341_v63  ;;  %v5017_v38 = vsub.f32 %v13366_v10, %v5016_v32  ;;  %v4994_v39 = vand.u32 4294901760, %v4993_v29 }
 0x7d1   : > { %4908 = vmatmul.mubr.f32.gmra.mrb[50].mxu0 %v14582_v1  ;;  %v5012_v16 = vand.u32 4294901760, %v5011_v7  ;;  %v5040_v49 = vand.u32 4294901760, %v13399_v43  ;;  %v5030_v13 = vand.u32 4294901760, %v5029_v51  ;;  %v10460_v51 = vpack.c.bf16 %v13236_v59, %v13225_v0 }
 0x7d2   : > { %v4928_v9 = vsub.f32 %v13341_v63, %v14583_v48  ;;  %10451 = vmatpush1.bf16.msra.mxu0 %v10450_v18  ;;  %4913 = vmatprep.mubr.f32.mxu0 %v14578_v61  ;;  %v10454_v50 = vpack.c.bf16 %v5006_v40, %v4994_v39  ;;  %v5035_v8 = vsub.f32 %v13378_v45, %v5034_v19  ;;  %v5018_v25 = vand.u32 4294901760, %v5017_v38 }
 0x7d3   : > { %10453 = vmatprep.subr.bf16.mxu0 %v10452_v12  ;;  %v10456_v42 = vpack.c.bf16 %v5024_v21, %v5012_v16  ;;  %v5041_v7 = vsub.f32 %v13399_v43, %v5040_v49  ;;  %v10462_v40 = vpack.c.bf16 %v13228_v6, %v13233_v26  ;;  %v10464_v12 = vpack.c.bf16 %v13248_v4, %v13284_v11 }
 0x7d4   : > { %v4929_v3 = vand.u32 4294901760, %v4928_v9  ;;  %v10458_v29 = vpack.c.bf16 %v5030_v13, %v5018_v25  ;;  %v5036_v18 = vand.u32 4294901760, %v5035_v8  ;;  %v10466_v1 = vpack.c.bf16 %v13292_v44, %v13300_v31 }
 0x7d5   : > { %4919 = vmatmul.mubr.f32.gmra.mrb[52].mxu0 %v4918_v33  ;;  %v5042_v33 = vand.u32 4294901760, %v5041_v7  ;;  %v10468_v21 = vpack.c.bf16 %v13302_v24, %v13127_v30  ;;  %v10470_v48 = vpack.c.bf16 %v13323_v41, %v13164_v35  ;;  %v10472_v9 = vpack.c.bf16 %v13330_v52, %v13343_v27 }
 0x7d6   : > { %10455 = vmatpush1.bf16.msra.mxu0 %v10454_v50  ;;  %4924 = vmatprep.mubr.f32.mxu0 %v14578_v61  ;;  %v10474_v38 = vpack.c.bf16 %v13355_v60, %v13366_v10  ;;  %v14584_v39 = vand.u32 4294901760, %v13225_v0  ;;  %v14585_v16 = vand.u32 4294901760, %v13236_v59  ;;  %v14586_v13 = vand.u32 4294901760, %v13233_v26 }
 0x7d7   : > { %10457 = vmatprep.subr.bf16.mxu0 %v10456_v42  ;;  %v14587_v42 = vand.u32 4294901760, %v13228_v6  ;;  %v14589_v25 = vand.u32 4294901760, %v13284_v11  ;;  %v14591_v0 = vand.u32 4294901760, %v13300_v31  ;;  %v14592_v26 = vand.u32 4294901760, %v13292_v44 }
 0x7d8   : > { %v10492_v50 = vpack.c.bf16 %v14585_v16, %v14584_v39  ;;  %v14593_v6 = vand.u32 4294901760, %v13127_v30  ;;  %v14597_v11 = vand.u32 4294901760, %v13323_v41  ;;  %v14598_v44 = vand.u32 4294901760, %v13343_v27  ;;  %v14617_v27 = vld [vmem:[#allocation47_spill] sm:$0xff] }
 0x7d9   : > { %4930 = vmatmul.mubr.f32.gmra.mrb[54].mxu0 %v4929_v3  ;;  %v10494_v8 = vpack.c.bf16 %v14587_v42, %v14586_v13  ;;  %v14588_v3 = vand.u32 4294901760, %v13139_v5  ;;  %v10498_v59 = vpack.c.bf16 %v14592_v26, %v14591_v0  ;;  %v14602_v41 = vand.u32 4294901760, %v13341_v63 }
 0x7da   : > { %10459 = vmatpush1.bf16.msra.mxu0 %v10458_v29  ;;  %5090 = vmatprep.mubr.f32.mxu0 %v14578_v61  ;;  %v14590_v29 = vand.u32 4294901760, %v13248_v4  ;;  %v14596_v4 = vand.u32 4294901760, %v13164_v35 }
 0x7db   : > { %5037 = vmatprep.subr.mxu0 %v5036_v18  ;;  %v14594_v18 = vand.u32 4294901760, %v13302_v24  ;;  %v14600_v24 = vand.u32 4294901760, %v13200_v15 }
 0x7dc   : > { %v10496_v7 = vpack.c.bf16 %v14590_v29, %v14589_v25  ;;  %v10502_v31 = vpack.c.bf16 %v14597_v11, %v14596_v4 }
 0x7de   : > { %5043 = vmatpush1.msra.mxu0 %v5042_v33  ;;  %v14595_v33 = vand.u32 4294901760, %v13151_v47 }
 0x7df   : > { %10461 = vmatprep.subr.bf16.mxu0 %v10460_v51  ;;  %5092 = vmatmul.mubr.f32.vlgmr.msra.gmra.mrb[48].mxu0 %v13111_v46  ;;  %v14599_v51 = vand.u32 4294901760, %v13330_v52  ;;  %v14603_v52 = vld [vmem:[#allocation10_spill] sm:$0xff] }
 0x7e0   : > { %10463 = vmatpush1.bf16.msra.mxu0 %v10462_v40  ;;  %5097 = vmatprep.mubr.f32.mxu0 %v14578_v61 }
 0x7e1   : > { %10465 = vmatprep.subr.bf16.mxu0 %v10464_v12  ;;  %v10504_v30 = vpack.c.bf16 %v14599_v51, %v14598_v44 }
 0x7e3   : > { %5099 = vmatmul.mubr.f32.gmra.mrb[50].mxu0 %v13118_v2 }
 0x7e4   : > { %10467 = vmatpush1.bf16.msra.mxu0 %v10466_v1  ;;  %5104 = vmatprep.mubr.f32.mxu0 %v14578_v61 }
 0x7e5   : > { %10469 = vmatprep.subr.bf16.mxu0 %v10468_v21 }
 0x7e7   : > { %5106 = vmatmul.mubr.f32.gmra.mrb[52].mxu0 %v13169_v36 }
 0x7e8   : > { %10471 = vmatpush1.bf16.msra.mxu0 %v10470_v48  ;;  %5111 = vmatprep.mubr.f32.mxu0 %v14578_v61  ;;  %v4784_v48 = vpop.permute.xlu1 %4783 }
 0x7e9   : > { %10473 = vmatprep.subr.bf16.mxu0 %v10472_v9 }
 0x7eb   : > { %5113 = vmatmul.mubr.f32.gmra.mrb[54].mxu0 %v13274_v58 }
 0x7ec   : > { %10475 = vmatpush1.bf16.msra.mxu0 %v10474_v38  ;;  %5219 = vmatprep.mubr.f32.mxu0 %v14578_v61  ;;  %v4794_v44 = vpop.permute.xlu1 %4793 }
 0x7ed   : > { %5169 = vmatprep.subr.mxu0 %v13378_v45 }
 0x7f0   : > { %5172 = vmatpush1.msra.mxu0 %v13399_v43 }
 0x7f1   : > { %10477 = vmatprep.subr.bf16.mxu0 %v13153_v57  ;;  %5222 = vmatmul.mubr.f32.vlgmr.msra.gmra.mrb[48].mxu0 %v13139_v5  ;;  %v10500_v5 = vpack.c.bf16 %v14594_v18, %v14593_v6 }
 0x7f2   : > { %10479 = vmatpush1.bf16.msra.mxu0 %v13142_v37  ;;  %5227 = vmatprep.mubr.f32.mxu0 %v14578_v61 }
 0x7f3   : > { %10481 = vmatprep.subr.bf16.mxu0 %v13230_v55 }
 0x7f5   : > { %5230 = vmatmul.mubr.f32.gmra.mrb[50].mxu0 %v13151_v47  ;;  %v14601_v47 = vand.u32 4294901760, %v13355_v60 }
 0x7f6   : > { %10483 = vmatpush1.bf16.msra.mxu0 %v13212_v20  ;;  %5235 = vmatprep.mubr.f32.mxu0 %v14578_v61 }
 0x7f7   : > { %10485 = vmatprep.subr.bf16.mxu0 %v13270_v56  ;;  %v10506_v35 = vpack.c.bf16 %v14601_v47, %v5016_v32 }
 0x7f9   : > { %5238 = vmatmul.mubr.f32.gmra.mrb[52].mxu0 %v13200_v15  ;;  %v14610_v15 = vld [vmem:[#allocation24_spill] sm:$0xff] }
 0x7fa   : > { %10487 = vmatpush1.bf16.msra.mxu0 %v13252_v34  ;;  %5243 = vmatprep.mubr.f32.mxu0 %v14578_v61 }
 0x7fb   : > { %10489 = vmatprep.subr.bf16.mxu0 %v13332_v14 }
 0x7fd   : > { %5246 = vmatmul.mubr.f32.gmra.mrb[54].mxu0 %v13341_v63  ;;  %v14615_v63 = vld [vmem:[#allocation36_spill] sm:$0xff] }
 0x7fe   : > { %10491 = vmatpush1.bf16.msra.mxu0 %v13325_v62  ;;  %5334 = vmatprep.mubr.f32.mxu0 %v14578_v61 }
 0x7ff   : > { %5285 = vmatprep.subr.mxu0 %v13345_v17 }
 0x802   : > { %5287 = vmatpush1.msra.mxu0 %v13368_v54 }
 0x803   : > { %10493 = vmatprep.subr.bf16.mxu0 %v10492_v50  ;;  %5338 = vmatmul.mubr.f32.vlgmr.msra.gmra.mrb[48].mxu0 %v14588_v3 }
 0x804   : > { %10495 = vmatpush1.bf16.msra.mxu0 %v10494_v8  ;;  %5343 = vmatprep.mubr.f32.mxu0 %v14578_v61 }
 0x805   : > { %10497 = vmatprep.subr.bf16.mxu0 %v10496_v7 }
 0x807   : > { %5347 = vmatmul.mubr.f32.gmra.mrb[50].mxu0 %v14595_v33 }
 0x808   : > { %10499 = vmatpush1.bf16.msra.mxu0 %v10498_v59  ;;  %5352 = vmatprep.mubr.f32.mxu0 %v14578_v61 }
 0x809   : > { %10501 = vmatprep.subr.bf16.mxu0 %v10500_v5 }
 0x80b   : > { %5356 = vmatmul.mubr.f32.gmra.mrb[52].mxu0 %v14600_v24 }
 0x80c   : > { %10503 = vmatpush1.bf16.msra.mxu0 %v10502_v31  ;;  %5361 = vmatprep.mubr.f32.mxu0 %v14578_v61 }
 0x80d   : > { %10505 = vmatprep.subr.bf16.mxu0 %v10504_v30 }
 0x80f   : > { %5365 = vmatmul.mubr.f32.gmra.mrb[54].mxu0 %v14602_v41 }
 0x810   : > { %10507 = vmatpush1.bf16.msra.mxu0 %v10506_v35  ;;  %5489 = vmatprep.mubr.f32.mxu0 %v14578_v61 }
 0x811   : > { %5438 = vmatprep.subr.mxu0 %v5034_v19  ;;  %v4779_v19 = vpop.permute.xlu0 %4778 }
 0x814   : > { %5442 = vmatpush1.msra.mxu0 %v5040_v49 }
 0x815   : > { %10509 = vmatprep.subr.bf16.mxu0 %v13153_v57  ;;  %5491 = vmatmul.mubr.f32.vlgmr.msra.gmra.mrb[48].mxu0 %v13111_v46  ;;  %v14609_v57 = vld [vmem:[#allocation22_spill] sm:$0xff]  ;;  %v4789_v25 = vpop.permute.xlu0 %4788 }
 0x816   : > { %10511 = vmatpush1.bf16.msra.mxu0 %v13142_v37  ;;  %5496 = vmatprep.mubr.f32.mxu0 %v14578_v61  ;;  %v14605_v37 = vld [vmem:[#allocation13_spill] sm:$0xff] }
 0x817   : > { %10513 = vmatprep.subr.bf16.mxu0 %v13230_v55  ;;  %v14604_v55 = vld [vmem:[#allocation12_spill] sm:$0xff] }
 0x819   : > { %5498 = vmatmul.mubr.f32.gmra.mrb[50].mxu0 %v13118_v2 }
 0x81a   : > { %10515 = vmatpush1.bf16.msra.mxu0 %v13212_v20  ;;  %5503 = vmatprep.mubr.f32.mxu0 %v14578_v61  ;;  %v14611_v20 = vld [vmem:[#allocation26_spill] sm:$0xff] }
 0x81b   : > { %10517 = vmatprep.subr.bf16.mxu0 %v13270_v56  ;;  %v14614_v56 = vld [vmem:[#allocation34_spill] sm:$0xff] }
 0x81d   : > { %5505 = vmatmul.mubr.f32.gmra.mrb[52].mxu0 %v13169_v36 }
 0x81e   : > { %10519 = vmatpush1.bf16.msra.mxu0 %v13252_v34  ;;  %5510 = vmatprep.mubr.f32.mxu0 %v14578_v61  ;;  %v14613_v34 = vld [vmem:[#allocation32_spill] sm:$0xff] }
 0x81f   : > { %10521 = vmatprep.subr.bf16.mxu0 %v13332_v14  ;;  %v14607_v14 = vld [vmem:[#allocation18_spill] sm:$0xff] }
 0x821   : > { %5512 = vmatmul.mubr.f32.gmra.mrb[54].mxu0 %v13274_v58 }
 0x822   : > { %10523 = vmatpush1.bf16.msra.mxu0 %v13325_v62  ;;  %5600 = vmatprep.mubr.f32.mxu0 %v14578_v61  ;;  %v14606_v62 = vld [vmem:[#allocation16_spill] sm:$0xff] }
 0x823   : > { %5551 = vmatprep.subr.mxu0 %v13345_v17  ;;  %v14618_v17 = vld [vmem:[#allocation51_spill] sm:$0xff] }
 0x826   : > { %5553 = vmatpush1.msra.mxu0 %v13368_v54 }
 0x827   : > { %5602 = vmatmul.mubr.f32.vlgmr.msra.gmra.mrb[48].mxu0 %v13111_v46  ;;  %10557 = vmatprep.subr.bf16.mxu0 %v14603_v52  ;;  %v14608_v46 = vld [vmem:[#allocation20_spill] sm:$0xff] }
 0x828   : > { %5607 = vmatprep.mubr.f32.mxu0 %v14578_v61  ;;  %10559 = vmatpush3.bf16.msra.mxu0 %v14604_v55 }
 0x829   : > { %10561 = vmatprep.subr.bf16.mxu0 %v14605_v37 }
 0x82b   : > { %5609 = vmatmul.mubr.f32.gmra.mrb[50].mxu0 %v13118_v2  ;;  %v14612_v2 = vld [vmem:[#allocation28_spill] sm:$0xff] }
 0x82c   : > { %5614 = vmatprep.mubr.f32.mxu0 %v14578_v61  ;;  %10563 = vmatpush3.bf16.msra.mxu0 %v14606_v62 }
 0x82d   : > { %10565 = vmatprep.subr.bf16.mxu0 %v14607_v14 }
 0x82f   : > { %5616 = vmatmul.mubr.f32.gmra.mrb[52].mxu0 %v13169_v36  ;;  %v14616_v36 = vld [vmem:[#allocation42_spill] sm:$0xff] }
 0x830   : > { %5621 = vmatprep.mubr.f32.mxu0 %v14578_v61  ;;  %10567 = vmatpush3.bf16.msra.mxu0 %v14608_v46 }
 0x831   : > { %10569 = vmatprep.subr.bf16.mxu0 %v14609_v57 }
 0x833   : > { %5623 = vmatmul.mubr.f32.gmra.mrb[54].mxu0 %v13274_v58 }
 0x834   : > { %10571 = vmatpush3.bf16.msra.mxu0 %v14610_v15 }
 0x835   : > { %10573 = vmatprep.subr.bf16.mxu0 %v14611_v20 }
 0x838   : > { %10575 = vmatpush3.bf16.msra.mxu0 %v14612_v2 }
 0x839   : > { %10577 = vmatprep.subr.bf16.mxu0 %v14613_v34 }
 0x83c   : > { %10579 = vmatpush3.bf16.msra.mxu0 %v14614_v56 }
 0x83d   : > { %10581 = vmatprep.subr.bf16.mxu0 %v14615_v63 }
 0x840   : > { %10583 = vmatpush3.bf16.msra.mxu0 %v14616_v36 }
 0x841   : > { %10585 = vmatprep.subr.bf16.mxu0 %v14617_v27 }
 0x844   : > { %10587 = vmatpush3.bf16.msra.mxu0 %v14618_v17 }
 0x845   : > { %10621 = vmatprep.subr.bf16.mxu0 %v14472_v53 }
 0x85f   : > { %v13554_v58 = vpop.f32.mrb[64].mxu1 }
 0x860   : > { %14619 = vst [vmem:[#allocation44_spill] sm:$0xff] %v13554_v58  ;;  %v13556_v10 = vpop.f32.mrb[65].mxu1 }
 0x861   : > { %14620 = vst [vmem:[#allocation50_spill] sm:$0xff] %v13556_v10 }
 0x863   : > { %v13558_v60 = vpop.f32.mrb[66].mxu1 }
 0x864   : > { %v13560_v54 = vpop.f32.mrb[67].mxu1 }
 0x867   : > { %v13562_v61 = vpop.f32.mrb[68].mxu1 }
 0x868   : > { %14621 = vst [vmem:[#allocation48_spill] sm:$0xff] %v13562_v61  ;;  %v13564_v45 = vpop.f32.mrb[69].mxu1 }
 0x869   : > { %14622 = vst [vmem:[#allocation73_spill] sm:$0xff] %v13564_v45 }
 0x86b   : > { %v13566_v32 = vpop.f32.mrb[70].mxu1 }
 0x86c   : > { %14623 = vst [vmem:[#allocation40_spill] sm:$0xff] %v13566_v32  ;;  %v13568_v43 = vpop.f32.mrb[71].mxu1  ;;  %v14653_v32 = vld [vmem:[#allocation25_spill] sm:$0xff] }
 0x86d   : > { %14624 = vst [vmem:[#allocation46_spill] sm:$0xff] %v13568_v43 }
 0x8fa   : > { %v5603_v49 = vpop.f32.mrb[48].mxu0 }
 0x8fb   : > { %v13570_v40 = vadd.f32 %v5603_v49, %v4779_v19  ;;  %v5605_v12 = vpop.f32.mrb[49].mxu0 }
 0x8fc   : > { %v13572_v1 = vadd.f32 %v5605_v12, %v4779_v19  ;;  %v14632_v12 = vld [vmem:[#allocation7_spill] sm:$0xff] }
 0x8fd   : > { %14625 = vst [vmem:[#allocation30_spill] sm:$0xff] %v13570_v40  ;;  %v13575_v21 = vand.u32 4294901760, %v13570_v40 }
 0x8fe   : > { %14626 = vst [vmem:[#allocation41_spill] sm:$0xff] %v13572_v1  ;;  %v13578_v9 = vand.u32 4294901760, %v13572_v1  ;;  %v5610_v38 = vpop.f32.mrb[50].mxu0 }
 0x8ff   : > { %v13582_v39 = vsub.f32 %v13570_v40, %v13575_v21  ;;  %v13584_v16 = vadd.f32 %v5610_v38, %v4784_v48  ;;  %v5612_v50 = vpop.f32.mrb[51].mxu0 }
 0x900   : > { %v13588_v13 = vsub.f32 %v13572_v1, %v13578_v9  ;;  %v13590_v42 = vadd.f32 %v5612_v50, %v4784_v48  ;;  %6636 = vmatprep.mubr.f32.mxu0 %v13578_v9 }
 0x901   : > { %14627 = vst [vmem:[#allocation10_spill] sm:$0xff] %v13584_v16  ;;  %v14326_v8 = vand.u32 4294901760, %v13582_v39  ;;  %v13595_v3 = vand.u32 4294901760, %v13584_v16  ;;  %6638 = vmatmul.mubr.f32.vlgmr.msra.gmra.mrb[56].mxu0 %v13575_v21 }
 0x902   : > { %14628 = vst [vmem:[#allocation12_spill] sm:$0xff] %v13590_v42  ;;  %v13599_v29 = vand.u32 4294901760, %v13590_v42  ;;  %10623 = vmatpush3.bf16.msra.mxu0 %v11414_v22  ;;  %v5617_v7 = vpop.f32.mrb[52].mxu0  ;;  %v6352_v0 = vand.u32 4294901760, %v13588_v13 }
 0x903   : > { %v6359_v26 = vsub.f32 %v13582_v39, %v14326_v8  ;;  %v13608_v59 = vsub.f32 %v13584_v16, %v13595_v3  ;;  %v13610_v6 = vadd.f32 %v5617_v7, %v4789_v25  ;;  %v5619_v18 = vpop.f32.mrb[53].mxu0  ;;  %10625 = vmatprep.subr.bf16.mxu0 %v11416_v23  ;;  %v14642_v16 = vld [vmem:[#allocation52_spill] sm:$0xff] }
 0x904   : > { %v13615_v5 = vsub.f32 %v13590_v42, %v13599_v29  ;;  %v13617_v33 = vadd.f32 %v5619_v18, %v4789_v25  ;;  %6643 = vmatprep.mubr.f32.mxu0 %v13599_v29  ;;  %v6353_v4 = vsub.f32 %v13588_v13, %v6352_v0  ;;  %v14641_v42 = vld [vmem:[#allocation14_spill] sm:$0xff] }
 0x905   : > { %14629 = vst [vmem:[#allocation13_spill] sm:$0xff] %v13610_v6  ;;  %v13622_v11 = vand.u32 4294901760, %v13610_v6  ;;  %6645 = vmatmul.mubr.f32.gmra.mrb[58].mxu0 %v13595_v3  ;;  %v14324_v31 = vand.u32 4294901760, %v13608_v59  ;;  %v6360_v35 = vand.u32 4294901760, %v6359_v26 }
 0x906   : > { %14630 = vst [vmem:[#allocation16_spill] sm:$0xff] %v13617_v33  ;;  %v13627_v51 = vand.u32 4294901760, %v13617_v33  ;;  %10627 = vmatpush3.bf16.msra.mxu0 %v11432_v28  ;;  %v5624_v30 = vpop.f32.mrb[54].mxu0  ;;  %v6354_v24 = vand.u32 4294901760, %v6353_v4  ;;  %v14325_v47 = vand.u32 4294901760, %v13615_v5  ;;  %v14634_v4 = vld [vmem:[#allocation35_spill] sm:$0xff] }
 0x907   : > { %v13633_v41 = vsub.f32 %v13610_v6, %v13622_v11  ;;  %v13635_v19 = vadd.f32 %v5624_v30, %v4794_v44  ;;  %v5626_v49 = vpop.f32.mrb[55].mxu0  ;;  %10629 = vmatprep.subr.bf16.mxu0 %v14632_v12  ;;  %v6374_v48 = vsub.f32 %v13608_v59, %v14324_v31  ;;  %v14636_v31 = vld [vmem:[#allocation39_spill] sm:$0xff] }
 0x908   : > { %v13643_v38 = vsub.f32 %v13617_v33, %v13627_v51  ;;  %v13645_v50 = vadd.f32 %v5626_v49, %v4794_v44  ;;  %6355 = vmatprep.mubr.f32.mxu1 %v6354_v24  ;;  %6650 = vmatprep.mubr.f32.mxu0 %v13627_v51  ;;  %v6368_v25 = vsub.f32 %v13615_v5, %v14325_v47  ;;  %v14635_v44 = vld [vmem:[#allocation8_spill] sm:$0xff] }
 0x909   : > { %14631 = vst [vmem:[#allocation18_spill] sm:$0xff] %v13635_v19  ;;  %v13652_v7 = vand.u32 4294901760, %v13635_v19  ;;  %6361 = vmatmul.mubr.f32.vlgmr.msra.gmra.mrb[72].mxu1 %v6360_v35  ;;  %6652 = vmatmul.mubr.f32.gmra.mrb[60].mxu0 %v13622_v11  ;;  %v14331_v26 = vand.u32 4294901760, %v13633_v41  ;;  %v14637_v35 = vld [vmem:[#allocation9_spill] sm:$0xff]  ;;  %v6375_v47 = vand.u32 4294901760, %v6374_v48  ;;  %v14639_v48 = vld [vmem:[#allocation11_spill] sm:$0xff] }
 0x90a   : > { %14633 = vst [vmem:[#allocation20_spill] sm:$0xff] %v13645_v50  ;;  %v13657_v18 = vand.u32 4294901760, %v13645_v50  ;;  %10591 = vmatpush3.bf16.msra.mxu1 %v14634_v4  ;;  %10631 = vmatpush3.bf16.msra.mxu0 %v14635_v44  ;;  %v6369_v30 = vand.u32 4294901760, %v6368_v25  ;;  %v6382_v24 = vand.u32 4294901760, %v13643_v38  ;;  %v14645_v4 = vld [vmem:[#allocation17_spill] sm:$0xff] }
 0x90b   : > { %v13664_v49 = vsub.f32 %v13635_v19, %v13652_v7  ;;  %10593 = vmatprep.subr.bf16.mxu1 %v14636_v31  ;;  %10633 = vmatprep.subr.bf16.mxu0 %v14637_v35  ;;  %v6389_v8 = vsub.f32 %v13633_v41, %v14331_v26  ;;  %v14638_v19 = vld [vmem:[#allocation43_spill] sm:$0xff] }
 0x90c   : > { %v13673_v33 = vsub.f32 %v13645_v50, %v13657_v18  ;;  %6370 = vmatprep.mubr.f32.mxu1 %v6369_v30  ;;  %6657 = vmatprep.mubr.f32.mxu0 %v13657_v18  ;;  %v6383_v25 = vsub.f32 %v13643_v38, %v6382_v24  ;;  %v14640_v50 = vld [vmem:[#allocation45_spill] sm:$0xff] }
 0x90d   : > { %6376 = vmatmul.mubr.f32.gmra.mrb[74].mxu1 %v6375_v47  ;;  %6659 = vmatmul.mubr.f32.gmra.mrb[62].mxu0 %v13652_v7  ;;  %v6403_v6 = vand.u32 4294901760, %v13664_v49  ;;  %v6390_v30 = vand.u32 4294901760, %v6389_v8  ;;  %v14646_v8 = vld [vmem:[#allocation54_spill] sm:$0xff] }
 0x90e   : > { %10595 = vmatpush3.bf16.msra.mxu1 %v14638_v19  ;;  %10635 = vmatpush3.bf16.msra.mxu0 %v14639_v48  ;;  %v6384_v1 = vand.u32 4294901760, %v6383_v25  ;;  %v6397_v26 = vand.u32 4294901760, %v13673_v33  ;;  %v14643_v19 = vld [vmem:[#allocation15_spill] sm:$0xff]  ;;  %v14644_v25 = vld [vmem:[#allocation53_spill] sm:$0xff] }
 0x90f   : > { %6928 = vmatprep.mubr.f32.mxu0 %v6352_v0  ;;  %10597 = vmatprep.subr.bf16.mxu1 %v14640_v50  ;;  %v6404_v40 = vsub.f32 %v13664_v49, %v6403_v6  ;;  %v14648_v50 = vld [vmem:[#allocation55_spill] sm:$0xff] }
 0x910   : > { %6385 = vmatprep.mubr.f32.mxu1 %v6384_v1  ;;  %10637 = vmatprep.subr.bf16.mxu0 %v14641_v42  ;;  %v6398_v47 = vsub.f32 %v13673_v33, %v6397_v26  ;;  %v14647_v1 = vld [vmem:[#allocation19_spill] sm:$0xff] }
 0x911   : > { %6391 = vmatmul.mubr.f32.gmra.mrb[76].mxu1 %v6390_v30  ;;  %v6405_v0 = vand.u32 4294901760, %v6404_v40  ;;  %v14649_v30 = vld [vmem:[#allocation21_spill] sm:$0xff]  ;;  %v14654_v40 = vld [vmem:[#allocation68_spill] sm:$0xff] }
 0x912   : > { %10599 = vmatpush3.bf16.msra.mxu1 %v14642_v16  ;;  %10639 = vmatpush3.bf16.msra.mxu0 %v14643_v19  ;;  %v6399_v31 = vand.u32 4294901760, %v6398_v47  ;;  %v14650_v16 = vld [vmem:[#allocation62_spill] sm:$0xff]  ;;  %v14651_v47 = vld [vmem:[#allocation23_spill] sm:$0xff] }
 0x913   : > { %10601 = vmatprep.subr.bf16.mxu1 %v14644_v25  ;;  %10641 = vmatprep.subr.bf16.mxu0 %v14645_v4  ;;  %v14652_v25 = vld [vmem:[#allocation63_spill] sm:$0xff] }
 0x914   : > { %6400 = vmatprep.mubr.f32.mxu1 %v6399_v31  ;;  %v14655_v31 = vld [vmem:[#allocation27_spill] sm:$0xff] }
 0x915   : > { %6406 = vmatmul.mubr.f32.gmra.mrb[78].mxu1 %v6405_v0  ;;  %v14656_v0 = vld [vmem:[#allocation69_spill] sm:$0xff] }
 0x916   : > { %10603 = vmatpush3.bf16.msra.mxu1 %v14646_v8  ;;  %10643 = vmatpush3.bf16.msra.mxu0 %v14647_v1 }
 0x917   : > { %6794 = vmatprep.mubr.f32.mxu1 %v13588_v13  ;;  %10605 = vmatprep.subr.bf16.mxu1 %v14648_v50  ;;  %v14657_v13 = vand.u32 4294901760, %v13582_v39  ;;  %v14658_v50 = vld [vmem:[#allocation70_spill] sm:$0xff] }
 0x918   : > { %10645 = vmatprep.subr.bf16.mxu0 %v14649_v30 }
 0x91a   : > { %10607 = vmatpush3.bf16.msra.mxu1 %v14650_v16  ;;  %10647 = vmatpush3.bf16.msra.mxu0 %v14651_v47  ;;  %v14659_v16 = vand.u32 4294901760, %v13615_v5 }
 0x91b   : > { %10609 = vmatprep.subr.bf16.mxu1 %v14652_v25  ;;  %10649 = vmatprep.subr.bf16.mxu0 %v14653_v32  ;;  %v14660_v25 = vld [vmem:[#allocation71_spill] sm:$0xff] }
 0x91e   : > { %10611 = vmatpush3.bf16.msra.mxu1 %v14654_v40  ;;  %10651 = vmatpush3.bf16.msra.mxu0 %v14655_v31  ;;  %v14661_v40 = vand.u32 4294901760, %v13608_v59 }
 0x91f   : > { %10613 = vmatprep.subr.bf16.mxu1 %v14656_v0  ;;  %10685 = vmatprep.subr.bf16.mxu0 %v14472_v53  ;;  %v14662_v0 = vld [vmem:[#allocation37_spill] sm:$0xff] }
 0x921   : > { %6932 = vmatmul.mubr.f32.vlgmr.msra.gmra.mrb[64].mxu0 %v14657_v13  ;;  %v14663_v13 = vld [vmem:[#allocation56_spill] sm:$0xff] }
 0x922   : > { %10615 = vmatpush3.bf16.msra.mxu1 %v14658_v50  ;;  %6939 = vmatprep.mubr.f32.mxu0 %v14659_v16  ;;  %v14664_v16 = vand.u32 4294901760, %v13633_v41 }
 0x923   : > { %10687 = vmatpush3.bf16.msra.mxu0 %v11414_v22  ;;  %10617 = vmatprep.subr.bf16.mxu1 %v14660_v25  ;;  %v14665_v25 = vld [vmem:[#allocation57_spill] sm:$0xff] }
 0x924   : > { %10689 = vmatprep.subr.bf16.mxu0 %v11416_v23 }
 0x925   : > { %6943 = vmatmul.mubr.f32.gmra.mrb[66].mxu0 %v14661_v40  ;;  %v14666_v40 = vld [vmem:[#allocation58_spill] sm:$0xff] }
 0x926   : > { %10619 = vmatpush3.bf16.msra.mxu1 %v14662_v0  ;;  %6950 = vmatprep.mubr.f32.mxu0 %v6382_v24  ;;  %v14675_v24 = vld [vmem:[#allocation33_spill] sm:$0xff] }
 0x927   : > { %10691 = vmatpush3.bf16.msra.mxu0 %v11432_v28  ;;  %10653 = vmatprep.subr.bf16.mxu1 %v14663_v13 }
 0x928   : > { %10693 = vmatprep.subr.bf16.mxu0 %v14632_v12 }
 0x929   : > { %6797 = vmatmul.mubr.f32.vlgmr.msra.gmra.mrb[80].mxu1 %v13582_v39  ;;  %6954 = vmatmul.mubr.f32.gmra.mrb[68].mxu0 %v14664_v16  ;;  %v14667_v39 = vld [vmem:[#allocation59_spill] sm:$0xff]  ;;  %v14678_v16 = vld [vmem:[#allocation29_spill] sm:$0xff] }
 0x92a   : > { %6803 = vmatprep.mubr.f32.mxu1 %v13615_v5  ;;  %6961 = vmatprep.mubr.f32.mxu0 %v6397_v26  ;;  %v14668_v5 = vld [vmem:[#allocation60_spill] sm:$0xff]  ;;  %v14669_v26 = vld [vmem:[#allocation61_spill] sm:$0xff] }
 0x92b   : > { %10655 = vmatpush3.bf16.msra.mxu1 %v14665_v25  ;;  %10695 = vmatpush3.bf16.msra.mxu0 %v14635_v44 }
 0x92c   : > { %10657 = vmatprep.subr.bf16.mxu1 %v14666_v40  ;;  %10697 = vmatprep.subr.bf16.mxu0 %v14637_v35 }
 0x92d   : > { %6806 = vmatmul.mubr.f32.gmra.mrb[82].mxu1 %v13608_v59  ;;  %6965 = vmatmul.mubr.f32.gmra.mrb[70].mxu0 %v6403_v6  ;;  %v14670_v59 = vld [vmem:[#allocation64_spill] sm:$0xff]  ;;  %v14671_v6 = vld [vmem:[#allocation65_spill] sm:$0xff] }
 0x92e   : > { %6812 = vmatprep.mubr.f32.mxu1 %v13643_v38  ;;  %7256 = vmatprep.mubr.f32.mxu0 %v13578_v9  ;;  %v14672_v38 = vld [vmem:[#allocation66_spill] sm:$0xff] }
 0x92f   : > { %10659 = vmatpush3.bf16.msra.mxu1 %v14667_v39  ;;  %10699 = vmatpush3.bf16.msra.mxu0 %v14639_v48 }
 0x930   : > { %10661 = vmatprep.subr.bf16.mxu1 %v14668_v5  ;;  %10701 = vmatprep.subr.bf16.mxu0 %v14641_v42 }
 0x931   : > { %6815 = vmatmul.mubr.f32.gmra.mrb[84].mxu1 %v13633_v41  ;;  %v14674_v41 = vld [vmem:[#allocation38_spill] sm:$0xff] }
 0x932   : > { %6821 = vmatprep.mubr.f32.mxu1 %v13673_v33  ;;  %v14673_v33 = vld [vmem:[#allocation67_spill] sm:$0xff] }
 0x933   : > { %10663 = vmatpush3.bf16.msra.mxu1 %v14669_v26  ;;  %10703 = vmatpush3.bf16.msra.mxu0 %v14643_v19 }
 0x934   : > { %10665 = vmatprep.subr.bf16.mxu1 %v14670_v59  ;;  %10705 = vmatprep.subr.bf16.mxu0 %v14645_v4 }
 0x935   : > { %6824 = vmatmul.mubr.f32.gmra.mrb[86].mxu1 %v13664_v49  ;;  %v14677_v49 = vld [vmem:[#allocation6_spill] sm:$0xff] }
 0x936   : > { %7131 = vmatprep.mubr.f32.mxu1 %v13578_v9  ;;  %v14676_v9 = vld [vmem:[#allocation49_spill] sm:$0xff] }
 0x937   : > { %10667 = vmatpush3.bf16.msra.mxu1 %v14671_v6  ;;  %10707 = vmatpush3.bf16.msra.mxu0 %v14647_v1 }
 0x938   : > { %10669 = vmatprep.subr.bf16.mxu1 %v14672_v38  ;;  %10709 = vmatprep.subr.bf16.mxu0 %v14649_v30 }
 0x93b   : > { %10671 = vmatpush3.bf16.msra.mxu1 %v14673_v33  ;;  %10711 = vmatpush3.bf16.msra.mxu0 %v14651_v47 }
 0x93c   : > { %10673 = vmatprep.subr.bf16.mxu1 %v14674_v41  ;;  %10713 = vmatprep.subr.bf16.mxu0 %v14653_v32  ;;  %v13758_v41 = vand.u32 4294901760, %v13556_v10 }
 0x93f   : > { %10675 = vmatpush3.bf16.msra.mxu1 %v14675_v24  ;;  %10715 = vmatpush3.bf16.msra.mxu0 %v14655_v31 }
 0x940   : > { %10677 = vmatprep.subr.bf16.mxu1 %v14676_v9  ;;  %10749 = vmatprep.subr.bf16.mxu0 %v14603_v52  ;;  %v14679_v9 = vld [vmem:[#allocation72_spill] sm:$0xff]  ;;  %v13768_v52 = vsub.f32 %v13556_v10, %v13758_v41  ;;  %v14684_v10 = vld [vmem:[#allocation39_spill] sm:$0xff] }
 0x942   : > { %7258 = vmatmul.mubr.f32.vlgmr.msra.gmra.mrb[72].mxu0 %v13575_v21 }
 0x943   : > { %10679 = vmatpush3.bf16.msra.mxu1 %v14677_v49  ;;  %7263 = vmatprep.mubr.f32.mxu0 %v13599_v29 }
 0x944   : > { %10751 = vmatpush3.bf16.msra.mxu0 %v14604_v55  ;;  %10681 = vmatprep.subr.bf16.mxu1 %v14678_v16  ;;  %v14338_v55 = vand.u32 4294901760, %v13768_v52 }
 0x945   : > { %10753 = vmatprep.subr.bf16.mxu0 %v14605_v37 }
 0x946   : > { %7265 = vmatmul.mubr.f32.gmra.mrb[74].mxu0 %v13595_v3  ;;  %v7387_v37 = vsub.f32 %v13768_v52, %v14338_v55  ;;  %v14681_v55 = vld [vmem:[#allocation31_spill] sm:$0xff] }
 0x947   : > { %10683 = vmatpush3.bf16.msra.mxu1 %v14679_v9  ;;  %7270 = vmatprep.mubr.f32.mxu0 %v13627_v51 }
 0x948   : > { %10755 = vmatpush3.bf16.msra.mxu0 %v14606_v62  ;;  %10717 = vmatprep.subr.bf16.mxu1 %v14472_v53  ;;  %v7388_v62 = vand.u32 4294901760, %v7387_v37 }
 0x949   : > { %10757 = vmatprep.subr.bf16.mxu0 %v14607_v14  ;;  %v13801_v14 = vand.u32 4294901760, %v13554_v58 }
 0x94a   : > { %7133 = vmatmul.mubr.f32.vlgmr.msra.gmra.mrb[88].mxu1 %v13575_v21  ;;  %7272 = vmatmul.mubr.f32.gmra.mrb[76].mxu0 %v13622_v11 }
 0x94b   : > { %7138 = vmatprep.mubr.f32.mxu1 %v13599_v29  ;;  %7277 = vmatprep.mubr.f32.mxu0 %v13657_v18  ;;  %v14680_v29 = vld [vmem:[#allocation40_spill] sm:$0xff] }
 0x94c   : > { %10719 = vmatpush3.bf16.msra.mxu1 %v11414_v22  ;;  %10759 = vmatpush3.bf16.msra.mxu0 %v14608_v46  ;;  %v13806_v46 = vand.u32 4294901760, %v13560_v54 }
 0x94d   : > { %10721 = vmatprep.subr.bf16.mxu1 %v11416_v23  ;;  %10761 = vmatprep.subr.bf16.mxu0 %v14609_v57  ;;  %v13812_v57 = vsub.f32 %v13554_v58, %v13801_v14 }
 0x94e   : > { %7140 = vmatmul.mubr.f32.gmra.mrb[90].mxu1 %v13595_v3  ;;  %7279 = vmatmul.mubr.f32.gmra.mrb[78].mxu0 %v13652_v7 }
 0x94f   : > { %7145 = vmatprep.mubr.f32.mxu1 %v13627_v51  ;;  %7670 = vmatprep.mubr.f32.mxu0 %v13758_v41 }
 0x950   : > { %10723 = vmatpush3.bf16.msra.mxu1 %v11432_v28  ;;  %10763 = vmatpush3.bf16.msra.mxu0 %v14610_v15  ;;  %v13815_v15 = vand.u32 4294901760, %v13558_v60 }
 0x951   : > { %10725 = vmatprep.subr.bf16.mxu1 %v14632_v12  ;;  %10765 = vmatprep.subr.bf16.mxu0 %v14611_v20  ;;  %v13821_v20 = vsub.f32 %v13560_v54, %v13806_v46 }
 0x952   : > { %7147 = vmatmul.mubr.f32.gmra.mrb[92].mxu1 %v13622_v11  ;;  %v13857_v11 = vand.u32 4294901760, %v14680_v29 }
 0x953   : > { %7152 = vmatprep.mubr.f32.mxu1 %v13657_v18 }
 0x954   : > { %10727 = vmatpush3.bf16.msra.mxu1 %v14635_v44  ;;  %10767 = vmatpush3.bf16.msra.mxu0 %v14612_v2  ;;  %v13824_v2 = vand.u32 4294901760, %v13564_v45 }
 0x955   : > { %10729 = vmatprep.subr.bf16.mxu1 %v14637_v35  ;;  %10769 = vmatprep.subr.bf16.mxu0 %v14613_v34  ;;  %v14337_v34 = vand.u32 4294901760, %v13812_v57 }
 0x956   : > { %7154 = vmatmul.mubr.f32.gmra.mrb[94].mxu1 %v13652_v7 }
 0x957   : > { %7389 = vmatprep.mubr.f32.mxu1 %v7388_v62  ;;  %v7393_v21 = vsub.f32 %v13812_v57, %v14337_v34  ;;  %v13876_v34 = vsub.f32 %v14680_v29, %v13857_v11 }
 0x958   : > { %10731 = vmatpush3.bf16.msra.mxu1 %v14639_v48  ;;  %10771 = vmatpush3.bf16.msra.mxu0 %v14614_v56  ;;  %v13831_v56 = vsub.f32 %v13558_v60, %v13815_v15 }
 0x959   : > { %10733 = vmatprep.subr.bf16.mxu1 %v14641_v42  ;;  %10773 = vmatprep.subr.bf16.mxu0 %v14615_v63  ;;  %v13834_v63 = vand.u32 4294901760, %v13562_v61  ;;  %v7394_v62 = vand.u32 4294901760, %v7393_v21 }
 0x95a   : > { %v14343_v51 = vand.u32 4294901760, %v13831_v56 }
 0x95b   : > { %v13854_v3 = vsub.f32 %v13562_v61, %v13834_v63 }
 0x95c   : > { %10735 = vmatpush3.bf16.msra.mxu1 %v14643_v19  ;;  %10775 = vmatpush3.bf16.msra.mxu0 %v14616_v36  ;;  %v13840_v36 = vsub.f32 %v13564_v45, %v13824_v2 }
 0x95d   : > { %10737 = vmatprep.subr.bf16.mxu1 %v14645_v4  ;;  %10777 = vmatprep.subr.bf16.mxu0 %v14617_v27  ;;  %v13843_v27 = vand.u32 4294901760, %v13568_v43  ;;  %v7422_v37 = vand.u32 4294901760, %v13854_v3 }
 0x95e   : > { %v14682_v61 = vand.u32 4294901760, %v13840_v36 }
 0x95f   : > { %v13864_v7 = vsub.f32 %v13568_v43, %v13843_v27  ;;  %v7423_v29 = vsub.f32 %v13854_v3, %v7422_v37 }
 0x960   : > { %10739 = vmatpush3.bf16.msra.mxu1 %v14647_v1  ;;  %10779 = vmatpush3.bf16.msra.mxu0 %v14618_v17  ;;  %v14339_v17 = vand.u32 4294901760, %v13821_v20  ;;  %v7417_v21 = vsub.f32 %v13840_v36, %v14682_v61 }
 0x961   : > { %10741 = vmatprep.subr.bf16.mxu1 %v14649_v30  ;;  %10813 = vmatprep.subr.bf16.mxu0 %v14472_v53  ;;  %v7431_v43 = vand.u32 4294901760, %v13864_v7 }
 0x962   : > { %v7402_v18 = vsub.f32 %v13821_v20, %v14339_v17  ;;  %v7408_v17 = vsub.f32 %v13831_v56, %v14343_v51  ;;  %v7418_v61 = vand.u32 4294901760, %v7417_v21 }
 0x963   : > { %7672 = vmatmul.mubr.f32.vlgmr.msra.gmra.mrb[80].mxu0 %v13801_v14 }
 0x964   : > { %10743 = vmatpush3.bf16.msra.mxu1 %v14651_v47  ;;  %7677 = vmatprep.mubr.f32.mxu0 %v13806_v46  ;;  %v7403_v45 = vand.u32 4294901760, %v7402_v18  ;;  %v7409_v51 = vand.u32 4294901760, %v7408_v17  ;;  %v7437_v18 = vand.u32 4294901760, %v13876_v34  ;;  %v7424_v17 = vand.u32 4294901760, %v7423_v29  ;;  %v14690_v29 = vld [vmem:[#allocation55_spill] sm:$0xff] }
 0x965   : > { %10815 = vmatpush3.bf16.msra.mxu0 %v11414_v22  ;;  %10745 = vmatprep.subr.bf16.mxu1 %v14653_v32 }
 0x966   : > { %10817 = vmatprep.subr.bf16.mxu0 %v11416_v23  ;;  %v7438_v58 = vsub.f32 %v13876_v34, %v7437_v18 }
 0x967   : > { %7679 = vmatmul.mubr.f32.gmra.mrb[82].mxu0 %v13815_v15 }
 0x968   : > { %10747 = vmatpush3.bf16.msra.mxu1 %v14655_v31  ;;  %7684 = vmatprep.mubr.f32.mxu0 %v13824_v2 }
 0x969   : > { %10819 = vmatpush3.bf16.msra.mxu0 %v11432_v28  ;;  %10781 = vmatprep.subr.bf16.mxu1 %v14681_v55  ;;  %v14683_v55 = vld [vmem:[#allocation35_spill] sm:$0xff] }
 0x96a   : > { %10821 = vmatprep.subr.bf16.mxu0 %v14632_v12 }
 0x96b   : > { %7395 = vmatmul.mubr.f32.vlgmr.msra.gmra.mrb[96].mxu1 %v7394_v62  ;;  %7686 = vmatmul.mubr.f32.gmra.mrb[84].mxu0 %v13834_v63  ;;  %v7432_v62 = vsub.f32 %v13864_v7, %v7431_v43 }
 0x96c   : > { %7404 = vmatprep.mubr.f32.mxu1 %v7403_v45  ;;  %7691 = vmatprep.mubr.f32.mxu0 %v13843_v27  ;;  %v14685_v45 = vand.u32 4294901760, %v13768_v52 }
 0x96d   : > { %10783 = vmatpush3.bf16.msra.mxu1 %v14683_v55  ;;  %10823 = vmatpush3.bf16.msra.mxu0 %v14635_v44  ;;  %v14686_v55 = vld [vmem:[#allocation43_spill] sm:$0xff]  ;;  %v7433_v21 = vand.u32 4294901760, %v7432_v62  ;;  %v14691_v62 = vld [vmem:[#allocation62_spill] sm:$0xff] }
 0x96e   : > { %10785 = vmatprep.subr.bf16.mxu1 %v14684_v10  ;;  %10825 = vmatprep.subr.bf16.mxu0 %v14637_v35  ;;  %v14687_v10 = vld [vmem:[#allocation45_spill] sm:$0xff] }
 0x96f   : > { %7410 = vmatmul.mubr.f32.gmra.mrb[98].mxu1 %v7409_v51  ;;  %7693 = vmatmul.mubr.f32.gmra.mrb[86].mxu0 %v13857_v11  ;;  %v14688_v51 = vld [vmem:[#allocation52_spill] sm:$0xff] }
 0x970   : > { %7419 = vmatprep.mubr.f32.mxu1 %v7418_v61  ;;  %7962 = vmatprep.mubr.f32.mxu0 %v14685_v45  ;;  %v7439_v61 = vand.u32 4294901760, %v7438_v58  ;;  %v14689_v45 = vld [vmem:[#allocation53_spill] sm:$0xff]  ;;  %v14692_v58 = vld [vmem:[#allocation63_spill] sm:$0xff] }
 0x971   : > { %10787 = vmatpush3.bf16.msra.mxu1 %v14686_v55  ;;  %10827 = vmatpush3.bf16.msra.mxu0 %v14639_v48  ;;  %v14693_v55 = vld [vmem:[#allocation68_spill] sm:$0xff] }
 0x972   : > { %10789 = vmatprep.subr.bf16.mxu1 %v14687_v10  ;;  %10829 = vmatprep.subr.bf16.mxu0 %v14641_v42  ;;  %v14697_v10 = vld [vmem:[#allocation71_spill] sm:$0xff] }
 0x973   : > { %7425 = vmatmul.mubr.f32.gmra.mrb[100].mxu1 %v7424_v17  ;;  %v14696_v17 = vand.u32 4294901760, %v13821_v20 }
 0x974   : > { %7434 = vmatprep.mubr.f32.mxu1 %v7433_v21  ;;  %v14698_v21 = vand.u32 4294901760, %v13831_v56 }
 0x975   : > { %10791 = vmatpush3.bf16.msra.mxu1 %v14688_v51  ;;  %10831 = vmatpush3.bf16.msra.mxu0 %v14643_v19 }
 0x976   : > { %10793 = vmatprep.subr.bf16.mxu1 %v14689_v45  ;;  %10833 = vmatprep.subr.bf16.mxu0 %v14645_v4 }
 0x977   : > { %7440 = vmatmul.mubr.f32.gmra.mrb[102].mxu1 %v7439_v61 }
 0x978   : > { %7828 = vmatprep.mubr.f32.mxu1 %v13768_v52  ;;  %v14694_v52 = vld [vmem:[#allocation69_spill] sm:$0xff] }
 0x979   : > { %10795 = vmatpush3.bf16.msra.mxu1 %v14646_v8  ;;  %10835 = vmatpush3.bf16.msra.mxu0 %v14647_v1  ;;  %v14695_v8 = vand.u32 4294901760, %v13812_v57 }
 0x97a   : > { %10797 = vmatprep.subr.bf16.mxu1 %v14690_v29  ;;  %10837 = vmatprep.subr.bf16.mxu0 %v14649_v30 }
 0x97d   : > { %10799 = vmatpush3.bf16.msra.mxu1 %v14691_v62  ;;  %10839 = vmatpush3.bf16.msra.mxu0 %v14651_v47 }
 0x97e   : > { %10801 = vmatprep.subr.bf16.mxu1 %v14692_v58  ;;  %10841 = vmatprep.subr.bf16.mxu0 %v14653_v32 }
 0x981   : > { %10803 = vmatpush3.bf16.msra.mxu1 %v14693_v55  ;;  %10843 = vmatpush3.bf16.msra.mxu0 %v14655_v31 }
 0x982   : > { %10805 = vmatprep.subr.bf16.mxu1 %v14694_v52  ;;  %10877 = vmatprep.subr.bf16.mxu0 %v14472_v53  ;;  %v14699_v53 = vand.u32 4294901760, %v13840_v36 }
 0x984   : > { %7966 = vmatmul.mubr.f32.vlgmr.msra.gmra.mrb[88].mxu0 %v14695_v8 }
 0x985   : > { %10807 = vmatpush3.bf16.msra.mxu1 %v14658_v50  ;;  %7973 = vmatprep.mubr.f32.mxu0 %v14696_v17 }
 0x986   : > { %10879 = vmatpush3.bf16.msra.mxu0 %v11414_v22  ;;  %10809 = vmatprep.subr.bf16.mxu1 %v14697_v10  ;;  %v14700_v22 = vld [vmem:[#allocation38_spill] sm:$0xff] }
 0x987   : > { %10881 = vmatprep.subr.bf16.mxu0 %v11416_v23  ;;  %v14701_v23 = vld [vmem:[#allocation49_spill] sm:$0xff] }
 0x988   : > { %7977 = vmatmul.mubr.f32.gmra.mrb[90].mxu0 %v14698_v21 }
 0x989   : > { %10811 = vmatpush3.bf16.msra.mxu1 %v14662_v0  ;;  %7984 = vmatprep.mubr.f32.mxu0 %v14699_v53 }
 0x98a   : > { %10883 = vmatpush3.bf16.msra.mxu0 %v11432_v28  ;;  %10845 = vmatprep.subr.bf16.mxu1 %v14663_v13 }
 0x98b   : > { %10885 = vmatprep.subr.bf16.mxu0 %v14632_v12 }
 0x98c   : > { %7831 = vmatmul.mubr.f32.vlgmr.msra.gmra.mrb[104].mxu1 %v13812_v57  ;;  %7988 = vmatmul.mubr.f32.gmra.mrb[92].mxu0 %v7422_v37 }
 0x98d   : > { %7837 = vmatprep.mubr.f32.mxu1 %v13821_v20  ;;  %7995 = vmatprep.mubr.f32.mxu0 %v7431_v43 }
 0x98e   : > { %10847 = vmatpush3.bf16.msra.mxu1 %v14665_v25  ;;  %10887 = vmatpush3.bf16.msra.mxu0 %v14635_v44 }
 0x98f   : > { %10849 = vmatprep.subr.bf16.mxu1 %v14666_v40  ;;  %10889 = vmatprep.subr.bf16.mxu0 %v14637_v35 }
 0x990   : > { %7840 = vmatmul.mubr.f32.gmra.mrb[106].mxu1 %v13831_v56  ;;  %7999 = vmatmul.mubr.f32.gmra.mrb[94].mxu0 %v7437_v18 }
 0x991   : > { %7846 = vmatprep.mubr.f32.mxu1 %v13840_v36  ;;  %8290 = vmatprep.mubr.f32.mxu0 %v13758_v41 }
 0x992   : > { %10851 = vmatpush3.bf16.msra.mxu1 %v14667_v39  ;;  %10891 = vmatpush3.bf16.msra.mxu0 %v14639_v48 }
 0x993   : > { %10853 = vmatprep.subr.bf16.mxu1 %v14668_v5  ;;  %10893 = vmatprep.subr.bf16.mxu0 %v14641_v42 }
 0x994   : > { %7849 = vmatmul.mubr.f32.gmra.mrb[108].mxu1 %v13854_v3 }
 0x995   : > { %7855 = vmatprep.mubr.f32.mxu1 %v13864_v7 }
 0x996   : > { %10855 = vmatpush3.bf16.msra.mxu1 %v14669_v26  ;;  %10895 = vmatpush3.bf16.msra.mxu0 %v14643_v19 }
 0x997   : > { %10857 = vmatprep.subr.bf16.mxu1 %v14670_v59  ;;  %10897 = vmatprep.subr.bf16.mxu0 %v14645_v4 }
 0x998   : > { %7858 = vmatmul.mubr.f32.gmra.mrb[110].mxu1 %v13876_v34 }
 0x999   : > { %8165 = vmatprep.mubr.f32.mxu1 %v13758_v41 }
 0x99a   : > { %10859 = vmatpush3.bf16.msra.mxu1 %v14671_v6  ;;  %10899 = vmatpush3.bf16.msra.mxu0 %v14647_v1 }
 0x99b   : > { %10861 = vmatprep.subr.bf16.mxu1 %v14672_v38  ;;  %10901 = vmatprep.subr.bf16.mxu0 %v14649_v30 }
 0x99e   : > { %10863 = vmatpush3.bf16.msra.mxu1 %v14673_v33  ;;  %10903 = vmatpush3.bf16.msra.mxu0 %v14651_v47 }
 0x99f   : > { %10865 = vmatprep.subr.bf16.mxu1 %v14700_v22  ;;  %10905 = vmatprep.subr.bf16.mxu0 %v14653_v32 }
 0x9a2   : > { %10867 = vmatpush3.bf16.msra.mxu1 %v14675_v24  ;;  %10907 = vmatpush3.bf16.msra.mxu0 %v14655_v31 }
 0x9a3   : > { %10869 = vmatprep.subr.bf16.mxu1 %v14701_v23 }
 0x9a5   : > { %8292 = vmatmul.mubr.f32.vlgmr.msra.gmra.mrb[96].mxu0 %v13801_v14 }
 0x9a6   : > { %10871 = vmatpush3.bf16.msra.mxu1 %v14677_v49  ;;  %8297 = vmatprep.mubr.f32.mxu0 %v13806_v46 }
 0x9a7   : > { %10873 = vmatprep.subr.bf16.mxu1 %v14678_v16 }
 0x9a9   : > { %8299 = vmatmul.mubr.f32.gmra.mrb[98].mxu0 %v13815_v15 }
 0x9aa   : > { %10875 = vmatpush3.bf16.msra.mxu1 %v14679_v9  ;;  %8304 = vmatprep.mubr.f32.mxu0 %v13824_v2 }
 0x9ad   : > { %8167 = vmatmul.mubr.f32.vlgmr.msra.gmra.mrb[112].mxu1 %v13801_v14  ;;  %8306 = vmatmul.mubr.f32.gmra.mrb[100].mxu0 %v13834_v63 }
 0x9ae   : > { %8172 = vmatprep.mubr.f32.mxu1 %v13806_v46  ;;  %8311 = vmatprep.mubr.f32.mxu0 %v13843_v27 }
 0x9b1   : > { %8174 = vmatmul.mubr.f32.gmra.mrb[114].mxu1 %v13815_v15  ;;  %8313 = vmatmul.mubr.f32.gmra.mrb[102].mxu0 %v13857_v11 }
 0x9b2   : > { %8179 = vmatprep.mubr.f32.mxu1 %v13824_v2 }
 0x9b5   : > { %8181 = vmatmul.mubr.f32.gmra.mrb[116].mxu1 %v13834_v63 }
 0x9b6   : > { %8186 = vmatprep.mubr.f32.mxu1 %v13843_v27 }
 0x9b9   : > { %8188 = vmatmul.mubr.f32.gmra.mrb[118].mxu1 %v13857_v11 }
 0x9d4   : > { %v9280_v28 = vpop.f32.mrb[56].mxu0 }
 0x9d5   : > { %v9281_v32 = vpop.f32.mrb[57].mxu0 }
 0x9d6   : > { %v9282_v43 = vadd.f32 %v9281_v32, %v9280_v28 }
 0x9d8   : > { %v9283_v42 = vpop.f32.mrb[58].mxu0 }
 0x9d9   : > { %v9284_v19 = vpop.f32.mrb[59].mxu0 }
 0x9da   : > { %v9285_v12 = vadd.f32 %v9284_v19, %v9283_v42 }
 0x9dc   : > { %v9236_v50 = vpop.f32.mrb[72].mxu1  ;;  %v9286_v4 = vpop.f32.mrb[60].mxu0 }
 0x9dd   : > { %v9237_v44 = vpop.f32.mrb[73].mxu1  ;;  %v9287_v35 = vpop.f32.mrb[61].mxu0 }
 0x9de   : > { %v9238_v48 = vadd.f32 %v9237_v44, %v9236_v50  ;;  %v9288_v25 = vadd.f32 %v9287_v35, %v9286_v4 }
 0x9e0   : > { %v6640_v1 = vadd.f32 %v9282_v43, %v9238_v48  ;;  %v9239_v30 = vpop.f32.mrb[74].mxu1  ;;  %v9289_v47 = vpop.f32.mrb[62].mxu0 }
 0x9e1   : > { %v9240_v31 = vpop.f32.mrb[75].mxu1  ;;  %v9290_v0 = vpop.f32.mrb[63].mxu0 }
 0x9e2   : > { %v9241_v13 = vadd.f32 %v9240_v31, %v9239_v30  ;;  %v9291_v40 = vadd.f32 %v9290_v0, %v9289_v47 }
 0x9e4   : > { %v6647_v39 = vadd.f32 %v9285_v12, %v9241_v13  ;;  %v9242_v5 = vpop.f32.mrb[76].mxu1 }
 0x9e5   : > { %v9243_v26 = vpop.f32.mrb[77].mxu1 }
 0x9e6   : > { %v9244_v59 = vadd.f32 %v9243_v26, %v9242_v5 }
 0x9e8   : > { %v6654_v6 = vadd.f32 %v9288_v25, %v9244_v59  ;;  %v9245_v38 = vpop.f32.mrb[78].mxu1 }
 0x9e9   : > { %v9246_v33 = vpop.f32.mrb[79].mxu1 }
 0x9ea   : > { %v9247_v41 = vadd.f32 %v9246_v33, %v9245_v38 }
 0x9ec   : > { %v6661_v24 = vadd.f32 %v9291_v40, %v9247_v41 }
 0x9f4   : > { %v9368_v9 = vpop.f32.mrb[64].mxu0 }
 0x9f5   : > { %v9369_v49 = vpop.f32.mrb[65].mxu0 }
 0x9f6   : > { %v9370_v16 = vadd.f32 %v9369_v49, %v9368_v9 }
 0x9f8   : > { %v9371_v14 = vpop.f32.mrb[66].mxu0 }
 0x9f9   : > { %v9372_v46 = vpop.f32.mrb[67].mxu0 }
 0x9fa   : > { %v9373_v57 = vadd.f32 %v9372_v46, %v9371_v14 }
 0x9fc   : > { %v9324_v15 = vpop.f32.mrb[80].mxu1  ;;  %v9374_v20 = vpop.f32.mrb[68].mxu0 }
 0x9fd   : > { %v9325_v2 = vpop.f32.mrb[81].mxu1  ;;  %v9375_v34 = vpop.f32.mrb[69].mxu0 }
 0x9fe   : > { %v9326_v56 = vadd.f32 %v9325_v2, %v9324_v15  ;;  %v9376_v63 = vadd.f32 %v9375_v34, %v9374_v20 }
 0xa00   : > { %v6799_v36 = vadd.f32 %v9326_v56, %v6640_v1  ;;  %v9327_v27 = vpop.f32.mrb[82].mxu1  ;;  %v9377_v3 = vpop.f32.mrb[70].mxu0 }
 0xa01   : > { %v9328_v11 = vpop.f32.mrb[83].mxu1  ;;  %v9378_v7 = vpop.f32.mrb[71].mxu0 }
 0xa02   : > { %v9329_v37 = vadd.f32 %v9328_v11, %v9327_v27  ;;  %v9379_v18 = vadd.f32 %v9378_v7, %v9377_v3  ;;  %v6934_v51 = vadd.f32 %v9370_v16, %v6799_v36 }
 0xa04   : > { %v6808_v61 = vadd.f32 %v9329_v37, %v6647_v39  ;;  %v9330_v45 = vpop.f32.mrb[84].mxu1 }
 0xa05   : > { %v9331_v29 = vpop.f32.mrb[85].mxu1 }
 0xa06   : > { %v9332_v62 = vadd.f32 %v9331_v29, %v9330_v45  ;;  %v6945_v58 = vadd.f32 %v9373_v57, %v6808_v61 }
 0xa08   : > { %v6817_v55 = vadd.f32 %v9332_v62, %v6654_v6  ;;  %v9333_v52 = vpop.f32.mrb[86].mxu1 }
 0xa09   : > { %v9334_v8 = vpop.f32.mrb[87].mxu1 }
 0xa0a   : > { %v9335_v17 = vadd.f32 %v9334_v8, %v9333_v52  ;;  %v6956_v10 = vadd.f32 %v9376_v63, %v6817_v55 }
 0xa0c   : > { %v6826_v21 = vadd.f32 %v9335_v17, %v6661_v24 }
 0xa0e   : > { %v6967_v53 = vadd.f32 %v9379_v18, %v6826_v21 }
 0xa15   : > { %v9456_v22 = vpop.f32.mrb[72].mxu0 }
 0xa16   : > { %v9457_v23 = vpop.f32.mrb[73].mxu0 }
 0xa17   : > { %v9458_v28 = vadd.f32 %v9457_v23, %v9456_v22 }
 0xa19   : > { %v9459_v32 = vpop.f32.mrb[74].mxu0 }
 0xa1a   : > { %v9460_v43 = vpop.f32.mrb[75].mxu0 }
 0xa1b   : > { %v9461_v42 = vadd.f32 %v9460_v43, %v9459_v32 }
 0xa1d   : > { %v9412_v19 = vpop.f32.mrb[88].mxu1  ;;  %v9462_v12 = vpop.f32.mrb[76].mxu0 }
 0xa1e   : > { %v9413_v50 = vpop.f32.mrb[89].mxu1  ;;  %v9463_v4 = vpop.f32.mrb[77].mxu0 }
 0xa1f   : > { %v9414_v44 = vadd.f32 %v9413_v50, %v9412_v19  ;;  %v9464_v35 = vadd.f32 %v9463_v4, %v9462_v12 }
 0xa21   : > { %v7135_v48 = vadd.f32 %v9414_v44, %v6934_v51  ;;  %v9415_v25 = vpop.f32.mrb[90].mxu1  ;;  %v9465_v1 = vpop.f32.mrb[78].mxu0 }
 0xa22   : > { %v9416_v30 = vpop.f32.mrb[91].mxu1  ;;  %v9466_v47 = vpop.f32.mrb[79].mxu0 }
 0xa23   : > { %v7260_v31 = vadd.f32 %v9458_v28, %v7135_v48  ;;  %v9417_v0 = vadd.f32 %v9416_v30, %v9415_v25  ;;  %v9467_v13 = vadd.f32 %v9466_v47, %v9465_v1 }
 0xa25   : > { %v7142_v40 = vadd.f32 %v9417_v0, %v6945_v58  ;;  %v9418_v39 = vpop.f32.mrb[92].mxu1  ;;  %v13988_v26 = vmul.f32 0.00390625, %v7260_v31 }
 0xa26   : > { %v9419_v5 = vpop.f32.mrb[93].mxu1 }
 0xa27   : > { %v7267_v59 = vadd.f32 %v9461_v42, %v7142_v40  ;;  %v9420_v6 = vadd.f32 %v9419_v5, %v9418_v39  ;;  %v8323_v9 = vsel %vm8322_vm3, %v13988_v26, -inf }
 0xa29   : > { %v13990_v38 = vmul.f32 0.00390625, %v7267_v59  ;;  %v7149_v33 = vadd.f32 %v9420_v6, %v6956_v10  ;;  %v9421_v41 = vpop.f32.mrb[94].mxu1 }
 0xa2a   : > { %v9422_v24 = vpop.f32.mrb[95].mxu1 }
 0xa2b   : > { %v8324_v49 = vsel %vm8322_vm3, %v13990_v38, -inf  ;;  %v7274_v16 = vadd.f32 %v9464_v35, %v7149_v33  ;;  %v9423_v14 = vadd.f32 %v9422_v24, %v9421_v41 }
 0xa2c   : > { %v8327_v46 = vmax.f32 %v8323_v9, %v8324_v49 }
 0xa2d   : > { %v7156_v57 = vadd.f32 %v9423_v14, %v6967_v53  ;;  %v13996_v15 = vmul.f32 0.00390625, %v7274_v16 }
 0xa2f   : > { %v7281_v20 = vadd.f32 %v9467_v13, %v7156_v57  ;;  %v8325_v34 = vsel %vm8322_vm3, %v13996_v15, -inf }
 0xa31   : > { %v13998_v2 = vmul.f32 0.00390625, %v7281_v20 }
 0xa33   : > { %v8326_v56 = vsel %vm8322_vm3, %v13998_v2, -inf }
 0xa34   : > { %v8328_v63 = vmax.f32 %v8325_v34, %v8326_v56 }
 0xa36   : > { %v14004_v36 = vmax.f32 %v8327_v46, %v8328_v63  ;;  %v9544_v27 = vpop.f32.mrb[80].mxu0 }
 0xa37   : > { %v9545_v3 = vpop.f32.mrb[81].mxu0 }
 0xa38   : > { %v9546_v11 = vadd.f32 %v9545_v3, %v9544_v27 }
 0xa3a   : > { %v9547_v7 = vpop.f32.mrb[82].mxu0 }
 0xa3b   : > { %v9548_v37 = vpop.f32.mrb[83].mxu0 }
 0xa3c   : > { %v9549_v18 = vadd.f32 %v9548_v37, %v9547_v7 }
 0xa3e   : > { %v9500_v51 = vpop.f32.mrb[96].mxu1  ;;  %v9550_v61 = vpop.f32.mrb[84].mxu0 }
 0xa3f   : > { %v9501_v45 = vpop.f32.mrb[97].mxu1  ;;  %v9551_v29 = vpop.f32.mrb[85].mxu0 }
 0xa40   : > { %v9502_v62 = vadd.f32 %v9501_v45, %v9500_v51  ;;  %v9552_v58 = vadd.f32 %v9551_v29, %v9550_v61 }
 0xa42   : > { %v7674_v55 = vadd.f32 %v9546_v11, %v9502_v62  ;;  %v9503_v52 = vpop.f32.mrb[98].mxu1  ;;  %v9553_v8 = vpop.f32.mrb[86].mxu0 }
 0xa43   : > { %v9504_v17 = vpop.f32.mrb[99].mxu1  ;;  %v9554_v10 = vpop.f32.mrb[87].mxu0 }
 0xa44   : > { %v9505_v21 = vadd.f32 %v9504_v17, %v9503_v52  ;;  %v9555_v53 = vadd.f32 %v9554_v10, %v9553_v8 }
 0xa46   : > { %v7681_v22 = vadd.f32 %v9549_v18, %v9505_v21  ;;  %v9506_v23 = vpop.f32.mrb[100].mxu1 }
 0xa47   : > { %v9507_v28 = vpop.f32.mrb[101].mxu1 }
 0xa48   : > { %v9508_v32 = vadd.f32 %v9507_v28, %v9506_v23 }
 0xa4a   : > { %v7688_v43 = vadd.f32 %v9552_v58, %v9508_v32  ;;  %v9509_v42 = vpop.f32.mrb[102].mxu1 }
 0xa4b   : > { %v9510_v19 = vpop.f32.mrb[103].mxu1 }
 0xa4c   : > { %v9511_v12 = vadd.f32 %v9510_v19, %v9509_v42 }
 0xa4e   : > { %v7695_v50 = vadd.f32 %v9555_v53, %v9511_v12 }
 0xa57   : > { %v9632_v4 = vpop.f32.mrb[88].mxu0 }
 0xa58   : > { %v9633_v44 = vpop.f32.mrb[89].mxu0 }
 0xa59   : > { %v9634_v35 = vadd.f32 %v9633_v44, %v9632_v4 }
 0xa5b   : > { %v9635_v48 = vpop.f32.mrb[90].mxu0 }
 0xa5c   : > { %v9636_v25 = vpop.f32.mrb[91].mxu0 }
 0xa5d   : > { %v9637_v1 = vadd.f32 %v9636_v25, %v9635_v48 }
 0xa5f   : > { %v9588_v30 = vpop.f32.mrb[104].mxu1  ;;  %v9638_v47 = vpop.f32.mrb[92].mxu0 }
 0xa60   : > { %v9589_v31 = vpop.f32.mrb[105].mxu1  ;;  %v9639_v0 = vpop.f32.mrb[93].mxu0 }
 0xa61   : > { %v9590_v13 = vadd.f32 %v9589_v31, %v9588_v30  ;;  %v9640_v40 = vadd.f32 %v9639_v0, %v9638_v47 }
 0xa63   : > { %v7833_v39 = vadd.f32 %v9590_v13, %v7674_v55  ;;  %v9591_v5 = vpop.f32.mrb[106].mxu1  ;;  %v9641_v59 = vpop.f32.mrb[94].mxu0 }
 0xa64   : > { %v9592_v6 = vpop.f32.mrb[107].mxu1  ;;  %v9642_v33 = vpop.f32.mrb[95].mxu0 }
 0xa65   : > { %v9593_v41 = vadd.f32 %v9592_v6, %v9591_v5  ;;  %v9643_v24 = vadd.f32 %v9642_v33, %v9641_v59  ;;  %v7968_v9 = vadd.f32 %v9634_v35, %v7833_v39 }
 0xa67   : > { %v7842_v49 = vadd.f32 %v9593_v41, %v7681_v22  ;;  %v9594_v16 = vpop.f32.mrb[108].mxu1 }
 0xa68   : > { %v9595_v14 = vpop.f32.mrb[109].mxu1 }
 0xa69   : > { %v9596_v46 = vadd.f32 %v9595_v14, %v9594_v16  ;;  %v7979_v57 = vadd.f32 %v9637_v1, %v7842_v49 }
 0xa6b   : > { %v7851_v20 = vadd.f32 %v9596_v46, %v7688_v43  ;;  %v9597_v34 = vpop.f32.mrb[110].mxu1 }
 0xa6c   : > { %v9598_v56 = vpop.f32.mrb[111].mxu1 }
 0xa6d   : > { %v9599_v63 = vadd.f32 %v9598_v56, %v9597_v34  ;;  %v7990_v27 = vadd.f32 %v9640_v40, %v7851_v20  ;;  %v8330_v40 = vrot.slane %v14004_v36, 4 }
 0xa6f   : > { %v7860_v3 = vadd.f32 %v9599_v63, %v7695_v50  ;;  %v8331_v6 = vmax.f32 %v14004_v36, %v8330_v40 }
 0xa71   : > { %v8001_v11 = vadd.f32 %v9643_v24, %v7860_v3 }
 0xa78   : > { %v9720_v7 = vpop.f32.mrb[96].mxu0 }
 0xa79   : > { %v9721_v37 = vpop.f32.mrb[97].mxu0 }
 0xa7a   : > { %v9722_v18 = vadd.f32 %v9721_v37, %v9720_v7 }
 0xa7c   : > { %v9723_v51 = vpop.f32.mrb[98].mxu0 }
 0xa7d   : > { %v9724_v61 = vpop.f32.mrb[99].mxu0 }
 0xa7e   : > { %v9725_v45 = vadd.f32 %v9724_v61, %v9723_v51 }
 0xa80   : > { %v9676_v29 = vpop.f32.mrb[112].mxu1  ;;  %v9726_v62 = vpop.f32.mrb[100].mxu0 }
 0xa81   : > { %v9677_v58 = vpop.f32.mrb[113].mxu1  ;;  %v9727_v55 = vpop.f32.mrb[101].mxu0 }
 0xa82   : > { %v9678_v52 = vadd.f32 %v9677_v58, %v9676_v29  ;;  %v9728_v8 = vadd.f32 %v9727_v55, %v9726_v62 }
 0xa84   : > { %v8169_v17 = vadd.f32 %v9678_v52, %v7968_v9  ;;  %v9679_v10 = vpop.f32.mrb[114].mxu1  ;;  %v9729_v21 = vpop.f32.mrb[102].mxu0  ;;  %v8332_v9 = vrot.slane %v8331_v6, 2 }
 0xa85   : > { %v9680_v53 = vpop.f32.mrb[115].mxu1  ;;  %v9730_v22 = vpop.f32.mrb[103].mxu0 }
 0xa86   : > { %v8294_v23 = vadd.f32 %v9722_v18, %v8169_v17  ;;  %v9681_v28 = vadd.f32 %v9680_v53, %v9679_v10  ;;  %v9731_v32 = vadd.f32 %v9730_v22, %v9729_v21  ;;  %v8333_v14 = vmax.f32 %v8331_v6, %v8332_v9 }
 0xa88   : > { %v8176_v43 = vadd.f32 %v9681_v28, %v7979_v57  ;;  %v9682_v42 = vpop.f32.mrb[116].mxu1  ;;  %v8318_v12 = vmul.f32 0.00390625, %v8294_v23  ;;  %v8334_v20 = vrot.slane %v8333_v14, 1 }
 0xa89   : > { %v9683_v19 = vpop.f32.mrb[117].mxu1 }
 0xa8a   : > { %v8301_v50 = vadd.f32 %v9725_v45, %v8176_v43  ;;  %v9684_v4 = vadd.f32 %v9683_v19, %v9682_v42  ;;  %v8336_v1 = vsel %vm8322_vm3, %v8318_v12, -inf  ;;  %v8335_v63 = vmax.f32 %v8333_v14, %v8334_v20 }
 0xa8c   : > { %v8319_v44 = vmul.f32 0.00390625, %v8301_v50  ;;  %v8183_v35 = vadd.f32 %v9684_v4, %v7990_v27  ;;  %v9685_v48 = vpop.f32.mrb[118].mxu1 }
 0xa8d   : > { %v9686_v25 = vpop.f32.mrb[119].mxu1 }
 0xa8e   : > { %v8337_v30 = vsel %vm8322_vm3, %v8319_v44, -inf  ;;  %v8308_v47 = vadd.f32 %v9728_v8, %v8183_v35  ;;  %v9687_v31 = vadd.f32 %v9686_v25, %v9685_v48 }
 0xa8f   : > { %v8340_v0 = vmax.f32 %v8336_v1, %v8337_v30 }
 0xa90   : > { %v8190_v13 = vadd.f32 %v9687_v31, %v8001_v11  ;;  %v8320_v39 = vmul.f32 0.00390625, %v8308_v47 }
 0xa92   : > { %v8315_v5 = vadd.f32 %v9731_v32, %v8190_v13  ;;  %v8338_v33 = vsel %vm8322_vm3, %v8320_v39, -inf }
 0xa94   : > { %v8321_v59 = vmul.f32 0.00390625, %v8315_v5 }
 0xa96   : > { %v8339_v41 = vsel %vm8322_vm3, %v8321_v59, -inf }
 0xa97   : > { %v8341_v24 = vmax.f32 %v8338_v33, %v8339_v41 }
 0xa99   : > { %v8342_v49 = vmax.f32 %v8340_v0, %v8341_v24 }
 0xa9b   : > { %v8343_v16 = vrot.slane %v8342_v49, 4 }
 0xa9d   : > { %v8344_v46 = vmax.f32 %v8342_v49, %v8343_v16 }
 0xa9f   : > { %v8345_v57 = vrot.slane %v8344_v46, 2 }
 0xaa1   : > { %v8346_v34 = vmax.f32 %v8344_v46, %v8345_v57 }
 0xaa3   : > { %v8347_v56 = vrot.slane %v8346_v34, 1 }
 0xaa5   : > { %v8348_v27 = vmax.f32 %v8346_v34, %v8347_v56 }
 0xaa7   : > { %v8349_v3 = vmax.f32 %v8335_v63, %v8348_v27 }
 0xaa9   : > { %v8362_v11 = vsub.f32 %v8318_v12, %v8349_v3  ;;  %v8363_v7 = vsub.f32 %v8319_v44, %v8349_v3  ;;  %v8364_v36 = vsub.f32 %v8320_v39, %v8349_v3  ;;  %v8365_v37 = vsub.f32 %v8321_v59, %v8349_v3 }
 0xaaa   : > { %v8350_v18 = vsub.f32 %v13988_v26, %v8349_v3  ;;  %v8351_v51 = vsub.f32 %v13990_v38, %v8349_v3  ;;  %v8352_v61 = vsub.f32 %v13996_v15, %v8349_v3  ;;  %v8353_v45 = vsub.f32 %v13998_v2, %v8349_v3 }
 0xaab   : > { %v8366_v29 = vmul.f32 1.442695, %v8362_v11  ;;  %v8368_v62 = vmul.f32 1.442695, %v8363_v7  ;;  %v8370_v58 = vmul.f32 1.442695, %v8364_v36 }
 0xaac   : > { %v8372_v55 = vmul.f32 1.442695, %v8365_v37  ;;  %v8354_v52 = vmul.f32 1.442695, %v8350_v18  ;;  %v8356_v8 = vmul.f32 1.442695, %v8351_v51 }
 0xaad   : > { %11156 = vpow2.f32 %v8366_v29  ;;  %v8358_v17 = vmul.f32 1.442695, %v8352_v61  ;;  %v8360_v10 = vmul.f32 1.442695, %v8353_v45  ;;  %v14702_v36 = vld [vmem:[#allocation10_spill] sm:$0xff]  ;;  %v14703_v18 = vld [vmem:[#allocation12_spill] sm:$0xff] }
 0xaae   : > { %11158 = vpow2.f32 %v8368_v62  ;;  %v14704_v61 = vld [vmem:[#allocation30_spill] sm:$0xff]  ;;  %v14705_v29 = vld [vmem:[#allocation41_spill] sm:$0xff] }
 0xaaf   : > { %11160 = vpow2.f32 %v8370_v58 }
 0xab0   : > { %11162 = vpow2.f32 %v8372_v55 }
 0xab1   : > { %11164 = vpow2.f32 %v8354_v52 }
 0xab2   : > { %11166 = vpow2.f32 %v8356_v8 }
 0xab3   : > { %11168 = vpow2.f32 %v8358_v17  ;;  %v14706_v17 = vld [vmem:[#allocation44_spill] sm:$0xff] }
 0xab4   : > { %11170 = vpow2.f32 %v8360_v10 }
 0xab7   : > { %v11157_v26 = vpop.eup %11156 }
 0xab8   : > { %v11159_v38 = vpop.eup %11158  ;;  %v8387_v15 = vsel %vm8322_vm3, %v11157_v26, 0.0 }
 0xab9   : > { %v11161_v2 = vpop.eup %11160  ;;  %v8388_v21 = vsel %vm8322_vm3, %v11159_v38, 0.0 }
 0xaba   : > { %v11163_v53 = vpop.eup %11162  ;;  %v8389_v22 = vadd.f32 %v8388_v21, %v8387_v15  ;;  %v8390_v28 = vsel %vm8322_vm3, %v11161_v2, 0.0 }
 0xabb   : > { %v11165_v23 = vpop.eup %11164  ;;  %v8392_v12 = vsel %vm8322_vm3, %v11163_v53, 0.0 }
 0xabc   : > { %v11167_v32 = vpop.eup %11166  ;;  %v8391_v43 = vadd.f32 %v8390_v28, %v8389_v22  ;;  %v8374_v42 = vsel %vm8322_vm3, %v11165_v23, 0.0  ;;  %v14708_v22 = vld [vmem:[#allocation18_spill] sm:$0xff]  ;;  %v14709_v28 = vld [vmem:[#allocation20_spill] sm:$0xff] }
 0xabd   : > { %v11169_v19 = vpop.eup %11168  ;;  %v8375_v50 = vsel %vm8322_vm3, %v11167_v32, 0.0 }
 0xabe   : > { %v11171_v4 = vpop.eup %11170  ;;  %v8393_v44 = vadd.f32 %v8392_v12, %v8391_v43  ;;  %v8376_v35 = vadd.f32 %v8375_v50, %v8374_v42  ;;  %v8377_v48 = vsel %vm8322_vm3, %v11169_v19, 0.0  ;;  %v14710_v43 = vld [vmem:[#allocation13_spill] sm:$0xff] }
 0xabf   : > { %v8379_v30 = vsel %vm8322_vm3, %v11171_v4, 0.0 }
 0xac0   : > { %v8394_v25 = vrot.slane %v8393_v44, 4  ;;  %v8378_v1 = vadd.f32 %v8377_v48, %v8376_v35  ;;  %v14714_v48 = vld [vmem:[#allocation48_spill] sm:$0xff] }
 0xac2   : > { %v8395_v47 = vadd.f32 %v8394_v25, %v8393_v44  ;;  %v8380_v31 = vadd.f32 %v8379_v30, %v8378_v1  ;;  %v14713_v44 = vld [vmem:[#allocation46_spill] sm:$0xff]  ;;  %v14715_v1 = vld [vmem:[#allocation73_spill] sm:$0xff] }
 0xac4   : > { %v8396_v0 = vrot.slane %v8395_v47, 2  ;;  %v8381_v13 = vrot.slane %v8380_v31, 4 }
 0xac6   : > { %v8397_v40 = vadd.f32 %v8396_v0, %v8395_v47  ;;  %v8382_v39 = vadd.f32 %v8381_v13, %v8380_v31 }
 0xac8   : > { %v8398_v5 = vrot.slane %v8397_v40, 1  ;;  %v8383_v59 = vrot.slane %v8382_v39, 2 }
 0xaca   : > { %v8384_v6 = vadd.f32 %v8383_v59, %v8382_v39  ;;  %v8399_v33 = vadd.f32 %v8398_v5, %v8397_v40 }
 0xacc   : > { %v8385_v41 = vrot.slane %v8384_v6, 1 }
 0xace   : > { %v8386_v24 = vadd.f32 %v8385_v41, %v8384_v6 }
 0xad0   : > { %v8400_v9 = vadd.f32 %v8399_v33, %v8386_v24 }
 0xad2   : > { %11172 = vrcp.f32 %v8400_v9 }
 0xadc   : > { %v11173_v49 = vpop.eup %11172 }
 0xadd   : > { %v8403_v16 = vmul.f32 %v11173_v49, %v11167_v32  ;;  %v8402_v14 = vmul.f32 %v11173_v49, %v11165_v23  ;;  %v8405_v46 = vmul.f32 %v11173_v49, %v11171_v4  ;;  %v8404_v57 = vmul.f32 %v11173_v49, %v11169_v19  ;;  %v14711_v19 = vld [vmem:[#allocation16_spill] sm:$0xff] }
 0xade   : > { %v8435_v20 = vmul.f32 %v11173_v49, %v11159_v38  ;;  %v8434_v34 = vmul.f32 %v11173_v49, %v11157_v26  ;;  %v8437_v56 = vmul.f32 %v11173_v49, %v11163_v53  ;;  %v8436_v63 = vmul.f32 %v11173_v49, %v11161_v2  ;;  %v14707_v26 = vld [vmem:[#allocation50_spill] sm:$0xff] }
 0xadf   : > { %8413 = vperm.xlu1 %11107, %v8403_v16   ;;  %8408 = vperm.xlu0 %11106, %v8402_v14  }
 0xae3   : > { %8423 = vperm.xlu1 %11107, %v8405_v46   ;;  %8418 = vperm.xlu0 %11106, %v8404_v57  }
 0xae7   : > { %8445 = vperm.xlu1 %11107, %v8435_v20   ;;  %8440 = vperm.xlu0 %11106, %v8434_v34  }
 0xaeb   : > { %8455 = vperm.xlu1 %11107, %v8437_v56   ;;  %8450 = vperm.xlu0 %11106, %v8436_v63  }
 0xb5e   : > { %v8414_v27 = vpop.permute.xlu1 %8413  ;;  %v8409_v3 = vpop.permute.xlu0 %8408 }
 0xb5f   : > { %v8428_v37 = vmul.f32 %v14702_v36, %v8414_v27  ;;  %v8429_v51 = vmul.f32 %v14703_v18, %v8414_v27  ;;  %v8426_v45 = vmul.f32 %v14704_v61, %v8409_v3  ;;  %v8427_v62 = vmul.f32 %v14705_v29, %v8409_v3 }
 0xb62   : > { %v8424_v11 = vpop.permute.xlu1 %8423  ;;  %v8419_v7 = vpop.permute.xlu0 %8418 }
 0xb63   : > { %v8432_v23 = vmul.f32 %v14708_v22, %v8424_v11  ;;  %v8433_v32 = vmul.f32 %v14709_v28, %v8424_v11  ;;  %v8430_v42 = vmul.f32 %v14710_v43, %v8419_v7  ;;  %v8431_v12 = vmul.f32 %v14711_v19, %v8419_v7 }
 0xb66   : > { %v8446_v58 = vpop.permute.xlu1 %8445  ;;  %v8441_v55 = vpop.permute.xlu0 %8440 }
 0xb67   : > { %v8460_v52 = vmul.f32 %v8446_v58, %v13558_v60  ;;  %v8461_v8 = vmul.f32 %v8446_v58, %v13560_v54  ;;  %v8458_v10 = vmul.f32 %v8441_v55, %v14706_v17  ;;  %v8459_v38 = vmul.f32 %v8441_v55, %v14707_v26  ;;  %v14712_v54 = vld [vmem:[#allocation40_spill] sm:$0xff] }
 0xb69   : > { %v8468_v15 = vadd.f32 %v8460_v52, %v8428_v37  ;;  %v8469_v2 = vadd.f32 %v8461_v8, %v8429_v51  ;;  %v8466_v21 = vadd.f32 %v8458_v10, %v8426_v45  ;;  %v8467_v53 = vadd.f32 %v8459_v38, %v8427_v62 }
 0xb6a   : > { %v8456_v60 = vpop.permute.xlu1 %8455  ;;  %v8451_v50 = vpop.permute.xlu0 %8450 }
 0xb6b   : > { %8476 = vst [vmem:[%s379_s24 + $0x10] sm:$0xff] %v8468_v15  ;;  %8477 = vst [vmem:[%s379_s24 + $0x18] sm:$0xff] %v8469_v2  ;;  %v8464_v4 = vmul.f32 %v8456_v60, %v14712_v54  ;;  %v8465_v35 = vmul.f32 %v8456_v60, %v14713_v44  ;;  %v8462_v25 = vmul.f32 %v8451_v50, %v14714_v48 }
 0xb6c   : > { %8474 = vst [vmem:[%s379_s24] sm:$0xff] %v8466_v21  ;;  %8475 = vst [vmem:[%s379_s24 + $0x8] sm:$0xff] %v8467_v53  ;;  %v8463_v30 = vmul.f32 %v8451_v50, %v14715_v1 }
 0xb6d   : > { %v8472_v47 = vadd.f32 %v8464_v4, %v8432_v23  ;;  %v8473_v31 = vadd.f32 %v8465_v35, %v8433_v32  ;;  %v8470_v0 = vadd.f32 %v8462_v25, %v8430_v42 }
 0xb6e   : > { %v8471_v13 = vadd.f32 %v8463_v30, %v8431_v12 }
 0xb6f   : > { %8480 = vst [vmem:[%s379_s24 + $0x30] sm:$0xff] %v8472_v47  ;;  %8481 = vst [vmem:[%s379_s24 + $0x38] sm:$0xff] %v8473_v31 }
 0xb70   : > { %8478 = vst [vmem:[%s379_s24 + $0x20] sm:$0xff] %v8470_v0  ;;  %8479 = vst [vmem:[%s379_s24 + $0x28] sm:$0xff] %v8471_v13 }
 0xb71   : > { %11196 = shalt.err (!%p11193_p3)
}
 0xb72   : > { %s11197_s30 = scalar_lea.hbm %s14047_s22, 1024  ;;  %s11201_s16 = scalar_lea.hbm %s14106_s11, 2048 }
 0xb73   : > { %p11198_p4 = scmp.ne.s32.totalorder %s14047_s22, %s11197_s30  ;;  %p11202_p9 = scmp.lt.u32.totalorder %s14047_s22, %s14106_s11 }
 0xb74   : > { %p11203_p10 = scmp.lt.u32.totalorder %s11201_s16, %s11197_s30  ;;  %p11205_p12 = scmp.lt.u32.totalorder %s11197_s30, %s14047_s22 }
 0xb75   : > { %p11199_p7 = pnand %p11198_p4, %p11357_p5 }
 0xb76   : > { %p11204_p11 = por %p11203_p10, %p11202_p9 }
 0xb77   : > { %p11200_p8 = pneg %p11199_p7 }
 0xb78   : > { %p11206_p13 = por %p11205_p12, %p11204_p11 }
 0xb7a   : > { %p11207_p0 = pnand %p11206_p13, %p11200_p8 }
 0xb7c   : > { %11210 = shalt.err (!%p11207_p0)
}
 0xb7d   : > { %s11258_s0 = smov 256  }
 0xb7e   : > { %11056 = dma.vmem_to_hbm [thread:$0]  (%p11357_p5), %s14049_s15, 1024, %s14047_s22, %s14053_s25, %s11258_s0, %s11258_s0, %s11250_s13  }
 0xb7f PF: > { %p11062_p1 = scmp.ge.s32.totalorder %s11245_s20, 2  ;;  %s8511_s14 = sand.u32 1, %s11233_s17  }
 0xb80   : > { %s8512_s30 = scalar_lea.sflag [#allocation4], %s8511_s14 }
 0xb81   : > { %p11059_p2 = pnand %p11062_p1, %p11361_p6 }
 0xb83   : > { %11228 = dma.done.wait (!%p11059_p2), %s8512_s30, 1024  }
 0xb84   : > { %11230 = vsyncadd (!%p11059_p2), %s8512_s30, 4294966272  ;;  %p21_p3 = scmp.ge.s32.totalorder %s11344_s23, 4   ;;  %s14716_s17 = smov %s11237_s18 }
 0xb85   : > { %s14717_s18 = smov %s11241_s19  ;;  %s14718_s19 = smov %s11355_s26 }
 0xb86   : > { %s14719_s20 = smov %s11344_s23  ;;  %23 = sbr.rel (!%p21_p3) target bundleno = 5 (0x5), region = 99 }
 0xb8d   :  { %8517 = vsyncpa [#allocation4], 1 }
 0xb8e   :  { %8519 = vsyncpa [#allocation4 + $0x1], 1 }

</bundles_post_ra>
